<compile_context>
chip_gen: v6e
topology: v6e:2x2x1
jax: 0.10.0
libtpu: 0.0.40
codegen_flags: <defaults>
</compile_context>

<pallas_src>
import functools

import jax
import jax.numpy as jnp
from jax.experimental import pallas as pl
from jax.experimental.pallas import tpu as pltpu

# Python literals (NOT jnp arrays) so kernel bodies never capture device consts.
NEG_INF = -1.0e30
MATMUL_DTYPE = jnp.bfloat16        # MXU-native operand dtype; accumulate in f32
_TM_MAX = 512                      # rows per M tile (halve if targeting v7x)
_VMEM_LIMIT = 48 * 1024 * 1024     # explicit scoped-VMEM cap; fits v7x's 64 MiB


def _m_tiles(M, tm_max=_TM_MAX):
    """Pick an M tile: whole array if small, else tm_max-row pipelined tiles."""
    if M <= tm_max:
        return M, 1
    return tm_max, pl.cdiv(M, tm_max)


# ----------------------------------------------------------------------------
# Generic fused linear kernel: y = act(x @ w + b) [+ residual], M-tiled,
# weights resident in VMEM across the M grid.
# ----------------------------------------------------------------------------
def _linear_kernel(*refs, activation, has_residual):
    if has_residual:
        x_ref, w_ref, b_ref, r_ref, o_ref = refs
    else:
        x_ref, w_ref, b_ref, o_ref = refs
        r_ref = None
    y = jnp.dot(x_ref[...], w_ref[...], preferred_element_type=jnp.float32)
    y = y + b_ref[...]
    if activation == "relu":
        y = jnp.maximum(y, 0.0)
    elif activation == "sigmoid":
        y = jax.nn.sigmoid(y)
    elif activation == "tanh":
        y = jnp.tanh(y)
    if r_ref is not None:          # fused residual: att + relu(gate(att2))
        y = y + r_ref[...]
    o_ref[...] = y


def pallas_linear(x, w, b=None, activation=None, residual=None):
    """x:(M,K) @ w:(K,N) + b, fused activation / residual; bf16 in, f32 out."""
    M, K = x.shape
    Kw, N = w.shape
    assert K == Kw
    if b is None:
        b = jnp.zeros((N,), jnp.float32)
    b2 = jnp.asarray(b, jnp.float32).reshape(1, N)
    tm, gm = _m_tiles(M)
    in_specs = [pl.BlockSpec((tm, K), lambda i: (i, 0)),
                pl.BlockSpec((K, N), lambda i: (0, 0)),     # weights resident
                pl.BlockSpec((1, N), lambda i: (0, 0))]
    args = [x.astype(MATMUL_DTYPE), w.astype(MATMUL_DTYPE), b2]
    if residual is not None:
        in_specs.append(pl.BlockSpec((tm, N), lambda i: (i, 0)))
        args.append(residual.astype(jnp.float32))
    return pl.pallas_call(
        functools.partial(_linear_kernel, activation=activation,
                          has_residual=residual is not None),
        grid=(gm,),
        in_specs=in_specs,
        out_specs=pl.BlockSpec((tm, N), lambda i: (i, 0)),
        out_shape=jax.ShapeDtypeStruct((M, N), jnp.float32),
        compiler_params=pltpu.CompilerParams(
            dimension_semantics=("parallel",),
            vmem_limit_bytes=_VMEM_LIMIT),
    )(*args)


# ----------------------------------------------------------------------------
# Fused char CNN: conv (as k*E-wide window matmuls) + bias + relu + maxpool.
# ----------------------------------------------------------------------------
def _char_conv_kernel(x_ref, w_ref, b_ref, o_ref, *, E, k, P):
    x = x_ref[...]                      # (tm, Nc*E) bf16, E is a lane multiple
    w = w_ref[...]                      # (k*E, H)   bf16
    best = None
    for p in range(P):                  # P sliding windows, 128-aligned slices
        y = jnp.dot(x[:, p * E:(p + k) * E], w,
                    preferred_element_type=jnp.float32)
        best = y if best is None else jnp.maximum(best, y)
    # relu(max_p(conv_p + b)) == max-pool of relu(conv + b) (relu is monotone)
    o_ref[...] = jnp.maximum(best + b_ref[...], 0.0)


def char_conv_maxpool(x, w, b, *, E, k, P):
    M, KE = x.shape
    H = w.shape[1]
    b2 = jnp.asarray(b, jnp.float32).reshape(1, H)
    tm, gm = _m_tiles(M)
    return pl.pallas_call(
        functools.partial(_char_conv_kernel, E=E, k=k, P=P),
        grid=(gm,),
        in_specs=[pl.BlockSpec((tm, KE), lambda i: (i, 0)),
                  pl.BlockSpec((k * E, H), lambda i: (0, 0)),
                  pl.BlockSpec((1, H), lambda i: (0, 0))],
        out_specs=pl.BlockSpec((tm, H), lambda i: (i, 0)),
        out_shape=jax.ShapeDtypeStruct((M, H), jnp.float32),
        compiler_params=pltpu.CompilerParams(
            dimension_semantics=("parallel",),
            vmem_limit_bytes=_VMEM_LIMIT),
    )(x.astype(MATMUL_DTYPE), w.astype(MATMUL_DTYPE), b2)


# ----------------------------------------------------------------------------
# Fused highway layer: one matmul on [wg | wt] + in-kernel gate combine.
# ----------------------------------------------------------------------------
def _highway_kernel(x_ref, w_ref, b_ref, o_ref, *, H2):
    x = x_ref[...]                                               # (tm, 2H) f32
    y = jnp.dot(x.astype(MATMUL_DTYPE), w_ref[...],
                preferred_element_type=jnp.float32) + b_ref[...]
    g = jax.nn.sigmoid(y[:, :H2])
    t = jnp.maximum(y[:, H2:], 0.0)
    o_ref[...] = g * t + (1.0 - g) * x


def highway_layer(x, hw):
    M, H2 = x.shape
    w = jnp.concatenate([hw["wg"], hw["wt"]], axis=1).astype(MATMUL_DTYPE)
    b = jnp.concatenate([hw["bg"], hw["bt"]]).astype(jnp.float32).reshape(1, 2 * H2)
    tm, gm = _m_tiles(M)
    return pl.pallas_call(
        functools.partial(_highway_kernel, H2=H2),
        grid=(gm,),
        in_specs=[pl.BlockSpec((tm, H2), lambda i: (i, 0)),
                  pl.BlockSpec((H2, 2 * H2), lambda i: (0, 0)),
                  pl.BlockSpec((1, 2 * H2), lambda i: (0, 0))],
        out_specs=pl.BlockSpec((tm, H2), lambda i: (i, 0)),
        out_shape=jax.ShapeDtypeStruct((M, H2), jnp.float32),
        compiler_params=pltpu.CompilerParams(
            dimension_semantics=("parallel",),
            vmem_limit_bytes=_VMEM_LIMIT),
    )(x.astype(jnp.float32), w, b)


# ----------------------------------------------------------------------------
# BiDAF attention kernel (one batch element per grid step).
# ----------------------------------------------------------------------------
def _bidaf_att_kernel(c_ref, q_ref, cm_ref, qm_ref, w_ref, b_ref, o_ref):
    c = c_ref[0]                          # (Lc, D)  f32
    q = q_ref[0]                          # (Lqp, D) f32  (zero padded over Lq)
    cm = cm_ref[0]                        # (Lc, 1)
    qm = qm_ref[0]                        # (1, Lqp)
    w_c = w_ref[0:1, :]                   # (1, D)
    w_q = w_ref[1:2, :]                   # (1, D)
    w_cq = w_ref[2:3, :]                  # (1, D)
    D = c.shape[-1]

    cb = c.astype(MATMUL_DTYPE)           # bf16 operands, cast once
    qb = q.astype(MATMUL_DTYPE)
    dn_last = (((1,), (1,)), ((), ()))    # contract last dims -> no transposes

    # s[i, j] = c_i.w_c + (c_i * w_cq + w_q).q_j + bias
    s = (jnp.sum(c * w_c, axis=-1, keepdims=True)
         + jax.lax.dot_general((c * w_cq + w_q).astype(MATMUL_DTYPE),
                               qb, dn_last,
                               preferred_element_type=jnp.float32)
         + b_ref[...])                    # (Lc, Lqp)

    # masked softmax over the question axis (lanes)
    s_q = jnp.where(qm > 0.0, s, NEG_INF)
    p1 = jnp.exp(s_q - jnp.max(s_q, axis=-1, keepdims=True))
    p1 = p1 * pl.reciprocal(jnp.sum(p1, axis=-1, keepdims=True), approx=True)

    # masked softmax over the context axis (sublanes)
    s_c = jnp.where(cm > 0.0, s, NEG_INF)
    p2 = jnp.exp(s_c - jnp.max(s_c, axis=0, keepdims=True))
    p2 = p2 * pl.reciprocal(jnp.sum(p2, axis=0, keepdims=True), approx=True)

    p1b = p1.astype(MATMUL_DTYPE)
    a = jnp.dot(p1b, qb, preferred_element_type=jnp.float32)           # (Lc, D)
    coef = jax.lax.dot_general(p1b, p2.astype(MATMUL_DTYPE), dn_last,
                               preferred_element_type=jnp.float32)     # (Lc, Lc)
    b2c = jnp.dot(coef.astype(MATMUL_DTYPE), cb,
                  preferred_element_type=jnp.float32)                  # (Lc, D)

    # direct slice stores -- no (Lc, 4D) concatenate temporary
    o_ref[0, :, 0:D] = c
    o_ref[0, :, D:2 * D] = a
    o_ref[0, :, 2 * D:3 * D] = c * a
    o_ref[0, :, 3 * D:4 * D] = c * b2c


def bidaf_attention(c, q, c_mask, q_mask, params):
    B, Lc, D = c.shape
    Lq = q.shape[1]
    Lqp = ((Lq + 127) // 128) * 128       # lane-dense similarity columns
    if Lqp != Lq:
        q = jnp.pad(q, ((0, 0), (0, Lqp - Lq), (0, 0)))
        q_mask = jnp.pad(q_mask, ((0, 0), (0, Lqp - Lq)))
    cm = c_mask.astype(jnp.float32).reshape(B, Lc, 1)
    qm = q_mask.astype(jnp.float32).reshape(B, 1, Lqp)
    w3 = params["w3"].astype(jnp.float32)                 # (3, D)
    bias = params["bias"].reshape(1, 1).astype(jnp.float32)
    return pl.pallas_call(
        _bidaf_att_kernel,
        grid=(B,),
        in_specs=[pl.BlockSpec((1, Lc, D), lambda b: (b, 0, 0)),
                  pl.BlockSpec((1, Lqp, D), lambda b: (b, 0, 0)),
                  pl.BlockSpec((1, Lc, 1), lambda b: (b, 0, 0)),
                  pl.BlockSpec((1, 1, Lqp), lambda b: (b, 0, 0)),
                  pl.BlockSpec((3, D), lambda b: (0, 0)),
                  pl.BlockSpec((1, 1), lambda b: (0, 0))],
        out_specs=pl.BlockSpec((1, Lc, 4 * D), lambda b: (b, 0, 0)),
        out_shape=jax.ShapeDtypeStruct((B, Lc, 4 * D), jnp.float32),
        compiler_params=pltpu.CompilerParams(
            dimension_semantics=("parallel",),
            vmem_limit_bytes=_VMEM_LIMIT),
    )(c.astype(jnp.float32), q.astype(jnp.float32), cm, qm, w3, bias)


# ----------------------------------------------------------------------------
# Bidirectional LSTM recurrence kernel: grid=(L,) "arbitrary"; BOTH directions
# run in one pass (fwd stream reads step t, bwd stream reads step L-1-t through
# a second BlockSpec on the same projected-input array).  w_hh for both dirs
# and the (B, H) h/c states are resident in VMEM scratch across grid steps;
# gate nonlinearities fused.  (PyTorch nn.LSTM gate order i, f, g, o.)
# ----------------------------------------------------------------------------
def _bilstm_seq_kernel(xf_ref, xb_ref, whhf_ref, whhb_ref, hf_ref, hb_ref,
                       h_f, c_f, h_b, c_b):
    t = pl.program_id(0)

    @pl.when(t == 0)
    def _():
        h_f[...] = jnp.zeros_like(h_f)
        c_f[...] = jnp.zeros_like(c_f)
        h_b[...] = jnp.zeros_like(h_b)
        c_b[...] = jnp.zeros_like(c_b)

    H = h_f.shape[-1]

    def step(xp, whh_ref, h_sc, c_sc, out_ref):
        g = xp + jnp.dot(h_sc[...].astype(MATMUL_DTYPE), whh_ref[...],
                         preferred_element_type=jnp.float32)        # (B, 4H)
        i = jax.nn.sigmoid(g[:, 0:H])
        f = jax.nn.sigmoid(g[:, H:2 * H])
        gg = jnp.tanh(g[:, 2 * H:3 * H])
        o = jax.nn.sigmoid(g[:, 3 * H:4 * H])
        c_new = f * c_sc[...] + i * gg
        h_new = o * jnp.tanh(c_new)
        c_sc[...] = c_new
        h_sc[...] = h_new
        out_ref[0] = h_new

    step(xf_ref[0], whhf_ref, h_f, c_f, hf_ref)
    step(xb_ref[0], whhb_ref, h_b, c_b, hb_ref)


def _bilstm_layer(x, pf, pb):
    B, L, Din = x.shape
    H = pf["w_hh"].shape[0]
    H4 = 4 * H

    # One wide MXU matmul projects the inputs of BOTH directions for ALL steps.
    w_ih = jnp.concatenate([pf["w_ih"], pb["w_ih"]], axis=1)           # (Din, 8H)
    b_ih = jnp.concatenate([pf["b_ih"] + pf["b_hh"],
                            pb["b_ih"] + pb["b_hh"]])                  # (8H,)
    xt = jnp.swapaxes(x, 0, 1).reshape(L * B, Din)                     # time-major
    xp = pallas_linear(xt, w_ih, b_ih).reshape(L, B, 2 * H4)

    hs_f, hs_b = pl.pallas_call(
        _bilstm_seq_kernel,
        grid=(L,),
        in_specs=[pl.BlockSpec((1, B, H4), lambda t: (t, 0, 0)),          # fwd cols 0:4H
                  pl.BlockSpec((1, B, H4), lambda t: (L - 1 - t, 0, 1)),  # bwd cols 4H:8H
                  pl.BlockSpec((H, H4), lambda t: (0, 0)),                # resident
                  pl.BlockSpec((H, H4), lambda t: (0, 0))],               # resident
        out_specs=[pl.BlockSpec((1, B, H), lambda t: (t, 0, 0)),
                   pl.BlockSpec((1, B, H), lambda t: (L - 1 - t, 0, 0))],
        out_shape=(jax.ShapeDtypeStruct((L, B, H), jnp.float32),
                   jax.ShapeDtypeStruct((L, B, H), jnp.float32)),
        scratch_shapes=[pltpu.VMEM((B, H), jnp.float32)] * 4,
        compiler_params=pltpu.CompilerParams(
            dimension_semantics=("arbitrary",),
            vmem_limit_bytes=_VMEM_LIMIT),
    )(xp, xp, pf["w_hh"].astype(MATMUL_DTYPE), pb["w_hh"].astype(MATMUL_DTYPE))

    hs = jnp.concatenate([hs_f, hs_b], axis=-1)                        # (L, B, 2H)
    return jnp.swapaxes(hs, 0, 1)                                      # (B, L, 2H)


def bilstm(x, layer_params):
    out = x
    for lp in layer_params:
        out = _bilstm_layer(out, lp["fwd"], lp["bwd"])
    return out


# ----------------------------------------------------------------------------
# Embedding layer: word lookup + proj, fused char CNN + maxpool, fused highway.
# ----------------------------------------------------------------------------
def embed(w_idxs, c_idxs, p):
    B, L = w_idxs.shape
    Nc = c_idxs.shape[-1]
    H = p["word_proj_w"].shape[1]
    E = p["char_embed"].shape[1]
    k = 5  # kernel_size from the module
    P = Nc - k + 1

    w_emb = p["word_vectors"][w_idxs]                              # (B, L, Dw)
    w_proj = pallas_linear(w_emb.reshape(B * L, -1),
                           p["word_proj_w"]).reshape(B, L, H)

    # char CNN: pad E to a lane multiple so in-kernel window slices stay
    # 128-aligned; the fused kernel reads the char activations once.
    ch = p["char_embed"][c_idxs]                                   # (B, L, Nc, E)
    Ep = ((E + 127) // 128) * 128
    if Ep != E:
        ch = jnp.pad(ch, ((0, 0), (0, 0), (0, 0), (0, Ep - E)))
        w_conv = jnp.pad(p["char_conv_w"].reshape(k, E, H),
                         ((0, 0), (0, Ep - E), (0, 0))).reshape(k * Ep, H)
    else:
        w_conv = p["char_conv_w"]
    conv = char_conv_maxpool(ch.reshape(B * L, Nc * Ep), w_conv,
                             p["char_conv_b"], E=Ep, k=k, P=P).reshape(B, L, H)

    x = jnp.concatenate([w_proj, conv], axis=-1).reshape(B * L, 2 * H)
    for hw in p["highway"]:
        x = highway_layer(x, hw)
    return x.reshape(B, L, 2 * H)


# ----------------------------------------------------------------------------
# Output layer (BiDAFOutput): fused N=1 projections + masked log-softmax.
# ----------------------------------------------------------------------------
def _output_kernel(att_ref, mod_ref, mask_ref, wa_ref, wm_ref, b_ref, o_ref):
    # N=1 projections as VPU reductions (no 1-lane MXU matmuls), fused with the
    # masked log-softmax; logits stay (B, Lc) with Lc on the lane axis.
    logits = (jnp.sum(att_ref[...] * wa_ref[...], axis=-1)
              + jnp.sum(mod_ref[...] * wm_ref[...], axis=-1)
              + b_ref[...])                                        # (B, Lc)
    x = jnp.where(mask_ref[...] > 0.0, logits, NEG_INF)
    x = x - jnp.max(x, axis=-1, keepdims=True)
    o_ref[...] = x - jnp.log(jnp.sum(jnp.exp(x), axis=-1, keepdims=True))


def fused_logits_log_softmax(att, mod, c_mask, w_att, w_mod, bias):
    # TODO(synk): tile over B for large batches; a single block is fine here.
    B, Lc, Da = att.shape
    Dm = mod.shape[-1]
    wa = jnp.asarray(w_att, jnp.float32).reshape(1, 1, Da)
    wm = jnp.asarray(w_mod, jnp.float32).reshape(1, 1, Dm)
    b2 = jnp.asarray(bias, jnp.float32).reshape(1, 1)
    mask = c_mask.astype(jnp.float32)
    return pl.pallas_call(
        _output_kernel,
        grid=(1,),
        in_specs=[pl.BlockSpec((B, Lc, Da), lambda i: (0, 0, 0)),
                  pl.BlockSpec((B, Lc, Dm), lambda i: (0, 0, 0)),
                  pl.BlockSpec((B, Lc), lambda i: (0, 0)),
                  pl.BlockSpec((1, 1, Da), lambda i: (0, 0, 0)),
                  pl.BlockSpec((1, 1, Dm), lambda i: (0, 0, 0)),
                  pl.BlockSpec((1, 1), lambda i: (0, 0))],
        out_specs=pl.BlockSpec((B, Lc), lambda i: (0, 0)),
        out_shape=jax.ShapeDtypeStruct((B, Lc), jnp.float32),
        compiler_params=pltpu.CompilerParams(vmem_limit_bytes=_VMEM_LIMIT),
    )(att.astype(jnp.float32), mod.astype(jnp.float32), mask, wa, wm, b2)


def bidaf_output(att, mod, c_mask, p):
    log_p1 = fused_logits_log_softmax(att, mod, c_mask,
                                      p["att_w1"], p["mod_w1"],
                                      p["att_b1"] + p["mod_b1"])
    mod_2 = bilstm(mod, p["rnn"])
    log_p2 = fused_logits_log_softmax(att, mod_2, c_mask,
                                      p["att_w2"], p["mod_w2"],
                                      p["att_b2"] + p["mod_b2"])
    return log_p1, log_p2


# ----------------------------------------------------------------------------
# Full BiDAF forward (drop_prob = 0.0  =>  all dropouts are identity)
# ----------------------------------------------------------------------------
def bidaf_forward(params, cw_idxs, qw_idxs, cw_char_idxs, qw_char_idxs):
    c_mask = (cw_idxs != 0)
    q_mask = (qw_idxs != 0)
    # TODO(synk): pack_padded_sequence / length-sorting of the PyTorch RNNEncoder
    # is not reproduced; the test inputs use all-nonzero word ids so every
    # sequence is full length and the semantics coincide.

    c_emb = embed(cw_idxs, cw_char_idxs, params["emb"])
    q_emb = embed(qw_idxs, qw_char_idxs, params["emb"])

    c_enc = bilstm(c_emb, params["enc"])
    q_enc = bilstm(q_emb, params["enc"])

    att = bidaf_attention(c_enc, q_enc, c_mask, q_mask, params["att"])
    for l in range(len(params["encs_att"])):
        att2 = bilstm(att, params["encs_att"][l])
        att2 = bidaf_attention(att2, att2, c_mask, c_mask, params["atts"][l])
        B, Lc, D8 = att.shape
        # gate matmul + relu + residual add fused in one kernel
        att = pallas_linear(att2.reshape(B * Lc, D8),
                            params["gates"][l]["w"], params["gates"][l]["b"],
                            activation="relu",
                            residual=att.reshape(B * Lc, D8)).reshape(B, Lc, D8)
        # dropout(p=0.0) -> identity

    mod = bilstm(att, params["mod"])
    return bidaf_output(att, mod, c_mask, params["out"])


# ----------------------------------------------------------------------------
# Deterministic parameter initialization
# ----------------------------------------------------------------------------
class KeyGen:
    def __init__(self, seed):
        self.key = jax.random.PRNGKey(seed)

    def __call__(self):
        self.key, sub = jax.random.split(self.key)
        return sub


def _init(kg, shape, scale=0.1):
    return scale * jax.random.normal(kg(), shape, jnp.float32)


def lstm_params(kg, in_dim, hidden):
    return {"w_ih": _init(kg, (in_dim, 4 * hidden)),
            "b_ih": _init(kg, (4 * hidden,)),
            "w_hh": _init(kg, (hidden, 4 * hidden)),
            "b_hh": _init(kg, (4 * hidden,))}


def bilstm_params(kg, in_dims, hidden):
    return [{"fwd": lstm_params(kg, d, hidden),
             "bwd": lstm_params(kg, d, hidden)} for d in in_dims]


def att_params(kg, d):
    return {"w3": _init(kg, (3, d)), "bias": _init(kg, (1, 1))}


def build_params(kg, H, vocab, word_dim, char_vocab, char_emb=100, k=5,
                 bidaf_layers=2):
    emb = {
        "word_vectors": _init(kg, (vocab, word_dim), 0.5),
        "char_embed": _init(kg, (char_vocab, char_emb), 0.5),
        "char_conv_w": _init(kg, (k * char_emb, H)),
        "char_conv_b": _init(kg, (H,)),
        "word_proj_w": _init(kg, (word_dim, H)),   # Linear(..., bias=False)
        "highway": [{"wg": _init(kg, (2 * H, 2 * H)), "bg": _init(kg, (2 * H,)),
                     "wt": _init(kg, (2 * H, 2 * H)), "bt": _init(kg, (2 * H,))}
                    for _ in range(2)],
    }
    out = {
        "att_w1": _init(kg, (8 * H, 1)), "att_b1": _init(kg, (1,)),
        "mod_w1": _init(kg, (2 * H, 1)), "mod_b1": _init(kg, (1,)),
        "rnn": bilstm_params(kg, [2 * H], H),
        "att_w2": _init(kg, (8 * H, 1)), "att_b2": _init(kg, (1,)),
        "mod_w2": _init(kg, (2 * H, 1)), "mod_b2": _init(kg, (1,)),
    }
    return {
        "emb": emb,
        "enc": bilstm_params(kg, [2 * H], H),
        "att": att_params(kg, 2 * H),
        "encs_att": [bilstm_params(kg, [8 * H], H) for _ in range(bidaf_layers)],
        "atts": [att_params(kg, 2 * H) for _ in range(bidaf_layers)],
        "gates": [{"w": _init(kg, (8 * H, 8 * H)), "b": _init(kg, (8 * H,))}
                  for _ in range(bidaf_layers)],
        "mod": bilstm_params(kg, [8 * H, 2 * H], H),
        "out": out,
    }


# ----------------------------------------------------------------------------
if __name__ == "__main__":
    B, Lc, Lq, H = 2, 16, 8, 32
    VOCAB, WORD_DIM, CHAR_VOCAB, N_CHARS = 100, 64, 30, 8

    params = build_params(KeyGen(42), H, VOCAB, WORD_DIM, CHAR_VOCAB)

    key = jax.random.PRNGKey(0)
    k1, k2, k3, k4 = jax.random.split(key, 4)
    cw_idxs = jax.random.randint(k1, (B, Lc), 1, VOCAB)       # nonzero -> full mask
    qw_idxs = jax.random.randint(k2, (B, Lq), 1, VOCAB)
    cw_char_idxs = jax.random.randint(k3, (B, Lc, N_CHARS), 0, CHAR_VOCAB)
    qw_char_idxs = jax.random.randint(k4, (B, Lq, N_CHARS), 0, CHAR_VOCAB)

    fwd = jax.jit(bidaf_forward)
    log_p1, log_p2 = fwd(params, cw_idxs, qw_idxs, cw_char_idxs, qw_char_idxs)
    jax.block_until_ready((log_p1, log_p2))

    assert log_p1.shape == (B, Lc) and log_p2.shape == (B, Lc)
    assert bool(jnp.all(jnp.isfinite(log_p1))) and bool(jnp.all(jnp.isfinite(log_p2)))
    print("KERNEL_OK")
</pallas_src>

<mosaic_0001>
module attributes {stable_mosaic.version = 11 : i64} {
  func.func @_char_conv_kernel(%arg0: i32, %arg1: memref<32x1024xbf16, #tpu.memory_space<vmem>>, %arg2: memref<640x32xbf16, #tpu.memory_space<vmem>>, %arg3: memref<1x32xf32, #tpu.memory_space<vmem>>, %arg4: memref<32x32xf32, #tpu.memory_space<vmem>>) attributes {dimension_semantics = [#tpu.dimension_semantics<parallel>], iteration_bounds = array<i64: 1>, scalar_prefetch = 0 : i64, scratch_operands = 0 : i64, tpu.core_type = #tpu.core_type<tc>, window_params = [{transform_indices = @transform_0, window_bounds = array<i64: 32, 1024>}, {pipeline_mode = #tpu.pipeline_mode<synchronous>, transform_indices = @transform_1, window_bounds = array<i64: 640, 32>}, {pipeline_mode = #tpu.pipeline_mode<synchronous>, transform_indices = @transform_2, window_bounds = array<i64: 1, 32>}, {transform_indices = @transform_3, window_bounds = array<i64: 32, 32>}]} {
    %c0 = arith.constant 0 : index
    %c0_0 = arith.constant 0 : index
    %0 = vector.load %arg1[%c0, %c0_0] : memref<32x1024xbf16, #tpu.memory_space<vmem>>, vector<32x1024xbf16>
    %c0_1 = arith.constant 0 : index
    %c0_2 = arith.constant 0 : index
    %1 = vector.load %arg2[%c0_1, %c0_2] : memref<640x32xbf16, #tpu.memory_space<vmem>>, vector<640x32xbf16>
    %2 = vector.extract_strided_slice %0 {offsets = [0, 0], sizes = [32, 640], strides = [1, 1]} : vector<32x1024xbf16> to vector<32x640xbf16>
    %cst = arith.constant dense<0.000000e+00> : vector<32x32xf32>
    %3 = tpu.matmul %2, %1, %cst {dimension_numbers = #tpu.dot_dimension_numbers<[1], [0], [0], [1], [0, 0, 1, 1], [], []>} : vector<32x640xbf16>, vector<640x32xbf16>, vector<32x32xf32> -> vector<32x32xf32>
    %4 = vector.extract_strided_slice %0 {offsets = [0, 128], sizes = [32, 640], strides = [1, 1]} : vector<32x1024xbf16> to vector<32x640xbf16>
    %cst_3 = arith.constant dense<0.000000e+00> : vector<32x32xf32>
    %5 = tpu.matmul %4, %1, %cst_3 {dimension_numbers = #tpu.dot_dimension_numbers<[1], [0], [0], [1], [0, 0, 1, 1], [], []>} : vector<32x640xbf16>, vector<640x32xbf16>, vector<32x32xf32> -> vector<32x32xf32>
    %6 = arith.maximumf %3, %5 : vector<32x32xf32>
    %7 = vector.extract_strided_slice %0 {offsets = [0, 256], sizes = [32, 640], strides = [1, 1]} : vector<32x1024xbf16> to vector<32x640xbf16>
    %cst_4 = arith.constant dense<0.000000e+00> : vector<32x32xf32>
    %8 = tpu.matmul %7, %1, %cst_4 {dimension_numbers = #tpu.dot_dimension_numbers<[1], [0], [0], [1], [0, 0, 1, 1], [], []>} : vector<32x640xbf16>, vector<640x32xbf16>, vector<32x32xf32> -> vector<32x32xf32>
    %9 = arith.maximumf %6, %8 : vector<32x32xf32>
    %10 = vector.extract_strided_slice %0 {offsets = [0, 384], sizes = [32, 640], strides = [1, 1]} : vector<32x1024xbf16> to vector<32x640xbf16>
    %cst_5 = arith.constant dense<0.000000e+00> : vector<32x32xf32>
    %11 = tpu.matmul %10, %1, %cst_5 {dimension_numbers = #tpu.dot_dimension_numbers<[1], [0], [0], [1], [0, 0, 1, 1], [], []>} : vector<32x640xbf16>, vector<640x32xbf16>, vector<32x32xf32> -> vector<32x32xf32>
    %12 = arith.maximumf %9, %11 : vector<32x32xf32>
    %c0_6 = arith.constant 0 : index
    %c0_7 = arith.constant 0 : index
    %13 = vector.load %arg3[%c0_6, %c0_7] : memref<1x32xf32, #tpu.memory_space<vmem>>, vector<1x32xf32>
    %14 = vector.broadcast %13 : vector<1x32xf32> to vector<32x32xf32>
    %15 = arith.addf %12, %14 : vector<32x32xf32>
    %cst_8 = arith.constant 0.000000e+00 : f32
    %16 = vector.broadcast %cst_8 : f32 to vector<32x32xf32>
    %17 = arith.maximumf %15, %16 : vector<32x32xf32>
    %c0_9 = arith.constant 0 : index
    %c0_10 = arith.constant 0 : index
    %18 = vector.load %arg4[%c0_9, %c0_10] : memref<32x32xf32, #tpu.memory_space<vmem>>, vector<32x32xf32>
    tpu.vector_store %arg4[%c0_9, %c0_10], %17 {strides = array<i32>} : memref<32x32xf32, #tpu.memory_space<vmem>>, vector<32x32xf32>,
    return
  }
  func.func @transform_0(%arg0: i32) -> (i32, i32) {
    %c0_i32 = arith.constant 0 : i32
    %c0_i32_0 = arith.constant 0 : i32
    return %arg0, %c0_i32 : i32, i32
  }
  func.func @transform_1(%arg0: i32) -> (i32, i32) {
    %c0_i32 = arith.constant 0 : i32
    %c0_i32_0 = arith.constant 0 : i32
    %c0_i32_1 = arith.constant 0 : i32
    return %c0_i32, %c0_i32_0 : i32, i32
  }
  func.func @transform_2(%arg0: i32) -> (i32, i32) {
    %c0_i32 = arith.constant 0 : i32
    %c0_i32_0 = arith.constant 0 : i32
    %c0_i32_1 = arith.constant 0 : i32
    return %c0_i32, %c0_i32_0 : i32, i32
  }
  func.func @transform_3(%arg0: i32) -> (i32, i32) {
    %c0_i32 = arith.constant 0 : i32
    %c0_i32_0 = arith.constant 0 : i32
    return %arg0, %c0_i32 : i32, i32
  }
}

module attributes {stable_mosaic.version = 11 : i64} {
  func.func @_linear_kernel(%arg0: i32, %arg1: memref<32x64xbf16, #tpu.memory_space<vmem>>, %arg2: memref<64x32xbf16, #tpu.memory_space<vmem>>, %arg3: memref<1x32xf32, #tpu.memory_space<vmem>>, %arg4: memref<32x32xf32, #tpu.memory_space<vmem>>) attributes {dimension_semantics = [#tpu.dimension_semantics<parallel>], iteration_bounds = array<i64: 1>, scalar_prefetch = 0 : i64, scratch_operands = 0 : i64, tpu.core_type = #tpu.core_type<tc>, window_params = [{transform_indices = @transform_0, window_bounds = array<i64: 32, 64>}, {pipeline_mode = #tpu.pipeline_mode<synchronous>, transform_indices = @transform_1, window_bounds = array<i64: 64, 32>}, {pipeline_mode = #tpu.pipeline_mode<synchronous>, transform_indices = @transform_2, window_bounds = array<i64: 1, 32>}, {transform_indices = @transform_3, window_bounds = array<i64: 32, 32>}]} {
    %c0 = arith.constant 0 : index
    %c0_0 = arith.constant 0 : index
    %0 = vector.load %arg1[%c0, %c0_0] : memref<32x64xbf16, #tpu.memory_space<vmem>>, vector<32x64xbf16>
    %c0_1 = arith.constant 0 : index
    %c0_2 = arith.constant 0 : index
    %1 = vector.load %arg2[%c0_1, %c0_2] : memref<64x32xbf16, #tpu.memory_space<vmem>>, vector<64x32xbf16>
    %cst = arith.constant dense<0.000000e+00> : vector<32x32xf32>
    %2 = tpu.matmul %0, %1, %cst {dimension_numbers = #tpu.dot_dimension_numbers<[1], [0], [0], [1], [0, 0, 1, 1], [], []>} : vector<32x64xbf16>, vector<64x32xbf16>, vector<32x32xf32> -> vector<32x32xf32>
    %c0_3 = arith.constant 0 : index
    %c0_4 = arith.constant 0 : index
    %3 = vector.load %arg3[%c0_3, %c0_4] : memref<1x32xf32, #tpu.memory_space<vmem>>, vector<1x32xf32>
    %4 = vector.broadcast %3 : vector<1x32xf32> to vector<32x32xf32>
    %5 = arith.addf %2, %4 : vector<32x32xf32>
    %c0_5 = arith.constant 0 : index
    %c0_6 = arith.constant 0 : index
    %6 = vector.load %arg4[%c0_5, %c0_6] : memref<32x32xf32, #tpu.memory_space<vmem>>, vector<32x32xf32>
    tpu.vector_store %arg4[%c0_5, %c0_6], %5 {strides = array<i32>} : memref<32x32xf32, #tpu.memory_space<vmem>>, vector<32x32xf32>,
    return
  }
  func.func @transform_0(%arg0: i32) -> (i32, i32) {
    %c0_i32 = arith.constant 0 : i32
    %c0_i32_0 = arith.constant 0 : i32
    return %arg0, %c0_i32 : i32, i32
  }
  func.func @transform_1(%arg0: i32) -> (i32, i32) {
    %c0_i32 = arith.constant 0 : i32
    %c0_i32_0 = arith.constant 0 : i32
    %c0_i32_1 = arith.constant 0 : i32
    return %c0_i32, %c0_i32_0 : i32, i32
  }
  func.func @transform_2(%arg0: i32) -> (i32, i32) {
    %c0_i32 = arith.constant 0 : i32
    %c0_i32_0 = arith.constant 0 : i32
    %c0_i32_1 = arith.constant 0 : i32
    return %c0_i32, %c0_i32_0 : i32, i32
  }
  func.func @transform_3(%arg0: i32) -> (i32, i32) {
    %c0_i32 = arith.constant 0 : i32
    %c0_i32_0 = arith.constant 0 : i32
    return %arg0, %c0_i32 : i32, i32
  }
}

module attributes {stable_mosaic.version = 11 : i64} {
  func.func @_highway_kernel(%arg0: i32, %arg1: memref<32x64xf32, #tpu.memory_space<vmem>>, %arg2: memref<64x128xbf16, #tpu.memory_space<vmem>>, %arg3: memref<1x128xf32, #tpu.memory_space<vmem>>, %arg4: memref<32x64xf32, #tpu.memory_space<vmem>>) attributes {dimension_semantics = [#tpu.dimension_semantics<parallel>], iteration_bounds = array<i64: 1>, scalar_prefetch = 0 : i64, scratch_operands = 0 : i64, tpu.core_type = #tpu.core_type<tc>, window_params = [{transform_indices = @transform_0, window_bounds = array<i64: 32, 64>}, {pipeline_mode = #tpu.pipeline_mode<synchronous>, transform_indices = @transform_1, window_bounds = array<i64: 64, 128>}, {pipeline_mode = #tpu.pipeline_mode<synchronous>, transform_indices = @transform_2, window_bounds = array<i64: 1, 128>}, {transform_indices = @transform_3, window_bounds = array<i64: 32, 64>}]} {
    %c0 = arith.constant 0 : index
    %c0_0 = arith.constant 0 : index
    %0 = vector.load %arg1[%c0, %c0_0] : memref<32x64xf32, #tpu.memory_space<vmem>>, vector<32x64xf32>
    %1 = arith.truncf %0 : vector<32x64xf32> to vector<32x64xbf16>
    %c0_1 = arith.constant 0 : index
    %c0_2 = arith.constant 0 : index
    %2 = vector.load %arg2[%c0_1, %c0_2] : memref<64x128xbf16, #tpu.memory_space<vmem>>, vector<64x128xbf16>
    %cst = arith.constant dense<0.000000e+00> : vector<32x128xf32>
    %3 = tpu.matmul %1, %2, %cst {dimension_numbers = #tpu.dot_dimension_numbers<[1], [0], [0], [1], [0, 0, 1, 1], [], []>} : vector<32x64xbf16>, vector<64x128xbf16>, vector<32x128xf32> -> vector<32x128xf32>
    %c0_3 = arith.constant 0 : index
    %c0_4 = arith.constant 0 : index
    %4 = vector.load %arg3[%c0_3, %c0_4] : memref<1x128xf32, #tpu.memory_space<vmem>>, vector<1x128xf32>
    %5 = vector.broadcast %4 : vector<1x128xf32> to vector<32x128xf32>
    %6 = arith.addf %3, %5 : vector<32x128xf32>
    %7 = vector.extract_strided_slice %6 {offsets = [0, 0], sizes = [32, 64], strides = [1, 1]} : vector<32x128xf32> to vector<32x64xf32>
    %8 = arith.negf %7 : vector<32x64xf32>
    %9 = math.exp %8 : vector<32x64xf32>
    %cst_5 = arith.constant 1.000000e+00 : f32
    %10 = vector.broadcast %cst_5 : f32 to vector<32x64xf32>
    %11 = arith.addf %10, %9 : vector<32x64xf32>
    %12 = arith.divf %10, %11 : vector<32x64xf32>
    %13 = vector.extract_strided_slice %6 {offsets = [0, 64], sizes = [32, 64], strides = [1, 1]} : vector<32x128xf32> to vector<32x64xf32>
    %cst_6 = arith.constant 0.000000e+00 : f32
    %14 = vector.broadcast %cst_6 : f32 to vector<32x64xf32>
    %15 = arith.maximumf %13, %14 : vector<32x64xf32>
    %16 = arith.mulf %12, %15 : vector<32x64xf32>
    %cst_7 = arith.constant 1.000000e+00 : f32
    %17 = vector.broadcast %cst_7 : f32 to vector<32x64xf32>
    %18 = arith.subf %17, %12 : vector<32x64xf32>
    %19 = arith.mulf %18, %0 : vector<32x64xf32>
    %20 = arith.addf %16, %19 : vector<32x64xf32>
    %c0_8 = arith.constant 0 : index
    %c0_9 = arith.constant 0 : index
    %21 = vector.load %arg4[%c0_8, %c0_9] : memref<32x64xf32, #tpu.memory_space<vmem>>, vector<32x64xf32>
    tpu.vector_store %arg4[%c0_8, %c0_9], %20 {strides = array<i32>} : memref<32x64xf32, #tpu.memory_space<vmem>>, vector<32x64xf32>,
    return
  }
  func.func @transform_0(%arg0: i32) -> (i32, i32) {
    %c0_i32 = arith.constant 0 : i32
    %c0_i32_0 = arith.constant 0 : i32
    return %arg0, %c0_i32 : i32, i32
  }
  func.func @transform_1(%arg0: i32) -> (i32, i32) {
    %c0_i32 = arith.constant 0 : i32
    %c0_i32_0 = arith.constant 0 : i32
    %c0_i32_1 = arith.constant 0 : i32
    return %c0_i32, %c0_i32_0 : i32, i32
  }
  func.func @transform_2(%arg0: i32) -> (i32, i32) {
    %c0_i32 = arith.constant 0 : i32
    %c0_i32_0 = arith.constant 0 : i32
    %c0_i32_1 = arith.constant 0 : i32
    return %c0_i32, %c0_i32_0 : i32, i32
  }
  func.func @transform_3(%arg0: i32) -> (i32, i32) {
    %c0_i32 = arith.constant 0 : i32
    %c0_i32_0 = arith.constant 0 : i32
    return %arg0, %c0_i32 : i32, i32
  }
}

module attributes {stable_mosaic.version = 11 : i64} {
  func.func @_linear_kernel(%arg0: i32, %arg1: memref<32x64xbf16, #tpu.memory_space<vmem>>, %arg2: memref<64x256xbf16, #tpu.memory_space<vmem>>, %arg3: memref<1x256xf32, #tpu.memory_space<vmem>>, %arg4: memref<32x256xf32, #tpu.memory_space<vmem>>) attributes {dimension_semantics = [#tpu.dimension_semantics<parallel>], iteration_bounds = array<i64: 1>, scalar_prefetch = 0 : i64, scratch_operands = 0 : i64, tpu.core_type = #tpu.core_type<tc>, window_params = [{transform_indices = @transform_0, window_bounds = array<i64: 32, 64>}, {pipeline_mode = #tpu.pipeline_mode<synchronous>, transform_indices = @transform_1, window_bounds = array<i64: 64, 256>}, {pipeline_mode = #tpu.pipeline_mode<synchronous>, transform_indices = @transform_2, window_bounds = array<i64: 1, 256>}, {transform_indices = @transform_3, window_bounds = array<i64: 32, 256>}]} {
    %c0 = arith.constant 0 : index
    %c0_0 = arith.constant 0 : index
    %0 = vector.load %arg1[%c0, %c0_0] : memref<32x64xbf16, #tpu.memory_space<vmem>>, vector<32x64xbf16>
    %c0_1 = arith.constant 0 : index
    %c0_2 = arith.constant 0 : index
    %1 = vector.load %arg2[%c0_1, %c0_2] : memref<64x256xbf16, #tpu.memory_space<vmem>>, vector<64x256xbf16>
    %cst = arith.constant dense<0.000000e+00> : vector<32x256xf32>
    %2 = tpu.matmul %0, %1, %cst {dimension_numbers = #tpu.dot_dimension_numbers<[1], [0], [0], [1], [0, 0, 1, 1], [], []>} : vector<32x64xbf16>, vector<64x256xbf16>, vector<32x256xf32> -> vector<32x256xf32>
    %c0_3 = arith.constant 0 : index
    %c0_4 = arith.constant 0 : index
    %3 = vector.load %arg3[%c0_3, %c0_4] : memref<1x256xf32, #tpu.memory_space<vmem>>, vector<1x256xf32>
    %4 = vector.broadcast %3 : vector<1x256xf32> to vector<32x256xf32>
    %5 = arith.addf %2, %4 : vector<32x256xf32>
    %c0_5 = arith.constant 0 : index
    %c0_6 = arith.constant 0 : index
    %6 = vector.load %arg4[%c0_5, %c0_6] : memref<32x256xf32, #tpu.memory_space<vmem>>, vector<32x256xf32>
    tpu.vector_store %arg4[%c0_5, %c0_6], %5 {strides = array<i32>} : memref<32x256xf32, #tpu.memory_space<vmem>>, vector<32x256xf32>,
    return
  }
  func.func @transform_0(%arg0: i32) -> (i32, i32) {
    %c0_i32 = arith.constant 0 : i32
    %c0_i32_0 = arith.constant 0 : i32
    return %arg0, %c0_i32 : i32, i32
  }
  func.func @transform_1(%arg0: i32) -> (i32, i32) {
    %c0_i32 = arith.constant 0 : i32
    %c0_i32_0 = arith.constant 0 : i32
    %c0_i32_1 = arith.constant 0 : i32
    return %c0_i32, %c0_i32_0 : i32, i32
  }
  func.func @transform_2(%arg0: i32) -> (i32, i32) {
    %c0_i32 = arith.constant 0 : i32
    %c0_i32_0 = arith.constant 0 : i32
    %c0_i32_1 = arith.constant 0 : i32
    return %c0_i32, %c0_i32_0 : i32, i32
  }
  func.func @transform_3(%arg0: i32) -> (i32, i32) {
    %c0_i32 = arith.constant 0 : i32
    %c0_i32_0 = arith.constant 0 : i32
    return %arg0, %c0_i32 : i32, i32
  }
}

module attributes {stable_mosaic.version = 11 : i64} {
  func.func @_bilstm_seq_kernel(%arg0: i32, %arg1: memref<1x2x128xf32, #tpu.memory_space<vmem>>, %arg2: memref<1x2x128xf32, #tpu.memory_space<vmem>>, %arg3: memref<32x128xbf16, #tpu.memory_space<vmem>>, %arg4: memref<32x128xbf16, #tpu.memory_space<vmem>>, %arg5: memref<1x2x32xf32, #tpu.memory_space<vmem>>, %arg6: memref<1x2x32xf32, #tpu.memory_space<vmem>>, %arg7: memref<2x32xf32, #tpu.memory_space<vmem>>, %arg8: memref<2x32xf32, #tpu.memory_space<vmem>>, %arg9: memref<2x32xf32, #tpu.memory_space<vmem>>, %arg10: memref<2x32xf32, #tpu.memory_space<vmem>>) attributes {dimension_semantics = [#tpu.dimension_semantics<arbitrary>], iteration_bounds = array<i64: 16>, scalar_prefetch = 0 : i64, scratch_operands = 4 : i64, tpu.core_type = #tpu.core_type<tc>, window_params = [{transform_indices = @transform_0, window_bounds = array<i64: 1, 2, 128>}, {transform_indices = @transform_1, window_bounds = array<i64: 1, 2, 128>}, {pipeline_mode = #tpu.pipeline_mode<synchronous>, transform_indices = @transform_2, window_bounds = array<i64: 32, 128>}, {pipeline_mode = #tpu.pipeline_mode<synchronous>, transform_indices = @transform_3, window_bounds = array<i64: 32, 128>}, {transform_indices = @transform_4, window_bounds = array<i64: 1, 2, 32>}, {transform_indices = @transform_5, window_bounds = array<i64: 1, 2, 32>}]} {
    %c0_i32 = arith.constant 0 : i32
    %0 = arith.cmpi eq, %arg0, %c0_i32 : i32
    %1 = arith.extui %0 : i1 to i32
    %c0_i32_0 = arith.constant 0 : i32
    %2 = arith.cmpi ne, %1, %c0_i32_0 : i32
    scf.if %2 {
      %cst_39 = arith.constant 0.000000e+00 : f32
      %79 = vector.broadcast %cst_39 : f32 to vector<2x32xf32>
      %c0_40 = arith.constant 0 : index
      %c0_41 = arith.constant 0 : index
      %80 = vector.load %arg7[%c0_40, %c0_41] : memref<2x32xf32, #tpu.memory_space<vmem>>, vector<2x32xf32>
      tpu.vector_store %arg7[%c0_40, %c0_41], %79 {strides = array<i32>} : memref<2x32xf32, #tpu.memory_space<vmem>>, vector<2x32xf32>,
      %cst_42 = arith.constant 0.000000e+00 : f32
      %81 = vector.broadcast %cst_42 : f32 to vector<2x32xf32>
      %c0_43 = arith.constant 0 : index
      %c0_44 = arith.constant 0 : index
      %82 = vector.load %arg8[%c0_43, %c0_44] : memref<2x32xf32, #tpu.memory_space<vmem>>, vector<2x32xf32>
      tpu.vector_store %arg8[%c0_43, %c0_44], %81 {strides = array<i32>} : memref<2x32xf32, #tpu.memory_space<vmem>>, vector<2x32xf32>,
      %cst_45 = arith.constant 0.000000e+00 : f32
      %83 = vector.broadcast %cst_45 : f32 to vector<2x32xf32>
      %c0_46 = arith.constant 0 : index
      %c0_47 = arith.constant 0 : index
      %84 = vector.load %arg9[%c0_46, %c0_47] : memref<2x32xf32, #tpu.memory_space<vmem>>, vector<2x32xf32>
      tpu.vector_store %arg9[%c0_46, %c0_47], %83 {strides = array<i32>} : memref<2x32xf32, #tpu.memory_space<vmem>>, vector<2x32xf32>,
      %cst_48 = arith.constant 0.000000e+00 : f32
      %85 = vector.broadcast %cst_48 : f32 to vector<2x32xf32>
      %c0_49 = arith.constant 0 : index
      %c0_50 = arith.constant 0 : index
      %86 = vector.load %arg10[%c0_49, %c0_50] : memref<2x32xf32, #tpu.memory_space<vmem>>, vector<2x32xf32>
      tpu.vector_store %arg10[%c0_49, %c0_50], %85 {strides = array<i32>} : memref<2x32xf32, #tpu.memory_space<vmem>>, vector<2x32xf32>,
    } else {
    }
    %c0 = arith.constant 0 : index
    %c0_1 = arith.constant 0 : index
    %c0_2 = arith.constant 0 : index
    %3 = vector.load %arg1[%c0, %c0_1, %c0_2] : memref<1x2x128xf32, #tpu.memory_space<vmem>>, vector<1x2x128xf32>
    %4 = vector.shape_cast %3 : vector<1x2x128xf32> to vector<2x128xf32>
    %c0_3 = arith.constant 0 : index
    %c0_4 = arith.constant 0 : index
    %5 = vector.load %arg7[%c0_3, %c0_4] : memref<2x32xf32, #tpu.memory_space<vmem>>, vector<2x32xf32>
    %6 = arith.truncf %5 : vector<2x32xf32> to vector<2x32xbf16>
    %c0_5 = arith.constant 0 : index
    %c0_6 = arith.constant 0 : index
    %7 = vector.load %arg3[%c0_5, %c0_6] : memref<32x128xbf16, #tpu.memory_space<vmem>>, vector<32x128xbf16>
    %cst = arith.constant dense<0.000000e+00> : vector<2x128xf32>
    %8 = tpu.matmul %6, %7, %cst {dimension_numbers = #tpu.dot_dimension_numbers<[1], [0], [0], [1], [0, 0, 1, 1], [], []>} : vector<2x32xbf16>, vector<32x128xbf16>, vector<2x128xf32> -> vector<2x128xf32>
    %9 = arith.addf %4, %8 : vector<2x128xf32>
    %10 = vector.extract_strided_slice %9 {offsets = [0, 0], sizes = [2, 32], strides = [1, 1]} : vector<2x128xf32> to vector<2x32xf32>
    %11 = arith.negf %10 : vector<2x32xf32>
    %12 = math.exp %11 : vector<2x32xf32>
    %cst_7 = arith.constant 1.000000e+00 : f32
    %13 = vector.broadcast %cst_7 : f32 to vector<2x32xf32>
    %14 = arith.addf %13, %12 : vector<2x32xf32>
    %15 = arith.divf %13, %14 : vector<2x32xf32>
    %16 = vector.extract_strided_slice %9 {offsets = [0, 32], sizes = [2, 32], strides = [1, 1]} : vector<2x128xf32> to vector<2x32xf32>
    %17 = arith.negf %16 : vector<2x32xf32>
    %18 = math.exp %17 : vector<2x32xf32>
    %cst_8 = arith.constant 1.000000e+00 : f32
    %19 = vector.broadcast %cst_8 : f32 to vector<2x32xf32>
    %20 = arith.addf %19, %18 : vector<2x32xf32>
    %21 = arith.divf %19, %20 : vector<2x32xf32>
    %22 = vector.extract_strided_slice %9 {offsets = [0, 64], sizes = [2, 32], strides = [1, 1]} : vector<2x128xf32> to vector<2x32xf32>
    %23 = math.tanh %22 : vector<2x32xf32>
    %24 = vector.extract_strided_slice %9 {offsets = [0, 96], sizes = [2, 32], strides = [1, 1]} : vector<2x128xf32> to vector<2x32xf32>
    %25 = arith.negf %24 : vector<2x32xf32>
    %26 = math.exp %25 : vector<2x32xf32>
    %cst_9 = arith.constant 1.000000e+00 : f32
    %27 = vector.broadcast %cst_9 : f32 to vector<2x32xf32>
    %28 = arith.addf %27, %26 : vector<2x32xf32>
    %29 = arith.divf %27, %28 : vector<2x32xf32>
    %c0_10 = arith.constant 0 : index
    %c0_11 = arith.constant 0 : index
    %30 = vector.load %arg8[%c0_10, %c0_11] : memref<2x32xf32, #tpu.memory_space<vmem>>, vector<2x32xf32>
    %31 = arith.mulf %21, %30 : vector<2x32xf32>
    %32 = arith.mulf %15, %23 : vector<2x32xf32>
    %33 = arith.addf %31, %32 : vector<2x32xf32>
    %34 = math.tanh %33 : vector<2x32xf32>
    %35 = arith.mulf %29, %34 : vector<2x32xf32>
    %c0_12 = arith.constant 0 : index
    %c0_13 = arith.constant 0 : index
    %36 = vector.load %arg8[%c0_12, %c0_13] : memref<2x32xf32, #tpu.memory_space<vmem>>, vector<2x32xf32>
    tpu.vector_store %arg8[%c0_12, %c0_13], %33 {strides = array<i32>} : memref<2x32xf32, #tpu.memory_space<vmem>>, vector<2x32xf32>,
    %c0_14 = arith.constant 0 : index
    %c0_15 = arith.constant 0 : index
    %37 = vector.load %arg7[%c0_14, %c0_15] : memref<2x32xf32, #tpu.memory_space<vmem>>, vector<2x32xf32>
    tpu.vector_store %arg7[%c0_14, %c0_15], %35 {strides = array<i32>} : memref<2x32xf32, #tpu.memory_space<vmem>>, vector<2x32xf32>,
    %c0_16 = arith.constant 0 : index
    %c0_17 = arith.constant 0 : index
    %c0_18 = arith.constant 0 : index
    %38 = vector.load %arg5[%c0_16, %c0_17, %c0_18] : memref<1x2x32xf32, #tpu.memory_space<vmem>>, vector<1x2x32xf32>
    %39 = vector.shape_cast %38 : vector<1x2x32xf32> to vector<2x32xf32>
    %40 = vector.shape_cast %35 : vector<2x32xf32> to vector<1x2x32xf32>
    tpu.vector_store %arg5[%c0_16, %c0_17, %c0_18], %40 {strides = array<i32>} : memref<1x2x32xf32, #tpu.memory_space<vmem>>, vector<1x2x32xf32>,
    %c0_19 = arith.constant 0 : index
    %c0_20 = arith.constant 0 : index
    %c0_21 = arith.constant 0 : index
    %41 = vector.load %arg2[%c0_19, %c0_20, %c0_21] : memref<1x2x128xf32, #tpu.memory_space<vmem>>, vector<1x2x128xf32>
    %42 = vector.shape_cast %41 : vector<1x2x128xf32> to vector<2x128xf32>
    %c0_22 = arith.constant 0 : index
    %c0_23 = arith.constant 0 : index
    %43 = vector.load %arg9[%c0_22, %c0_23] : memref<2x32xf32, #tpu.memory_space<vmem>>, vector<2x32xf32>
    %44 = arith.truncf %43 : vector<2x32xf32> to vector<2x32xbf16>
    %c0_24 = arith.constant 0 : index
    %c0_25 = arith.constant 0 : index
    %45 = vector.load %arg4[%c0_24, %c0_25] : memref<32x128xbf16, #tpu.memory_space<vmem>>, vector<32x128xbf16>
    %cst_26 = arith.constant dense<0.000000e+00> : vector<2x128xf32>
    %46 = tpu.matmul %44, %45, %cst_26 {dimension_numbers = #tpu.dot_dimension_numbers<[1], [0], [0], [1], [0, 0, 1, 1], [], []>} : vector<2x32xbf16>, vector<32x128xbf16>, vector<2x128xf32> -> vector<2x128xf32>
    %47 = arith.addf %42, %46 : vector<2x128xf32>
    %48 = vector.extract_strided_slice %47 {offsets = [0, 0], sizes = [2, 32], strides = [1, 1]} : vector<2x128xf32> to vector<2x32xf32>
    %49 = arith.negf %48 : vector<2x32xf32>
    %50 = math.exp %49 : vector<2x32xf32>
    %cst_27 = arith.constant 1.000000e+00 : f32
    %51 = vector.broadcast %cst_27 : f32 to vector<2x32xf32>
    %52 = arith.addf %51, %50 : vector<2x32xf32>
    %53 = arith.divf %51, %52 : vector<2x32xf32>
    %54 = vector.extract_strided_slice %47 {offsets = [0, 32], sizes = [2, 32], strides = [1, 1]} : vector<2x128xf32> to vector<2x32xf32>
    %55 = arith.negf %54 : vector<2x32xf32>
    %56 = math.exp %55 : vector<2x32xf32>
    %cst_28 = arith.constant 1.000000e+00 : f32
    %57 = vector.broadcast %cst_28 : f32 to vector<2x32xf32>
    %58 = arith.addf %57, %56 : vector<2x32xf32>
    %59 = arith.divf %57, %58 : vector<2x32xf32>
    %60 = vector.extract_strided_slice %47 {offsets = [0, 64], sizes = [2, 32], strides = [1, 1]} : vector<2x128xf32> to vector<2x32xf32>
    %61 = math.tanh %60 : vector<2x32xf32>
    %62 = vector.extract_strided_slice %47 {offsets = [0, 96], sizes = [2, 32], strides = [1, 1]} : vector<2x128xf32> to vector<2x32xf32>
    %63 = arith.negf %62 : vector<2x32xf32>
    %64 = math.exp %63 : vector<2x32xf32>
    %cst_29 = arith.constant 1.000000e+00 : f32
    %65 = vector.broadcast %cst_29 : f32 to vector<2x32xf32>
    %66 = arith.addf %65, %64 : vector<2x32xf32>
    %67 = arith.divf %65, %66 : vector<2x32xf32>
    %c0_30 = arith.constant 0 : index
    %c0_31 = arith.constant 0 : index
    %68 = vector.load %arg10[%c0_30, %c0_31] : memref<2x32xf32, #tpu.memory_space<vmem>>, vector<2x32xf32>
    %69 = arith.mulf %59, %68 : vector<2x32xf32>
    %70 = arith.mulf %53, %61 : vector<2x32xf32>
    %71 = arith.addf %69, %70 : vector<2x32xf32>
    %72 = math.tanh %71 : vector<2x32xf32>
    %73 = arith.mulf %67, %72 : vector<2x32xf32>
    %c0_32 = arith.constant 0 : index
    %c0_33 = arith.constant 0 : index
    %74 = vector.load %arg10[%c0_32, %c0_33] : memref<2x32xf32, #tpu.memory_space<vmem>>, vector<2x32xf32>
    tpu.vector_store %arg10[%c0_32, %c0_33], %71 {strides = array<i32>} : memref<2x32xf32, #tpu.memory_space<vmem>>, vector<2x32xf32>,
    %c0_34 = arith.constant 0 : index
    %c0_35 = arith.constant 0 : index
    %75 = vector.load %arg9[%c0_34, %c0_35] : memref<2x32xf32, #tpu.memory_space<vmem>>, vector<2x32xf32>
    tpu.vector_store %arg9[%c0_34, %c0_35], %73 {strides = array<i32>} : memref<2x32xf32, #tpu.memory_space<vmem>>, vector<2x32xf32>,
    %c0_36 = arith.constant 0 : index
    %c0_37 = arith.constant 0 : index
    %c0_38 = arith.constant 0 : index
    %76 = vector.load %arg6[%c0_36, %c0_37, %c0_38] : memref<1x2x32xf32, #tpu.memory_space<vmem>>, vector<1x2x32xf32>
    %77 = vector.shape_cast %76 : vector<1x2x32xf32> to vector<2x32xf32>
    %78 = vector.shape_cast %73 : vector<2x32xf32> to vector<1x2x32xf32>
    tpu.vector_store %arg6[%c0_36, %c0_37, %c0_38], %78 {strides = array<i32>} : memref<1x2x32xf32, #tpu.memory_space<vmem>>, vector<1x2x32xf32>,
    return
  }
  func.func @transform_0(%arg0: i32) -> (i32, i32, i32) {
    %c0_i32 = arith.constant 0 : i32
    %c0_i32_0 = arith.constant 0 : i32
    %c0_i32_1 = arith.constant 0 : i32
    return %arg0, %c0_i32, %c0_i32_0 : i32, i32, i32
  }
  func.func @transform_1(%arg0: i32) -> (i32, i32, i32) {
    %c15_i32 = arith.constant 15 : i32
    %0 = arith.subi %c15_i32, %arg0 : i32
    %c0_i32 = arith.constant 0 : i32
    %c1_i32 = arith.constant 1 : i32
    %c0_i32_0 = arith.constant 0 : i32
    return %0, %c0_i32, %c1_i32 : i32, i32, i32
  }
  func.func @transform_2(%arg0: i32) -> (i32, i32) {
    %c0_i32 = arith.constant 0 : i32
    %c0_i32_0 = arith.constant 0 : i32
    %c0_i32_1 = arith.constant 0 : i32
    return %c0_i32, %c0_i32_0 : i32, i32
  }
  func.func @transform_3(%arg0: i32) -> (i32, i32) {
    %c0_i32 = arith.constant 0 : i32
    %c0_i32_0 = arith.constant 0 : i32
    %c0_i32_1 = arith.constant 0 : i32
    return %c0_i32, %c0_i32_0 : i32, i32
  }
  func.func @transform_4(%arg0: i32) -> (i32, i32, i32) {
    %c0_i32 = arith.constant 0 : i32
    %c0_i32_0 = arith.constant 0 : i32
    %c0_i32_1 = arith.constant 0 : i32
    return %arg0, %c0_i32, %c0_i32_0 : i32, i32, i32
  }
  func.func @transform_5(%arg0: i32) -> (i32, i32, i32) {
    %c15_i32 = arith.constant 15 : i32
    %0 = arith.subi %c15_i32, %arg0 : i32
    %c0_i32 = arith.constant 0 : i32
    %c0_i32_0 = arith.constant 0 : i32
    %c0_i32_1 = arith.constant 0 : i32
    return %0, %c0_i32, %c0_i32_0 : i32, i32, i32
  }
}

module attributes {stable_mosaic.version = 11 : i64} {
  func.func @_char_conv_kernel(%arg0: i32, %arg1: memref<16x1024xbf16, #tpu.memory_space<vmem>>, %arg2: memref<640x32xbf16, #tpu.memory_space<vmem>>, %arg3: memref<1x32xf32, #tpu.memory_space<vmem>>, %arg4: memref<16x32xf32, #tpu.memory_space<vmem>>) attributes {dimension_semantics = [#tpu.dimension_semantics<parallel>], iteration_bounds = array<i64: 1>, scalar_prefetch = 0 : i64, scratch_operands = 0 : i64, tpu.core_type = #tpu.core_type<tc>, window_params = [{transform_indices = @transform_0, window_bounds = array<i64: 16, 1024>}, {pipeline_mode = #tpu.pipeline_mode<synchronous>, transform_indices = @transform_1, window_bounds = array<i64: 640, 32>}, {pipeline_mode = #tpu.pipeline_mode<synchronous>, transform_indices = @transform_2, window_bounds = array<i64: 1, 32>}, {transform_indices = @transform_3, window_bounds = array<i64: 16, 32>}]} {
    %c0 = arith.constant 0 : index
    %c0_0 = arith.constant 0 : index
    %0 = vector.load %arg1[%c0, %c0_0] : memref<16x1024xbf16, #tpu.memory_space<vmem>>, vector<16x1024xbf16>
    %c0_1 = arith.constant 0 : index
    %c0_2 = arith.constant 0 : index
    %1 = vector.load %arg2[%c0_1, %c0_2] : memref<640x32xbf16, #tpu.memory_space<vmem>>, vector<640x32xbf16>
    %2 = vector.extract_strided_slice %0 {offsets = [0, 0], sizes = [16, 640], strides = [1, 1]} : vector<16x1024xbf16> to vector<16x640xbf16>
    %cst = arith.constant dense<0.000000e+00> : vector<16x32xf32>
    %3 = tpu.matmul %2, %1, %cst {dimension_numbers = #tpu.dot_dimension_numbers<[1], [0], [0], [1], [0, 0, 1, 1], [], []>} : vector<16x640xbf16>, vector<640x32xbf16>, vector<16x32xf32> -> vector<16x32xf32>
    %4 = vector.extract_strided_slice %0 {offsets = [0, 128], sizes = [16, 640], strides = [1, 1]} : vector<16x1024xbf16> to vector<16x640xbf16>
    %cst_3 = arith.constant dense<0.000000e+00> : vector<16x32xf32>
    %5 = tpu.matmul %4, %1, %cst_3 {dimension_numbers = #tpu.dot_dimension_numbers<[1], [0], [0], [1], [0, 0, 1, 1], [], []>} : vector<16x640xbf16>, vector<640x32xbf16>, vector<16x32xf32> -> vector<16x32xf32>
    %6 = arith.maximumf %3, %5 : vector<16x32xf32>
    %7 = vector.extract_strided_slice %0 {offsets = [0, 256], sizes = [16, 640], strides = [1, 1]} : vector<16x1024xbf16> to vector<16x640xbf16>
    %cst_4 = arith.constant dense<0.000000e+00> : vector<16x32xf32>
    %8 = tpu.matmul %7, %1, %cst_4 {dimension_numbers = #tpu.dot_dimension_numbers<[1], [0], [0], [1], [0, 0, 1, 1], [], []>} : vector<16x640xbf16>, vector<640x32xbf16>, vector<16x32xf32> -> vector<16x32xf32>
    %9 = arith.maximumf %6, %8 : vector<16x32xf32>
    %10 = vector.extract_strided_slice %0 {offsets = [0, 384], sizes = [16, 640], strides = [1, 1]} : vector<16x1024xbf16> to vector<16x640xbf16>
    %cst_5 = arith.constant dense<0.000000e+00> : vector<16x32xf32>
    %11 = tpu.matmul %10, %1, %cst_5 {dimension_numbers = #tpu.dot_dimension_numbers<[1], [0], [0], [1], [0, 0, 1, 1], [], []>} : vector<16x640xbf16>, vector<640x32xbf16>, vector<16x32xf32> -> vector<16x32xf32>
    %12 = arith.maximumf %9, %11 : vector<16x32xf32>
    %c0_6 = arith.constant 0 : index
    %c0_7 = arith.constant 0 : index
    %13 = vector.load %arg3[%c0_6, %c0_7] : memref<1x32xf32, #tpu.memory_space<vmem>>, vector<1x32xf32>
    %14 = vector.broadcast %13 : vector<1x32xf32> to vector<16x32xf32>
    %15 = arith.addf %12, %14 : vector<16x32xf32>
    %cst_8 = arith.constant 0.000000e+00 : f32
    %16 = vector.broadcast %cst_8 : f32 to vector<16x32xf32>
    %17 = arith.maximumf %15, %16 : vector<16x32xf32>
    %c0_9 = arith.constant 0 : index
    %c0_10 = arith.constant 0 : index
    %18 = vector.load %arg4[%c0_9, %c0_10] : memref<16x32xf32, #tpu.memory_space<vmem>>, vector<16x32xf32>
    tpu.vector_store %arg4[%c0_9, %c0_10], %17 {strides = array<i32>} : memref<16x32xf32, #tpu.memory_space<vmem>>, vector<16x32xf32>,
    return
  }
  func.func @transform_0(%arg0: i32) -> (i32, i32) {
    %c0_i32 = arith.constant 0 : i32
    %c0_i32_0 = arith.constant 0 : i32
    return %arg0, %c0_i32 : i32, i32
  }
  func.func @transform_1(%arg0: i32) -> (i32, i32) {
    %c0_i32 = arith.constant 0 : i32
    %c0_i32_0 = arith.constant 0 : i32
    %c0_i32_1 = arith.constant 0 : i32
    return %c0_i32, %c0_i32_0 : i32, i32
  }
  func.func @transform_2(%arg0: i32) -> (i32, i32) {
    %c0_i32 = arith.constant 0 : i32
    %c0_i32_0 = arith.constant 0 : i32
    %c0_i32_1 = arith.constant 0 : i32
    return %c0_i32, %c0_i32_0 : i32, i32
  }
  func.func @transform_3(%arg0: i32) -> (i32, i32) {
    %c0_i32 = arith.constant 0 : i32
    %c0_i32_0 = arith.constant 0 : i32
    return %arg0, %c0_i32 : i32, i32
  }
}

module attributes {stable_mosaic.version = 11 : i64} {
  func.func @_linear_kernel(%arg0: i32, %arg1: memref<16x64xbf16, #tpu.memory_space<vmem>>, %arg2: memref<64x32xbf16, #tpu.memory_space<vmem>>, %arg3: memref<1x32xf32, #tpu.memory_space<vmem>>, %arg4: memref<16x32xf32, #tpu.memory_space<vmem>>) attributes {dimension_semantics = [#tpu.dimension_semantics<parallel>], iteration_bounds = array<i64: 1>, scalar_prefetch = 0 : i64, scratch_operands = 0 : i64, tpu.core_type = #tpu.core_type<tc>, window_params = [{transform_indices = @transform_0, window_bounds = array<i64: 16, 64>}, {pipeline_mode = #tpu.pipeline_mode<synchronous>, transform_indices = @transform_1, window_bounds = array<i64: 64, 32>}, {pipeline_mode = #tpu.pipeline_mode<synchronous>, transform_indices = @transform_2, window_bounds = array<i64: 1, 32>}, {transform_indices = @transform_3, window_bounds = array<i64: 16, 32>}]} {
    %c0 = arith.constant 0 : index
    %c0_0 = arith.constant 0 : index
    %0 = vector.load %arg1[%c0, %c0_0] : memref<16x64xbf16, #tpu.memory_space<vmem>>, vector<16x64xbf16>
    %c0_1 = arith.constant 0 : index
    %c0_2 = arith.constant 0 : index
    %1 = vector.load %arg2[%c0_1, %c0_2] : memref<64x32xbf16, #tpu.memory_space<vmem>>, vector<64x32xbf16>
    %cst = arith.constant dense<0.000000e+00> : vector<16x32xf32>
    %2 = tpu.matmul %0, %1, %cst {dimension_numbers = #tpu.dot_dimension_numbers<[1], [0], [0], [1], [0, 0, 1, 1], [], []>} : vector<16x64xbf16>, vector<64x32xbf16>, vector<16x32xf32> -> vector<16x32xf32>
    %c0_3 = arith.constant 0 : index
    %c0_4 = arith.constant 0 : index
    %3 = vector.load %arg3[%c0_3, %c0_4] : memref<1x32xf32, #tpu.memory_space<vmem>>, vector<1x32xf32>
    %4 = vector.broadcast %3 : vector<1x32xf32> to vector<16x32xf32>
    %5 = arith.addf %2, %4 : vector<16x32xf32>
    %c0_5 = arith.constant 0 : index
    %c0_6 = arith.constant 0 : index
    %6 = vector.load %arg4[%c0_5, %c0_6] : memref<16x32xf32, #tpu.memory_space<vmem>>, vector<16x32xf32>
    tpu.vector_store %arg4[%c0_5, %c0_6], %5 {strides = array<i32>} : memref<16x32xf32, #tpu.memory_space<vmem>>, vector<16x32xf32>,
    return
  }
  func.func @transform_0(%arg0: i32) -> (i32, i32) {
    %c0_i32 = arith.constant 0 : i32
    %c0_i32_0 = arith.constant 0 : i32
    return %arg0, %c0_i32 : i32, i32
  }
  func.func @transform_1(%arg0: i32) -> (i32, i32) {
    %c0_i32 = arith.constant 0 : i32
    %c0_i32_0 = arith.constant 0 : i32
    %c0_i32_1 = arith.constant 0 : i32
    return %c0_i32, %c0_i32_0 : i32, i32
  }
  func.func @transform_2(%arg0: i32) -> (i32, i32) {
    %c0_i32 = arith.constant 0 : i32
    %c0_i32_0 = arith.constant 0 : i32
    %c0_i32_1 = arith.constant 0 : i32
    return %c0_i32, %c0_i32_0 : i32, i32
  }
  func.func @transform_3(%arg0: i32) -> (i32, i32) {
    %c0_i32 = arith.constant 0 : i32
    %c0_i32_0 = arith.constant 0 : i32
    return %arg0, %c0_i32 : i32, i32
  }
}

module attributes {stable_mosaic.version = 11 : i64} {
  func.func @_highway_kernel(%arg0: i32, %arg1: memref<16x64xf32, #tpu.memory_space<vmem>>, %arg2: memref<64x128xbf16, #tpu.memory_space<vmem>>, %arg3: memref<1x128xf32, #tpu.memory_space<vmem>>, %arg4: memref<16x64xf32, #tpu.memory_space<vmem>>) attributes {dimension_semantics = [#tpu.dimension_semantics<parallel>], iteration_bounds = array<i64: 1>, scalar_prefetch = 0 : i64, scratch_operands = 0 : i64, tpu.core_type = #tpu.core_type<tc>, window_params = [{transform_indices = @transform_0, window_bounds = array<i64: 16, 64>}, {pipeline_mode = #tpu.pipeline_mode<synchronous>, transform_indices = @transform_1, window_bounds = array<i64: 64, 128>}, {pipeline_mode = #tpu.pipeline_mode<synchronous>, transform_indices = @transform_2, window_bounds = array<i64: 1, 128>}, {transform_indices = @transform_3, window_bounds = array<i64: 16, 64>}]} {
    %c0 = arith.constant 0 : index
    %c0_0 = arith.constant 0 : index
    %0 = vector.load %arg1[%c0, %c0_0] : memref<16x64xf32, #tpu.memory_space<vmem>>, vector<16x64xf32>
    %1 = arith.truncf %0 : vector<16x64xf32> to vector<16x64xbf16>
    %c0_1 = arith.constant 0 : index
    %c0_2 = arith.constant 0 : index
    %2 = vector.load %arg2[%c0_1, %c0_2] : memref<64x128xbf16, #tpu.memory_space<vmem>>, vector<64x128xbf16>
    %cst = arith.constant dense<0.000000e+00> : vector<16x128xf32>
    %3 = tpu.matmul %1, %2, %cst {dimension_numbers = #tpu.dot_dimension_numbers<[1], [0], [0], [1], [0, 0, 1, 1], [], []>} : vector<16x64xbf16>, vector<64x128xbf16>, vector<16x128xf32> -> vector<16x128xf32>
    %c0_3 = arith.constant 0 : index
    %c0_4 = arith.constant 0 : index
    %4 = vector.load %arg3[%c0_3, %c0_4] : memref<1x128xf32, #tpu.memory_space<vmem>>, vector<1x128xf32>
    %5 = vector.broadcast %4 : vector<1x128xf32> to vector<16x128xf32>
    %6 = arith.addf %3, %5 : vector<16x128xf32>
    %7 = vector.extract_strided_slice %6 {offsets = [0, 0], sizes = [16, 64], strides = [1, 1]} : vector<16x128xf32> to vector<16x64xf32>
    %8 = arith.negf %7 : vector<16x64xf32>
    %9 = math.exp %8 : vector<16x64xf32>
    %cst_5 = arith.constant 1.000000e+00 : f32
    %10 = vector.broadcast %cst_5 : f32 to vector<16x64xf32>
    %11 = arith.addf %10, %9 : vector<16x64xf32>
    %12 = arith.divf %10, %11 : vector<16x64xf32>
    %13 = vector.extract_strided_slice %6 {offsets = [0, 64], sizes = [16, 64], strides = [1, 1]} : vector<16x128xf32> to vector<16x64xf32>
    %cst_6 = arith.constant 0.000000e+00 : f32
    %14 = vector.broadcast %cst_6 : f32 to vector<16x64xf32>
    %15 = arith.maximumf %13, %14 : vector<16x64xf32>
    %16 = arith.mulf %12, %15 : vector<16x64xf32>
    %cst_7 = arith.constant 1.000000e+00 : f32
    %17 = vector.broadcast %cst_7 : f32 to vector<16x64xf32>
    %18 = arith.subf %17, %12 : vector<16x64xf32>
    %19 = arith.mulf %18, %0 : vector<16x64xf32>
    %20 = arith.addf %16, %19 : vector<16x64xf32>
    %c0_8 = arith.constant 0 : index
    %c0_9 = arith.constant 0 : index
    %21 = vector.load %arg4[%c0_8, %c0_9] : memref<16x64xf32, #tpu.memory_space<vmem>>, vector<16x64xf32>
    tpu.vector_store %arg4[%c0_8, %c0_9], %20 {strides = array<i32>} : memref<16x64xf32, #tpu.memory_space<vmem>>, vector<16x64xf32>,
    return
  }
  func.func @transform_0(%arg0: i32) -> (i32, i32) {
    %c0_i32 = arith.constant 0 : i32
    %c0_i32_0 = arith.constant 0 : i32
    return %arg0, %c0_i32 : i32, i32
  }
  func.func @transform_1(%arg0: i32) -> (i32, i32) {
    %c0_i32 = arith.constant 0 : i32
    %c0_i32_0 = arith.constant 0 : i32
    %c0_i32_1 = arith.constant 0 : i32
    return %c0_i32, %c0_i32_0 : i32, i32
  }
  func.func @transform_2(%arg0: i32) -> (i32, i32) {
    %c0_i32 = arith.constant 0 : i32
    %c0_i32_0 = arith.constant 0 : i32
    %c0_i32_1 = arith.constant 0 : i32
    return %c0_i32, %c0_i32_0 : i32, i32
  }
  func.func @transform_3(%arg0: i32) -> (i32, i32) {
    %c0_i32 = arith.constant 0 : i32
    %c0_i32_0 = arith.constant 0 : i32
    return %arg0, %c0_i32 : i32, i32
  }
}

module attributes {stable_mosaic.version = 11 : i64} {
  func.func @_linear_kernel(%arg0: i32, %arg1: memref<16x64xbf16, #tpu.memory_space<vmem>>, %arg2: memref<64x256xbf16, #tpu.memory_space<vmem>>, %arg3: memref<1x256xf32, #tpu.memory_space<vmem>>, %arg4: memref<16x256xf32, #tpu.memory_space<vmem>>) attributes {dimension_semantics = [#tpu.dimension_semantics<parallel>], iteration_bounds = array<i64: 1>, scalar_prefetch = 0 : i64, scratch_operands = 0 : i64, tpu.core_type = #tpu.core_type<tc>, window_params = [{transform_indices = @transform_0, window_bounds = array<i64: 16, 64>}, {pipeline_mode = #tpu.pipeline_mode<synchronous>, transform_indices = @transform_1, window_bounds = array<i64: 64, 256>}, {pipeline_mode = #tpu.pipeline_mode<synchronous>, transform_indices = @transform_2, window_bounds = array<i64: 1, 256>}, {transform_indices = @transform_3, window_bounds = array<i64: 16, 256>}]} {
    %c0 = arith.constant 0 : index
    %c0_0 = arith.constant 0 : index
    %0 = vector.load %arg1[%c0, %c0_0] : memref<16x64xbf16, #tpu.memory_space<vmem>>, vector<16x64xbf16>
    %c0_1 = arith.constant 0 : index
    %c0_2 = arith.constant 0 : index
    %1 = vector.load %arg2[%c0_1, %c0_2] : memref<64x256xbf16, #tpu.memory_space<vmem>>, vector<64x256xbf16>
    %cst = arith.constant dense<0.000000e+00> : vector<16x256xf32>
    %2 = tpu.matmul %0, %1, %cst {dimension_numbers = #tpu.dot_dimension_numbers<[1], [0], [0], [1], [0, 0, 1, 1], [], []>} : vector<16x64xbf16>, vector<64x256xbf16>, vector<16x256xf32> -> vector<16x256xf32>
    %c0_3 = arith.constant 0 : index
    %c0_4 = arith.constant 0 : index
    %3 = vector.load %arg3[%c0_3, %c0_4] : memref<1x256xf32, #tpu.memory_space<vmem>>, vector<1x256xf32>
    %4 = vector.broadcast %3 : vector<1x256xf32> to vector<16x256xf32>
    %5 = arith.addf %2, %4 : vector<16x256xf32>
    %c0_5 = arith.constant 0 : index
    %c0_6 = arith.constant 0 : index
    %6 = vector.load %arg4[%c0_5, %c0_6] : memref<16x256xf32, #tpu.memory_space<vmem>>, vector<16x256xf32>
    tpu.vector_store %arg4[%c0_5, %c0_6], %5 {strides = array<i32>} : memref<16x256xf32, #tpu.memory_space<vmem>>, vector<16x256xf32>,
    return
  }
  func.func @transform_0(%arg0: i32) -> (i32, i32) {
    %c0_i32 = arith.constant 0 : i32
    %c0_i32_0 = arith.constant 0 : i32
    return %arg0, %c0_i32 : i32, i32
  }
  func.func @transform_1(%arg0: i32) -> (i32, i32) {
    %c0_i32 = arith.constant 0 : i32
    %c0_i32_0 = arith.constant 0 : i32
    %c0_i32_1 = arith.constant 0 : i32
    return %c0_i32, %c0_i32_0 : i32, i32
  }
  func.func @transform_2(%arg0: i32) -> (i32, i32) {
    %c0_i32 = arith.constant 0 : i32
    %c0_i32_0 = arith.constant 0 : i32
    %c0_i32_1 = arith.constant 0 : i32
    return %c0_i32, %c0_i32_0 : i32, i32
  }
  func.func @transform_3(%arg0: i32) -> (i32, i32) {
    %c0_i32 = arith.constant 0 : i32
    %c0_i32_0 = arith.constant 0 : i32
    return %arg0, %c0_i32 : i32, i32
  }
}

module attributes {stable_mosaic.version = 11 : i64} {
  func.func @_bilstm_seq_kernel(%arg0: i32, %arg1: memref<1x2x128xf32, #tpu.memory_space<vmem>>, %arg2: memref<1x2x128xf32, #tpu.memory_space<vmem>>, %arg3: memref<32x128xbf16, #tpu.memory_space<vmem>>, %arg4: memref<32x128xbf16, #tpu.memory_space<vmem>>, %arg5: memref<1x2x32xf32, #tpu.memory_space<vmem>>, %arg6: memref<1x2x32xf32, #tpu.memory_space<vmem>>, %arg7: memref<2x32xf32, #tpu.memory_space<vmem>>, %arg8: memref<2x32xf32, #tpu.memory_space<vmem>>, %arg9: memref<2x32xf32, #tpu.memory_space<vmem>>, %arg10: memref<2x32xf32, #tpu.memory_space<vmem>>) attributes {dimension_semantics = [#tpu.dimension_semantics<arbitrary>], iteration_bounds = array<i64: 8>, scalar_prefetch = 0 : i64, scratch_operands = 4 : i64, tpu.core_type = #tpu.core_type<tc>, window_params = [{transform_indices = @transform_0, window_bounds = array<i64: 1, 2, 128>}, {transform_indices = @transform_1, window_bounds = array<i64: 1, 2, 128>}, {pipeline_mode = #tpu.pipeline_mode<synchronous>, transform_indices = @transform_2, window_bounds = array<i64: 32, 128>}, {pipeline_mode = #tpu.pipeline_mode<synchronous>, transform_indices = @transform_3, window_bounds = array<i64: 32, 128>}, {transform_indices = @transform_4, window_bounds = array<i64: 1, 2, 32>}, {transform_indices = @transform_5, window_bounds = array<i64: 1, 2, 32>}]} {
    %c0_i32 = arith.constant 0 : i32
    %0 = arith.cmpi eq, %arg0, %c0_i32 : i32
    %1 = arith.extui %0 : i1 to i32
    %c0_i32_0 = arith.constant 0 : i32
    %2 = arith.cmpi ne, %1, %c0_i32_0 : i32
    scf.if %2 {
      %cst_39 = arith.constant 0.000000e+00 : f32
      %79 = vector.broadcast %cst_39 : f32 to vector<2x32xf32>
      %c0_40 = arith.constant 0 : index
      %c0_41 = arith.constant 0 : index
      %80 = vector.load %arg7[%c0_40, %c0_41] : memref<2x32xf32, #tpu.memory_space<vmem>>, vector<2x32xf32>
      tpu.vector_store %arg7[%c0_40, %c0_41], %79 {strides = array<i32>} : memref<2x32xf32, #tpu.memory_space<vmem>>, vector<2x32xf32>,
      %cst_42 = arith.constant 0.000000e+00 : f32
      %81 = vector.broadcast %cst_42 : f32 to vector<2x32xf32>
      %c0_43 = arith.constant 0 : index
      %c0_44 = arith.constant 0 : index
      %82 = vector.load %arg8[%c0_43, %c0_44] : memref<2x32xf32, #tpu.memory_space<vmem>>, vector<2x32xf32>
      tpu.vector_store %arg8[%c0_43, %c0_44], %81 {strides = array<i32>} : memref<2x32xf32, #tpu.memory_space<vmem>>, vector<2x32xf32>,
      %cst_45 = arith.constant 0.000000e+00 : f32
      %83 = vector.broadcast %cst_45 : f32 to vector<2x32xf32>
      %c0_46 = arith.constant 0 : index
      %c0_47 = arith.constant 0 : index
      %84 = vector.load %arg9[%c0_46, %c0_47] : memref<2x32xf32, #tpu.memory_space<vmem>>, vector<2x32xf32>
      tpu.vector_store %arg9[%c0_46, %c0_47], %83 {strides = array<i32>} : memref<2x32xf32, #tpu.memory_space<vmem>>, vector<2x32xf32>,
      %cst_48 = arith.constant 0.000000e+00 : f32
      %85 = vector.broadcast %cst_48 : f32 to vector<2x32xf32>
      %c0_49 = arith.constant 0 : index
      %c0_50 = arith.constant 0 : index
      %86 = vector.load %arg10[%c0_49, %c0_50] : memref<2x32xf32, #tpu.memory_space<vmem>>, vector<2x32xf32>
      tpu.vector_store %arg10[%c0_49, %c0_50], %85 {strides = array<i32>} : memref<2x32xf32, #tpu.memory_space<vmem>>, vector<2x32xf32>,
    } else {
    }
    %c0 = arith.constant 0 : index
    %c0_1 = arith.constant 0 : index
    %c0_2 = arith.constant 0 : index
    %3 = vector.load %arg1[%c0, %c0_1, %c0_2] : memref<1x2x128xf32, #tpu.memory_space<vmem>>, vector<1x2x128xf32>
    %4 = vector.shape_cast %3 : vector<1x2x128xf32> to vector<2x128xf32>
    %c0_3 = arith.constant 0 : index
    %c0_4 = arith.constant 0 : index
    %5 = vector.load %arg7[%c0_3, %c0_4] : memref<2x32xf32, #tpu.memory_space<vmem>>, vector<2x32xf32>
    %6 = arith.truncf %5 : vector<2x32xf32> to vector<2x32xbf16>
    %c0_5 = arith.constant 0 : index
    %c0_6 = arith.constant 0 : index
    %7 = vector.load %arg3[%c0_5, %c0_6] : memref<32x128xbf16, #tpu.memory_space<vmem>>, vector<32x128xbf16>
    %cst = arith.constant dense<0.000000e+00> : vector<2x128xf32>
    %8 = tpu.matmul %6, %7, %cst {dimension_numbers = #tpu.dot_dimension_numbers<[1], [0], [0], [1], [0, 0, 1, 1], [], []>} : vector<2x32xbf16>, vector<32x128xbf16>, vector<2x128xf32> -> vector<2x128xf32>
    %9 = arith.addf %4, %8 : vector<2x128xf32>
    %10 = vector.extract_strided_slice %9 {offsets = [0, 0], sizes = [2, 32], strides = [1, 1]} : vector<2x128xf32> to vector<2x32xf32>
    %11 = arith.negf %10 : vector<2x32xf32>
    %12 = math.exp %11 : vector<2x32xf32>
    %cst_7 = arith.constant 1.000000e+00 : f32
    %13 = vector.broadcast %cst_7 : f32 to vector<2x32xf32>
    %14 = arith.addf %13, %12 : vector<2x32xf32>
    %15 = arith.divf %13, %14 : vector<2x32xf32>
    %16 = vector.extract_strided_slice %9 {offsets = [0, 32], sizes = [2, 32], strides = [1, 1]} : vector<2x128xf32> to vector<2x32xf32>
    %17 = arith.negf %16 : vector<2x32xf32>
    %18 = math.exp %17 : vector<2x32xf32>
    %cst_8 = arith.constant 1.000000e+00 : f32
    %19 = vector.broadcast %cst_8 : f32 to vector<2x32xf32>
    %20 = arith.addf %19, %18 : vector<2x32xf32>
    %21 = arith.divf %19, %20 : vector<2x32xf32>
    %22 = vector.extract_strided_slice %9 {offsets = [0, 64], sizes = [2, 32], strides = [1, 1]} : vector<2x128xf32> to vector<2x32xf32>
    %23 = math.tanh %22 : vector<2x32xf32>
    %24 = vector.extract_strided_slice %9 {offsets = [0, 96], sizes = [2, 32], strides = [1, 1]} : vector<2x128xf32> to vector<2x32xf32>
    %25 = arith.negf %24 : vector<2x32xf32>
    %26 = math.exp %25 : vector<2x32xf32>
    %cst_9 = arith.constant 1.000000e+00 : f32
    %27 = vector.broadcast %cst_9 : f32 to vector<2x32xf32>
    %28 = arith.addf %27, %26 : vector<2x32xf32>
    %29 = arith.divf %27, %28 : vector<2x32xf32>
    %c0_10 = arith.constant 0 : index
    %c0_11 = arith.constant 0 : index
    %30 = vector.load %arg8[%c0_10, %c0_11] : memref<2x32xf32, #tpu.memory_space<vmem>>, vector<2x32xf32>
    %31 = arith.mulf %21, %30 : vector<2x32xf32>
    %32 = arith.mulf %15, %23 : vector<2x32xf32>
    %33 = arith.addf %31, %32 : vector<2x32xf32>
    %34 = math.tanh %33 : vector<2x32xf32>
    %35 = arith.mulf %29, %34 : vector<2x32xf32>
    %c0_12 = arith.constant 0 : index
    %c0_13 = arith.constant 0 : index
    %36 = vector.load %arg8[%c0_12, %c0_13] : memref<2x32xf32, #tpu.memory_space<vmem>>, vector<2x32xf32>
    tpu.vector_store %arg8[%c0_12, %c0_13], %33 {strides = array<i32>} : memref<2x32xf32, #tpu.memory_space<vmem>>, vector<2x32xf32>,
    %c0_14 = arith.constant 0 : index
    %c0_15 = arith.constant 0 : index
    %37 = vector.load %arg7[%c0_14, %c0_15] : memref<2x32xf32, #tpu.memory_space<vmem>>, vector<2x32xf32>
    tpu.vector_store %arg7[%c0_14, %c0_15], %35 {strides = array<i32>} : memref<2x32xf32, #tpu.memory_space<vmem>>, vector<2x32xf32>,
    %c0_16 = arith.constant 0 : index
    %c0_17 = arith.constant 0 : index
    %c0_18 = arith.constant 0 : index
    %38 = vector.load %arg5[%c0_16, %c0_17, %c0_18] : memref<1x2x32xf32, #tpu.memory_space<vmem>>, vector<1x2x32xf32>
    %39 = vector.shape_cast %38 : vector<1x2x32xf32> to vector<2x32xf32>
    %40 = vector.shape_cast %35 : vector<2x32xf32> to vector<1x2x32xf32>
    tpu.vector_store %arg5[%c0_16, %c0_17, %c0_18], %40 {strides = array<i32>} : memref<1x2x32xf32, #tpu.memory_space<vmem>>, vector<1x2x32xf32>,
    %c0_19 = arith.constant 0 : index
    %c0_20 = arith.constant 0 : index
    %c0_21 = arith.constant 0 : index
    %41 = vector.load %arg2[%c0_19, %c0_20, %c0_21] : memref<1x2x128xf32, #tpu.memory_space<vmem>>, vector<1x2x128xf32>
    %42 = vector.shape_cast %41 : vector<1x2x128xf32> to vector<2x128xf32>
    %c0_22 = arith.constant 0 : index
    %c0_23 = arith.constant 0 : index
    %43 = vector.load %arg9[%c0_22, %c0_23] : memref<2x32xf32, #tpu.memory_space<vmem>>, vector<2x32xf32>
    %44 = arith.truncf %43 : vector<2x32xf32> to vector<2x32xbf16>
    %c0_24 = arith.constant 0 : index
    %c0_25 = arith.constant 0 : index
    %45 = vector.load %arg4[%c0_24, %c0_25] : memref<32x128xbf16, #tpu.memory_space<vmem>>, vector<32x128xbf16>
    %cst_26 = arith.constant dense<0.000000e+00> : vector<2x128xf32>
    %46 = tpu.matmul %44, %45, %cst_26 {dimension_numbers = #tpu.dot_dimension_numbers<[1], [0], [0], [1], [0, 0, 1, 1], [], []>} : vector<2x32xbf16>, vector<32x128xbf16>, vector<2x128xf32> -> vector<2x128xf32>
    %47 = arith.addf %42, %46 : vector<2x128xf32>
    %48 = vector.extract_strided_slice %47 {offsets = [0, 0], sizes = [2, 32], strides = [1, 1]} : vector<2x128xf32> to vector<2x32xf32>
    %49 = arith.negf %48 : vector<2x32xf32>
    %50 = math.exp %49 : vector<2x32xf32>
    %cst_27 = arith.constant 1.000000e+00 : f32
    %51 = vector.broadcast %cst_27 : f32 to vector<2x32xf32>
    %52 = arith.addf %51, %50 : vector<2x32xf32>
    %53 = arith.divf %51, %52 : vector<2x32xf32>
    %54 = vector.extract_strided_slice %47 {offsets = [0, 32], sizes = [2, 32], strides = [1, 1]} : vector<2x128xf32> to vector<2x32xf32>
    %55 = arith.negf %54 : vector<2x32xf32>
    %56 = math.exp %55 : vector<2x32xf32>
    %cst_28 = arith.constant 1.000000e+00 : f32
    %57 = vector.broadcast %cst_28 : f32 to vector<2x32xf32>
    %58 = arith.addf %57, %56 : vector<2x32xf32>
    %59 = arith.divf %57, %58 : vector<2x32xf32>
    %60 = vector.extract_strided_slice %47 {offsets = [0, 64], sizes = [2, 32], strides = [1, 1]} : vector<2x128xf32> to vector<2x32xf32>
    %61 = math.tanh %60 : vector<2x32xf32>
    %62 = vector.extract_strided_slice %47 {offsets = [0, 96], sizes = [2, 32], strides = [1, 1]} : vector<2x128xf32> to vector<2x32xf32>
    %63 = arith.negf %62 : vector<2x32xf32>
    %64 = math.exp %63 : vector<2x32xf32>
    %cst_29 = arith.constant 1.000000e+00 : f32
    %65 = vector.broadcast %cst_29 : f32 to vector<2x32xf32>
    %66 = arith.addf %65, %64 : vector<2x32xf32>
    %67 = arith.divf %65, %66 : vector<2x32xf32>
    %c0_30 = arith.constant 0 : index
    %c0_31 = arith.constant 0 : index
    %68 = vector.load %arg10[%c0_30, %c0_31] : memref<2x32xf32, #tpu.memory_space<vmem>>, vector<2x32xf32>
    %69 = arith.mulf %59, %68 : vector<2x32xf32>
    %70 = arith.mulf %53, %61 : vector<2x32xf32>
    %71 = arith.addf %69, %70 : vector<2x32xf32>
    %72 = math.tanh %71 : vector<2x32xf32>
    %73 = arith.mulf %67, %72 : vector<2x32xf32>
    %c0_32 = arith.constant 0 : index
    %c0_33 = arith.constant 0 : index
    %74 = vector.load %arg10[%c0_32, %c0_33] : memref<2x32xf32, #tpu.memory_space<vmem>>, vector<2x32xf32>
    tpu.vector_store %arg10[%c0_32, %c0_33], %71 {strides = array<i32>} : memref<2x32xf32, #tpu.memory_space<vmem>>, vector<2x32xf32>,
    %c0_34 = arith.constant 0 : index
    %c0_35 = arith.constant 0 : index
    %75 = vector.load %arg9[%c0_34, %c0_35] : memref<2x32xf32, #tpu.memory_space<vmem>>, vector<2x32xf32>
    tpu.vector_store %arg9[%c0_34, %c0_35], %73 {strides = array<i32>} : memref<2x32xf32, #tpu.memory_space<vmem>>, vector<2x32xf32>,
    %c0_36 = arith.constant 0 : index
    %c0_37 = arith.constant 0 : index
    %c0_38 = arith.constant 0 : index
    %76 = vector.load %arg6[%c0_36, %c0_37, %c0_38] : memref<1x2x32xf32, #tpu.memory_space<vmem>>, vector<1x2x32xf32>
    %77 = vector.shape_cast %76 : vector<1x2x32xf32> to vector<2x32xf32>
    %78 = vector.shape_cast %73 : vector<2x32xf32> to vector<1x2x32xf32>
    tpu.vector_store %arg6[%c0_36, %c0_37, %c0_38], %78 {strides = array<i32>} : memref<1x2x32xf32, #tpu.memory_space<vmem>>, vector<1x2x32xf32>,
    return
  }
  func.func @transform_0(%arg0: i32) -> (i32, i32, i32) {
    %c0_i32 = arith.constant 0 : i32
    %c0_i32_0 = arith.constant 0 : i32
    %c0_i32_1 = arith.constant 0 : i32
    return %arg0, %c0_i32, %c0_i32_0 : i32, i32, i32
  }
  func.func @transform_1(%arg0: i32) -> (i32, i32, i32) {
    %c7_i32 = arith.constant 7 : i32
    %0 = arith.subi %c7_i32, %arg0 : i32
    %c0_i32 = arith.constant 0 : i32
    %c1_i32 = arith.constant 1 : i32
    %c0_i32_0 = arith.constant 0 : i32
    return %0, %c0_i32, %c1_i32 : i32, i32, i32
  }
  func.func @transform_2(%arg0: i32) -> (i32, i32) {
    %c0_i32 = arith.constant 0 : i32
    %c0_i32_0 = arith.constant 0 : i32
    %c0_i32_1 = arith.constant 0 : i32
    return %c0_i32, %c0_i32_0 : i32, i32
  }
  func.func @transform_3(%arg0: i32) -> (i32, i32) {
    %c0_i32 = arith.constant 0 : i32
    %c0_i32_0 = arith.constant 0 : i32
    %c0_i32_1 = arith.constant 0 : i32
    return %c0_i32, %c0_i32_0 : i32, i32
  }
  func.func @transform_4(%arg0: i32) -> (i32, i32, i32) {
    %c0_i32 = arith.constant 0 : i32
    %c0_i32_0 = arith.constant 0 : i32
    %c0_i32_1 = arith.constant 0 : i32
    return %arg0, %c0_i32, %c0_i32_0 : i32, i32, i32
  }
  func.func @transform_5(%arg0: i32) -> (i32, i32, i32) {
    %c7_i32 = arith.constant 7 : i32
    %0 = arith.subi %c7_i32, %arg0 : i32
    %c0_i32 = arith.constant 0 : i32
    %c0_i32_0 = arith.constant 0 : i32
    %c0_i32_1 = arith.constant 0 : i32
    return %0, %c0_i32, %c0_i32_0 : i32, i32, i32
  }
}

module attributes {stable_mosaic.version = 11 : i64} {
  func.func @_bidaf_att_kernel(%arg0: i32, %arg1: memref<1x16x64xf32, #tpu.memory_space<vmem>>, %arg2: memref<1x128x64xf32, #tpu.memory_space<vmem>>, %arg3: memref<1x16x1xf32, #tpu.memory_space<vmem>>, %arg4: memref<1x1x128xf32, #tpu.memory_space<vmem>>, %arg5: memref<3x64xf32, #tpu.memory_space<vmem>>, %arg6: memref<1x1xf32, #tpu.memory_space<vmem>>, %arg7: memref<1x16x256xf32, #tpu.memory_space<vmem>>) attributes {dimension_semantics = [#tpu.dimension_semantics<parallel>], iteration_bounds = array<i64: 2>, scalar_prefetch = 0 : i64, scratch_operands = 0 : i64, tpu.core_type = #tpu.core_type<tc>, window_params = [{transform_indices = @transform_0, window_bounds = array<i64: 1, 16, 64>}, {transform_indices = @transform_1, window_bounds = array<i64: 1, 128, 64>}, {transform_indices = @transform_2, window_bounds = array<i64: 1, 16, 1>}, {transform_indices = @transform_3, window_bounds = array<i64: 1, 1, 128>}, {pipeline_mode = #tpu.pipeline_mode<synchronous>, transform_indices = @transform_4, window_bounds = array<i64: 3, 64>}, {pipeline_mode = #tpu.pipeline_mode<synchronous>, transform_indices = @transform_5, window_bounds = array<i64: 1, 1>}, {transform_indices = @transform_6, window_bounds = array<i64: 1, 16, 256>}]} {
    %c0 = arith.constant 0 : index
    %c0_0 = arith.constant 0 : index
    %c0_1 = arith.constant 0 : index
    %0 = vector.load %arg1[%c0, %c0_0, %c0_1] : memref<1x16x64xf32, #tpu.memory_space<vmem>>, vector<1x16x64xf32>
    %1 = vector.shape_cast %0 : vector<1x16x64xf32> to vector<16x64xf32>
    %c0_2 = arith.constant 0 : index
    %c0_3 = arith.constant 0 : index
    %c0_4 = arith.constant 0 : index
    %2 = vector.load %arg2[%c0_2, %c0_3, %c0_4] : memref<1x128x64xf32, #tpu.memory_space<vmem>>, vector<1x128x64xf32>
    %3 = vector.shape_cast %2 : vector<1x128x64xf32> to vector<128x64xf32>
    %c0_5 = arith.constant 0 : index
    %c0_6 = arith.constant 0 : index
    %c0_7 = arith.constant 0 : index
    %4 = vector.load %arg3[%c0_5, %c0_6, %c0_7] : memref<1x16x1xf32, #tpu.memory_space<vmem>>, vector<1x16x1xf32>
    %5 = vector.shape_cast %4 : vector<1x16x1xf32> to vector<16x1xf32>
    %c0_8 = arith.constant 0 : index
    %c0_9 = arith.constant 0 : index
    %c0_10 = arith.constant 0 : index
    %6 = vector.load %arg4[%c0_8, %c0_9, %c0_10] : memref<1x1x128xf32, #tpu.memory_space<vmem>>, vector<1x1x128xf32>
    %7 = vector.shape_cast %6 : vector<1x1x128xf32> to vector<1x128xf32>
    %c0_11 = arith.constant 0 : index
    %c0_12 = arith.constant 0 : index
    %8 = vector.load %arg5[%c0_11, %c0_12] : memref<3x64xf32, #tpu.memory_space<vmem>>, vector<1x64xf32>
    %c1 = arith.constant 1 : index
    %c0_13 = arith.constant 0 : index
    %9 = vector.load %arg5[%c1, %c0_13] : memref<3x64xf32, #tpu.memory_space<vmem>>, vector<1x64xf32>
    %c2 = arith.constant 2 : index
    %c0_14 = arith.constant 0 : index
    %10 = vector.load %arg5[%c2, %c0_14] : memref<3x64xf32, #tpu.memory_space<vmem>>, vector<1x64xf32>
    %11 = arith.truncf %1 : vector<16x64xf32> to vector<16x64xbf16>
    %12 = arith.truncf %3 : vector<128x64xf32> to vector<128x64xbf16>
    %13 = vector.broadcast %8 : vector<1x64xf32> to vector<16x64xf32>
    %14 = arith.mulf %1, %13 : vector<16x64xf32>
    %cst = arith.constant dense<0.000000e+00> : vector<16xf32>
    %15 = vector.multi_reduction <add>, %14, %cst [1] : vector<16x64xf32> to vector<16xf32>
    %16 = vector.shape_cast %15 : vector<16xf32> to vector<16x1xf32>
    %17 = vector.broadcast %10 : vector<1x64xf32> to vector<16x64xf32>
    %18 = arith.mulf %1, %17 : vector<16x64xf32>
    %19 = vector.broadcast %9 : vector<1x64xf32> to vector<16x64xf32>
    %20 = arith.addf %18, %19 : vector<16x64xf32>
    %21 = arith.truncf %20 : vector<16x64xf32> to vector<16x64xbf16>
    %cst_15 = arith.constant dense<0.000000e+00> : vector<16x128xf32>
    %22 = tpu.matmul %21, %12, %cst_15 {dimension_numbers = #tpu.dot_dimension_numbers<[1], [1], [0], [0], [0, 0, 1, 0], [], []>} : vector<16x64xbf16>, vector<128x64xbf16>, vector<16x128xf32> -> vector<16x128xf32>
    %23 = vector.broadcast %16 : vector<16x1xf32> to vector<16x128xf32>
    %24 = arith.addf %23, %22 : vector<16x128xf32>
    %c0_16 = arith.constant 0 : index
    %c0_17 = arith.constant 0 : index
    %25 = vector.load %arg6[%c0_16, %c0_17] : memref<1x1xf32, #tpu.memory_space<vmem>>, vector<1x1xf32>
    %26 = vector.broadcast %25 : vector<1x1xf32> to vector<16x128xf32>
    %27 = arith.addf %24, %26 : vector<16x128xf32>
    %cst_18 = arith.constant 0.000000e+00 : f32
    %28 = vector.broadcast %cst_18 : f32 to vector<1x128xf32>
    %29 = arith.cmpf ogt, %7, %28 : vector<1x128xf32>
    %cst_19 = arith.constant -1.000000e+30 : f32
    %30 = vector.shape_cast %29 : vector<1x128xi1> to vector<1x128xi1>
    %31 = vector.broadcast %30 : vector<1x128xi1> to vector<16x128xi1>
    %32 = vector.broadcast %cst_19 : f32 to vector<16x128xf32>
    %33 = arith.select %31, %27, %32 : vector<16x128xi1>, vector<16x128xf32>
    %cst_20 = arith.constant dense<0xFF800000> : vector<16xf32>
    %34 = vector.multi_reduction <maximumf>, %33, %cst_20 [1] : vector<16x128xf32> to vector<16xf32>
    %35 = vector.shape_cast %34 : vector<16xf32> to vector<16x1xf32>
    %36 = vector.broadcast %35 : vector<16x1xf32> to vector<16x128xf32>
    %37 = arith.subf %33, %36 : vector<16x128xf32>
    %38 = math.exp %37 : vector<16x128xf32>
    %cst_21 = arith.constant dense<0.000000e+00> : vector<16xf32>
    %39 = vector.multi_reduction <add>, %38, %cst_21 [1] : vector<16x128xf32> to vector<16xf32>
    %40 = vector.shape_cast %39 : vector<16xf32> to vector<16x1xf32>
    %41 = tpu.reciprocal %40 {approx = true} : vector<16x1xf32> -> vector<16x1xf32>
    %42 = vector.broadcast %41 : vector<16x1xf32> to vector<16x128xf32>
    %43 = arith.mulf %38, %42 : vector<16x128xf32>
    %cst_22 = arith.constant 0.000000e+00 : f32
    %44 = vector.broadcast %cst_22 : f32 to vector<16x1xf32>
    %45 = arith.cmpf ogt, %5, %44 : vector<16x1xf32>
    %cst_23 = arith.constant -1.000000e+30 : f32
    %46 = vector.shape_cast %45 : vector<16x1xi1> to vector<16x1xi1>
    %47 = vector.broadcast %46 : vector<16x1xi1> to vector<16x128xi1>
    %48 = vector.broadcast %cst_23 : f32 to vector<16x128xf32>
    %49 = arith.select %47, %27, %48 : vector<16x128xi1>, vector<16x128xf32>
    %cst_24 = arith.constant dense<0xFF800000> : vector<128xf32>
    %50 = vector.multi_reduction <maximumf>, %49, %cst_24 [0] : vector<16x128xf32> to vector<128xf32>
    %51 = vector.shape_cast %50 : vector<128xf32> to vector<1x128xf32>
    %52 = vector.broadcast %51 : vector<1x128xf32> to vector<16x128xf32>
    %53 = arith.subf %49, %52 : vector<16x128xf32>
    %54 = math.exp %53 : vector<16x128xf32>
    %cst_25 = arith.constant dense<0.000000e+00> : vector<128xf32>
    %55 = vector.multi_reduction <add>, %54, %cst_25 [0] : vector<16x128xf32> to vector<128xf32>
    %56 = vector.shape_cast %55 : vector<128xf32> to vector<1x128xf32>
    %57 = tpu.reciprocal %56 {approx = true} : vector<1x128xf32> -> vector<1x128xf32>
    %58 = vector.broadcast %57 : vector<1x128xf32> to vector<16x128xf32>
    %59 = arith.mulf %54, %58 : vector<16x128xf32>
    %60 = arith.truncf %43 : vector<16x128xf32> to vector<16x128xbf16>
    %cst_26 = arith.constant dense<0.000000e+00> : vector<16x64xf32>
    %61 = tpu.matmul %60, %12, %cst_26 {dimension_numbers = #tpu.dot_dimension_numbers<[1], [0], [0], [1], [0, 0, 1, 1], [], []>} : vector<16x128xbf16>, vector<128x64xbf16>, vector<16x64xf32> -> vector<16x64xf32>
    %62 = arith.truncf %59 : vector<16x128xf32> to vector<16x128xbf16>
    %cst_27 = arith.constant dense<0.000000e+00> : vector<16x16xf32>
    %63 = tpu.matmul %60, %62, %cst_27 {dimension_numbers = #tpu.dot_dimension_numbers<[1], [1], [0], [0], [0, 0, 1, 0], [], []>} : vector<16x128xbf16>, vector<16x128xbf16>, vector<16x16xf32> -> vector<16x16xf32>
    %64 = arith.truncf %63 : vector<16x16xf32> to vector<16x16xbf16>
    %cst_28 = arith.constant dense<0.000000e+00> : vector<16x64xf32>
    %65 = tpu.matmul %64, %11, %cst_28 {dimension_numbers = #tpu.dot_dimension_numbers<[1], [0], [0], [1], [0, 0, 1, 1], [], []>} : vector<16x16xbf16>, vector<16x64xbf16>, vector<16x64xf32> -> vector<16x64xf32>
    %c0_29 = arith.constant 0 : index
    %c0_30 = arith.constant 0 : index
    %c0_31 = arith.constant 0 : index
    %66 = vector.load %arg7[%c0_29, %c0_30, %c0_31] : memref<1x16x256xf32, #tpu.memory_space<vmem>>, vector<1x16x64xf32>
    %67 = vector.shape_cast %66 : vector<1x16x64xf32> to vector<16x64xf32>
    %68 = vector.shape_cast %1 : vector<16x64xf32> to vector<1x16x64xf32>
    tpu.vector_store %arg7[%c0_29, %c0_30, %c0_31], %68 {strides = array<i32>} : memref<1x16x256xf32, #tpu.memory_space<vmem>>, vector<1x16x64xf32>,
    %c0_32 = arith.constant 0 : index
    %c0_33 = arith.constant 0 : index
    %c64 = arith.constant 64 : index
    %69 = vector.load %arg7[%c0_32, %c0_33, %c64] : memref<1x16x256xf32, #tpu.memory_space<vmem>>, vector<1x16x64xf32>
    %70 = vector.shape_cast %69 : vector<1x16x64xf32> to vector<16x64xf32>
    %71 = vector.shape_cast %61 : vector<16x64xf32> to vector<1x16x64xf32>
    tpu.vector_store %arg7[%c0_32, %c0_33, %c64], %71 {strides = array<i32>} : memref<1x16x256xf32, #tpu.memory_space<vmem>>, vector<1x16x64xf32>,
    %72 = arith.mulf %1, %61 : vector<16x64xf32>
    %c0_34 = arith.constant 0 : index
    %c0_35 = arith.constant 0 : index
    %c128 = arith.constant 128 : index
    %73 = vector.load %arg7[%c0_34, %c0_35, %c128] : memref<1x16x256xf32, #tpu.memory_space<vmem>>, vector<1x16x64xf32>
    %74 = vector.shape_cast %73 : vector<1x16x64xf32> to vector<16x64xf32>
    %75 = vector.shape_cast %72 : vector<16x64xf32> to vector<1x16x64xf32>
    tpu.vector_store %arg7[%c0_34, %c0_35, %c128], %75 {strides = array<i32>} : memref<1x16x256xf32, #tpu.memory_space<vmem>>, vector<1x16x64xf32>,
    %76 = arith.mulf %1, %65 : vector<16x64xf32>
    %c0_36 = arith.constant 0 : index
    %c0_37 = arith.constant 0 : index
    %c192 = arith.constant 192 : index
    %77 = vector.load %arg7[%c0_36, %c0_37, %c192] : memref<1x16x256xf32, #tpu.memory_space<vmem>>, vector<1x16x64xf32>
    %78 = vector.shape_cast %77 : vector<1x16x64xf32> to vector<16x64xf32>
    %79 = vector.shape_cast %76 : vector<16x64xf32> to vector<1x16x64xf32>
    tpu.vector_store %arg7[%c0_36, %c0_37, %c192], %79 {strides = array<i32>} : memref<1x16x256xf32, #tpu.memory_space<vmem>>, vector<1x16x64xf32>,
    return
  }
  func.func @transform_0(%arg0: i32) -> (i32, i32, i32) {
    %c0_i32 = arith.constant 0 : i32
    %c0_i32_0 = arith.constant 0 : i32
    %c0_i32_1 = arith.constant 0 : i32
    return %arg0, %c0_i32, %c0_i32_0 : i32, i32, i32
  }
  func.func @transform_1(%arg0: i32) -> (i32, i32, i32) {
    %c0_i32 = arith.constant 0 : i32
    %c0_i32_0 = arith.constant 0 : i32
    %c0_i32_1 = arith.constant 0 : i32
    return %arg0, %c0_i32, %c0_i32_0 : i32, i32, i32
  }
  func.func @transform_2(%arg0: i32) -> (i32, i32, i32) {
    %c0_i32 = arith.constant 0 : i32
    %c0_i32_0 = arith.constant 0 : i32
    %c0_i32_1 = arith.constant 0 : i32
    return %arg0, %c0_i32, %c0_i32_0 : i32, i32, i32
  }
  func.func @transform_3(%arg0: i32) -> (i32, i32, i32) {
    %c0_i32 = arith.constant 0 : i32
    %c0_i32_0 = arith.constant 0 : i32
    %c0_i32_1 = arith.constant 0 : i32
    return %arg0, %c0_i32, %c0_i32_0 : i32, i32, i32
  }
  func.func @transform_4(%arg0: i32) -> (i32, i32) {
    %c0_i32 = arith.constant 0 : i32
    %c0_i32_0 = arith.constant 0 : i32
    %c0_i32_1 = arith.constant 0 : i32
    return %c0_i32, %c0_i32_0 : i32, i32
  }
  func.func @transform_5(%arg0: i32) -> (i32, i32) {
    %c0_i32 = arith.constant 0 : i32
    %c0_i32_0 = arith.constant 0 : i32
    %c0_i32_1 = arith.constant 0 : i32
    return %c0_i32, %c0_i32_0 : i32, i32
  }
  func.func @transform_6(%arg0: i32) -> (i32, i32, i32) {
    %c0_i32 = arith.constant 0 : i32
    %c0_i32_0 = arith.constant 0 : i32
    %c0_i32_1 = arith.constant 0 : i32
    return %arg0, %c0_i32, %c0_i32_0 : i32, i32, i32
  }
}

module attributes {stable_mosaic.version = 11 : i64} {
  func.func @_linear_kernel(%arg0: i32, %arg1: memref<32x256xbf16, #tpu.memory_space<vmem>>, %arg2: memref<256x256xbf16, #tpu.memory_space<vmem>>, %arg3: memref<1x256xf32, #tpu.memory_space<vmem>>, %arg4: memref<32x256xf32, #tpu.memory_space<vmem>>) attributes {dimension_semantics = [#tpu.dimension_semantics<parallel>], iteration_bounds = array<i64: 1>, scalar_prefetch = 0 : i64, scratch_operands = 0 : i64, tpu.core_type = #tpu.core_type<tc>, window_params = [{transform_indices = @transform_0, window_bounds = array<i64: 32, 256>}, {pipeline_mode = #tpu.pipeline_mode<synchronous>, transform_indices = @transform_1, window_bounds = array<i64: 256, 256>}, {pipeline_mode = #tpu.pipeline_mode<synchronous>, transform_indices = @transform_2, window_bounds = array<i64: 1, 256>}, {transform_indices = @transform_3, window_bounds = array<i64: 32, 256>}]} {
    %c0 = arith.constant 0 : index
    %c0_0 = arith.constant 0 : index
    %0 = vector.load %arg1[%c0, %c0_0] : memref<32x256xbf16, #tpu.memory_space<vmem>>, vector<32x256xbf16>
    %c0_1 = arith.constant 0 : index
    %c0_2 = arith.constant 0 : index
    %1 = vector.load %arg2[%c0_1, %c0_2] : memref<256x256xbf16, #tpu.memory_space<vmem>>, vector<256x256xbf16>
    %cst = arith.constant dense<0.000000e+00> : vector<32x256xf32>
    %2 = tpu.matmul %0, %1, %cst {dimension_numbers = #tpu.dot_dimension_numbers<[1], [0], [0], [1], [0, 0, 1, 1], [], []>} : vector<32x256xbf16>, vector<256x256xbf16>, vector<32x256xf32> -> vector<32x256xf32>
    %c0_3 = arith.constant 0 : index
    %c0_4 = arith.constant 0 : index
    %3 = vector.load %arg3[%c0_3, %c0_4] : memref<1x256xf32, #tpu.memory_space<vmem>>, vector<1x256xf32>
    %4 = vector.broadcast %3 : vector<1x256xf32> to vector<32x256xf32>
    %5 = arith.addf %2, %4 : vector<32x256xf32>
    %c0_5 = arith.constant 0 : index
    %c0_6 = arith.constant 0 : index
    %6 = vector.load %arg4[%c0_5, %c0_6] : memref<32x256xf32, #tpu.memory_space<vmem>>, vector<32x256xf32>
    tpu.vector_store %arg4[%c0_5, %c0_6], %5 {strides = array<i32>} : memref<32x256xf32, #tpu.memory_space<vmem>>, vector<32x256xf32>,
    return
  }
  func.func @transform_0(%arg0: i32) -> (i32, i32) {
    %c0_i32 = arith.constant 0 : i32
    %c0_i32_0 = arith.constant 0 : i32
    return %arg0, %c0_i32 : i32, i32
  }
  func.func @transform_1(%arg0: i32) -> (i32, i32) {
    %c0_i32 = arith.constant 0 : i32
    %c0_i32_0 = arith.constant 0 : i32
    %c0_i32_1 = arith.constant 0 : i32
    return %c0_i32, %c0_i32_0 : i32, i32
  }
  func.func @transform_2(%arg0: i32) -> (i32, i32) {
    %c0_i32 = arith.constant 0 : i32
    %c0_i32_0 = arith.constant 0 : i32
    %c0_i32_1 = arith.constant 0 : i32
    return %c0_i32, %c0_i32_0 : i32, i32
  }
  func.func @transform_3(%arg0: i32) -> (i32, i32) {
    %c0_i32 = arith.constant 0 : i32
    %c0_i32_0 = arith.constant 0 : i32
    return %arg0, %c0_i32 : i32, i32
  }
}

module attributes {stable_mosaic.version = 11 : i64} {
  func.func @_linear_kernel(%arg0: i32, %arg1: memref<32x256xbf16, #tpu.memory_space<vmem>>, %arg2: memref<256x256xbf16, #tpu.memory_space<vmem>>, %arg3: memref<1x256xf32, #tpu.memory_space<vmem>>, %arg4: memref<32x256xf32, #tpu.memory_space<vmem>>, %arg5: memref<32x256xf32, #tpu.memory_space<vmem>>) attributes {dimension_semantics = [#tpu.dimension_semantics<parallel>], iteration_bounds = array<i64: 1>, scalar_prefetch = 0 : i64, scratch_operands = 0 : i64, tpu.core_type = #tpu.core_type<tc>, window_params = [{transform_indices = @transform_0, window_bounds = array<i64: 32, 256>}, {pipeline_mode = #tpu.pipeline_mode<synchronous>, transform_indices = @transform_1, window_bounds = array<i64: 256, 256>}, {pipeline_mode = #tpu.pipeline_mode<synchronous>, transform_indices = @transform_2, window_bounds = array<i64: 1, 256>}, {transform_indices = @transform_3, window_bounds = array<i64: 32, 256>}, {transform_indices = @transform_4, window_bounds = array<i64: 32, 256>}]} {
    %c0 = arith.constant 0 : index
    %c0_0 = arith.constant 0 : index
    %0 = vector.load %arg1[%c0, %c0_0] : memref<32x256xbf16, #tpu.memory_space<vmem>>, vector<32x256xbf16>
    %c0_1 = arith.constant 0 : index
    %c0_2 = arith.constant 0 : index
    %1 = vector.load %arg2[%c0_1, %c0_2] : memref<256x256xbf16, #tpu.memory_space<vmem>>, vector<256x256xbf16>
    %cst = arith.constant dense<0.000000e+00> : vector<32x256xf32>
    %2 = tpu.matmul %0, %1, %cst {dimension_numbers = #tpu.dot_dimension_numbers<[1], [0], [0], [1], [0, 0, 1, 1], [], []>} : vector<32x256xbf16>, vector<256x256xbf16>, vector<32x256xf32> -> vector<32x256xf32>
    %c0_3 = arith.constant 0 : index
    %c0_4 = arith.constant 0 : index
    %3 = vector.load %arg3[%c0_3, %c0_4] : memref<1x256xf32, #tpu.memory_space<vmem>>, vector<1x256xf32>
    %4 = vector.broadcast %3 : vector<1x256xf32> to vector<32x256xf32>
    %5 = arith.addf %2, %4 : vector<32x256xf32>
    %cst_5 = arith.constant 0.000000e+00 : f32
    %6 = vector.broadcast %cst_5 : f32 to vector<32x256xf32>
    %7 = arith.maximumf %5, %6 : vector<32x256xf32>
    %c0_6 = arith.constant 0 : index
    %c0_7 = arith.constant 0 : index
    %8 = vector.load %arg4[%c0_6, %c0_7] : memref<32x256xf32, #tpu.memory_space<vmem>>, vector<32x256xf32>
    %9 = arith.addf %7, %8 : vector<32x256xf32>
    %c0_8 = arith.constant 0 : index
    %c0_9 = arith.constant 0 : index
    %10 = vector.load %arg5[%c0_8, %c0_9] : memref<32x256xf32, #tpu.memory_space<vmem>>, vector<32x256xf32>
    tpu.vector_store %arg5[%c0_8, %c0_9], %9 {strides = array<i32>} : memref<32x256xf32, #tpu.memory_space<vmem>>, vector<32x256xf32>,
    return
  }
  func.func @transform_0(%arg0: i32) -> (i32, i32) {
    %c0_i32 = arith.constant 0 : i32
    %c0_i32_0 = arith.constant 0 : i32
    return %arg0, %c0_i32 : i32, i32
  }
  func.func @transform_1(%arg0: i32) -> (i32, i32) {
    %c0_i32 = arith.constant 0 : i32
    %c0_i32_0 = arith.constant 0 : i32
    %c0_i32_1 = arith.constant 0 : i32
    return %c0_i32, %c0_i32_0 : i32, i32
  }
  func.func @transform_2(%arg0: i32) -> (i32, i32) {
    %c0_i32 = arith.constant 0 : i32
    %c0_i32_0 = arith.constant 0 : i32
    %c0_i32_1 = arith.constant 0 : i32
    return %c0_i32, %c0_i32_0 : i32, i32
  }
  func.func @transform_3(%arg0: i32) -> (i32, i32) {
    %c0_i32 = arith.constant 0 : i32
    %c0_i32_0 = arith.constant 0 : i32
    return %arg0, %c0_i32 : i32, i32
  }
  func.func @transform_4(%arg0: i32) -> (i32, i32) {
    %c0_i32 = arith.constant 0 : i32
    %c0_i32_0 = arith.constant 0 : i32
    return %arg0, %c0_i32 : i32, i32
  }
}

module attributes {stable_mosaic.version = 11 : i64} {
  func.func @_output_kernel(%arg0: i32, %arg1: memref<2x16x256xf32, #tpu.memory_space<vmem>>, %arg2: memref<2x16x64xf32, #tpu.memory_space<vmem>>, %arg3: memref<2x16xf32, #tpu.memory_space<vmem>>, %arg4: memref<1x1x256xf32, #tpu.memory_space<vmem>>, %arg5: memref<1x1x64xf32, #tpu.memory_space<vmem>>, %arg6: memref<1x1xf32, #tpu.memory_space<vmem>>, %arg7: memref<2x16xf32, #tpu.memory_space<vmem>>) attributes {dimension_semantics = [#tpu.dimension_semantics<arbitrary>], iteration_bounds = array<i64: 1>, scalar_prefetch = 0 : i64, scratch_operands = 0 : i64, tpu.core_type = #tpu.core_type<tc>, window_params = [{pipeline_mode = #tpu.pipeline_mode<synchronous>, transform_indices = @transform_0, window_bounds = array<i64: 2, 16, 256>}, {pipeline_mode = #tpu.pipeline_mode<synchronous>, transform_indices = @transform_1, window_bounds = array<i64: 2, 16, 64>}, {pipeline_mode = #tpu.pipeline_mode<synchronous>, transform_indices = @transform_2, window_bounds = array<i64: 2, 16>}, {pipeline_mode = #tpu.pipeline_mode<synchronous>, transform_indices = @transform_3, window_bounds = array<i64: 1, 1, 256>}, {pipeline_mode = #tpu.pipeline_mode<synchronous>, transform_indices = @transform_4, window_bounds = array<i64: 1, 1, 64>}, {pipeline_mode = #tpu.pipeline_mode<synchronous>, transform_indices = @transform_5, window_bounds = array<i64: 1, 1>}, {pipeline_mode = #tpu.pipeline_mode<synchronous>, transform_indices = @transform_6, window_bounds = array<i64: 2, 16>}]} {
    %c0 = arith.constant 0 : index
    %c0_0 = arith.constant 0 : index
    %c0_1 = arith.constant 0 : index
    %0 = vector.load %arg1[%c0, %c0_0, %c0_1] : memref<2x16x256xf32, #tpu.memory_space<vmem>>, vector<2x16x256xf32>
    %c0_2 = arith.constant 0 : index
    %c0_3 = arith.constant 0 : index
    %c0_4 = arith.constant 0 : index
    %1 = vector.load %arg4[%c0_2, %c0_3, %c0_4] : memref<1x1x256xf32, #tpu.memory_space<vmem>>, vector<1x1x256xf32>
    %2 = vector.broadcast %1 : vector<1x1x256xf32> to vector<2x16x256xf32>
    %3 = arith.mulf %0, %2 : vector<2x16x256xf32>
    %cst = arith.constant dense<0.000000e+00> : vector<2x16xf32>
    %4 = vector.multi_reduction <add>, %3, %cst [2] : vector<2x16x256xf32> to vector<2x16xf32>
    %c0_5 = arith.constant 0 : index
    %c0_6 = arith.constant 0 : index
    %c0_7 = arith.constant 0 : index
    %5 = vector.load %arg2[%c0_5, %c0_6, %c0_7] : memref<2x16x64xf32, #tpu.memory_space<vmem>>, vector<2x16x64xf32>
    %c0_8 = arith.constant 0 : index
    %c0_9 = arith.constant 0 : index
    %c0_10 = arith.constant 0 : index
    %6 = vector.load %arg5[%c0_8, %c0_9, %c0_10] : memref<1x1x64xf32, #tpu.memory_space<vmem>>, vector<1x1x64xf32>
    %7 = vector.broadcast %6 : vector<1x1x64xf32> to vector<2x16x64xf32>
    %8 = arith.mulf %5, %7 : vector<2x16x64xf32>
    %cst_11 = arith.constant dense<0.000000e+00> : vector<2x16xf32>
    %9 = vector.multi_reduction <add>, %8, %cst_11 [2] : vector<2x16x64xf32> to vector<2x16xf32>
    %10 = arith.addf %4, %9 : vector<2x16xf32>
    %c0_12 = arith.constant 0 : index
    %c0_13 = arith.constant 0 : index
    %11 = vector.load %arg6[%c0_12, %c0_13] : memref<1x1xf32, #tpu.memory_space<vmem>>, vector<1x1xf32>
    %12 = vector.broadcast %11 : vector<1x1xf32> to vector<2x16xf32>
    %13 = arith.addf %10, %12 : vector<2x16xf32>
    %c0_14 = arith.constant 0 : index
    %c0_15 = arith.constant 0 : index
    %14 = vector.load %arg3[%c0_14, %c0_15] : memref<2x16xf32, #tpu.memory_space<vmem>>, vector<2x16xf32>
    %cst_16 = arith.constant 0.000000e+00 : f32
    %15 = vector.broadcast %cst_16 : f32 to vector<2x16xf32>
    %16 = arith.cmpf ogt, %14, %15 : vector<2x16xf32>
    %cst_17 = arith.constant -1.000000e+30 : f32
    %17 = vector.broadcast %cst_17 : f32 to vector<2x16xf32>
    %18 = arith.select %16, %13, %17 : vector<2x16xi1>, vector<2x16xf32>
    %cst_18 = arith.constant dense<0xFF800000> : vector<2xf32>
    %19 = vector.multi_reduction <maximumf>, %18, %cst_18 [1] : vector<2x16xf32> to vector<2xf32>
    %20 = vector.shape_cast %19 : vector<2xf32> to vector<2x1xf32>
    %21 = vector.broadcast %20 : vector<2x1xf32> to vector<2x16xf32>
    %22 = arith.subf %18, %21 : vector<2x16xf32>
    %23 = math.exp %22 : vector<2x16xf32>
    %cst_19 = arith.constant dense<0.000000e+00> : vector<2xf32>
    %24 = vector.multi_reduction <add>, %23, %cst_19 [1] : vector<2x16xf32> to vector<2xf32>
    %25 = vector.shape_cast %24 : vector<2xf32> to vector<2x1xf32>
    %26 = math.log %25 : vector<2x1xf32>
    %27 = vector.broadcast %26 : vector<2x1xf32> to vector<2x16xf32>
    %28 = arith.subf %22, %27 : vector<2x16xf32>
    %c0_20 = arith.constant 0 : index
    %c0_21 = arith.constant 0 : index
    %29 = vector.load %arg7[%c0_20, %c0_21] : memref<2x16xf32, #tpu.memory_space<vmem>>, vector<2x16xf32>
    tpu.vector_store %arg7[%c0_20, %c0_21], %28 {strides = array<i32>} : memref<2x16xf32, #tpu.memory_space<vmem>>, vector<2x16xf32>,
    return
  }
  func.func @transform_0(%arg0: i32) -> (i32, i32, i32) {
    %c0_i32 = arith.constant 0 : i32
    %c0_i32_0 = arith.constant 0 : i32
    %c0_i32_1 = arith.constant 0 : i32
    %c0_i32_2 = arith.constant 0 : i32
    return %c0_i32, %c0_i32_0, %c0_i32_1 : i32, i32, i32
  }
  func.func @transform_1(%arg0: i32) -> (i32, i32, i32) {
    %c0_i32 = arith.constant 0 : i32
    %c0_i32_0 = arith.constant 0 : i32
    %c0_i32_1 = arith.constant 0 : i32
    %c0_i32_2 = arith.constant 0 : i32
    return %c0_i32, %c0_i32_0, %c0_i32_1 : i32, i32, i32
  }
  func.func @transform_2(%arg0: i32) -> (i32, i32) {
    %c0_i32 = arith.constant 0 : i32
    %c0_i32_0 = arith.constant 0 : i32
    %c0_i32_1 = arith.constant 0 : i32
    return %c0_i32, %c0_i32_0 : i32, i32
  }
  func.func @transform_3(%arg0: i32) -> (i32, i32, i32) {
    %c0_i32 = arith.constant 0 : i32
    %c0_i32_0 = arith.constant 0 : i32
    %c0_i32_1 = arith.constant 0 : i32
    %c0_i32_2 = arith.constant 0 : i32
    return %c0_i32, %c0_i32_0, %c0_i32_1 : i32, i32, i32
  }
  func.func @transform_4(%arg0: i32) -> (i32, i32, i32) {
    %c0_i32 = arith.constant 0 : i32
    %c0_i32_0 = arith.constant 0 : i32
    %c0_i32_1 = arith.constant 0 : i32
    %c0_i32_2 = arith.constant 0 : i32
    return %c0_i32, %c0_i32_0, %c0_i32_1 : i32, i32, i32
  }
  func.func @transform_5(%arg0: i32) -> (i32, i32) {
    %c0_i32 = arith.constant 0 : i32
    %c0_i32_0 = arith.constant 0 : i32
    %c0_i32_1 = arith.constant 0 : i32
    return %c0_i32, %c0_i32_0 : i32, i32
  }
  func.func @transform_6(%arg0: i32) -> (i32, i32) {
    %c0_i32 = arith.constant 0 : i32
    %c0_i32_0 = arith.constant 0 : i32
    %c0_i32_1 = arith.constant 0 : i32
    return %c0_i32, %c0_i32_0 : i32, i32
  }
}

</mosaic_0001>

<bundles_post_ra>
// kernel: bidaf_forward.29
= control target key start
LH: loop header
LB: loop body
LE: loop exit
PB: predicated region body
PF: predicated region fallthrough
CT: control target
= control target key end

     0   :  { %vm68_vm0 = vcmask 523264   ;;  %vm124_vm1 = vcmask 261120   ;;  %s219_s1 = inlined_call_operand.vmem [shape: bf16[64,32], index: 1, kind: input, shape index: {}]   ;;  %s220_s0 = inlined_call_operand.vmem [shape: bf16[32,64], index: 0, kind: input, shape index: {}]   ;;  %s221_s2 = inlined_call_operand.vmem [shape: f32[1,32], index: 2, kind: input, shape index: {}]   ;;  %s222_s3 = inlined_call_operand.vmem [shape: f32[32,32], index: 3, kind: output, shape index: {}]  }
   0x1   :  { %v160_v0 = vld [vmem:[%s219_s1 + $0x18] sm:$0xff]   ;;  %v161_v1 = vld [vmem:[%s219_s1 + $0x10] sm:$0xff]   ;;  %v162_v2 = vld [vmem:[%s219_s1 + $0x8] sm:$0xff]  }
   0x2   :  { %148 = vmatprep.subr.bf16.mxu0 %v160_v0  ;;  %v164_v3 = vld [vmem:[%s220_s0] sm:$0xff]   ;;  %v165_v5 = vld [vmem:[%s220_s0 + $0x8] sm:$0xff]  }
   0x3   :  { %149 = vmatpush3.bf16.msra.mxu0 %v160_v0  ;;  %156 = vmatprep.mubr.msk.bf16.mxu0 %vm68_vm0, %v164_v3  ;;  %v163_v4 = vld [vmem:[%s219_s1] sm:$0xff]  }
   0x4   :  { %150 = vmatprep.subr.bf16.mxu0 %v161_v1  ;;  %v133_v6 = vld [vmem:[%s221_s2] ss:$0 sm:$0xff] }
   0x7   :  { %151 = vmatpush3.bf16.msra.mxu0 %v161_v1 }
   0x8   :  { %152 = vmatprep.subr.bf16.mxu0 %v162_v2 }
   0xb   :  { %153 = vmatpush3.bf16.msra.mxu0 %v162_v2 }
   0xc   :  { %154 = vmatprep.subr.bf16.mxu0 %v163_v4 }
   0xf   :  { %155 = vmatpush3.bf16.msra.mxu0 %v163_v4 }
  0x12   :  { %157 = vmatmul.mubr.msk.bf16.vlgmr.msra.gmra.mxu0 %vm68_vm0, %v165_v5 }
  0xd2   :  { %v158_v7 = vpop.f32.mrf.mxu0 }
  0xd3   :  { %v118_v8 = vadd.f32 %v158_v7, %v133_v6 }
  0xd4   :  { %v109_v9 = vpop.f32.mrf.mxu0 }
  0xd5   :  { %127 = vst.msk [vmem:[%s222_s3 + $0x10] sm:$0xff] %vm124_vm1, %v118_v8  ;;  %v110_v10 = vadd.f32 %v133_v6, %v109_v9 }
  0xd6   :  { %v159_v11 = vpop.f32.mrf.mxu0 }
  0xd7   :  { %125 = vst.msk [vmem:[%s222_s3] sm:$0xff] %vm124_vm1, %v110_v10  ;;  %v121_v12 = vadd.f32 %v159_v11, %v133_v6 }
  0xd8   :  { %v112_v13 = vpop.f32.mrf.mxu0 }
  0xd9   :  { %128 = vst.msk [vmem:[%s222_s3 + $0x18] sm:$0xff] %vm124_vm1, %v121_v12  ;;  %v113_v14 = vadd.f32 %v133_v6, %v112_v13 }
  0xdb   :  { %126 = vst.msk [vmem:[%s222_s3 + $0x8] sm:$0xff] %vm124_vm1, %v113_v14 }

// kernel: bidaf_forward.31
= control target key start
LH: loop header
LB: loop body
LE: loop exit
PB: predicated region body
PF: predicated region fallthrough
CT: control target
= control target key end

     0   :  { %vm60_vm0 = vcmask 523264   ;;  %s312_s1 = inlined_call_operand.vmem [shape: bf16[64,128], index: 1, kind: input, shape index: {}]   ;;  %s313_s0 = inlined_call_operand.vmem [shape: f32[32,64], index: 0, kind: input, shape index: {}]   ;;  %s314_s2 = inlined_call_operand.vmem [shape: f32[1,128], index: 2, kind: input, shape index: {}]   ;;  %s315_s3 = inlined_call_operand.vmem [shape: f32[32,64], index: 3, kind: output, shape index: {}]  }
   0x1   :  { %v214_v0 = vld [vmem:[%s312_s1 + $0x18] sm:$0xff]   ;;  %v215_v1 = vld [vmem:[%s312_s1 + $0x10] sm:$0xff]   ;;  %v216_v2 = vld [vmem:[%s312_s1 + $0x8] sm:$0xff]  }
   0x2   :  { %201 = vmatprep.subr.bf16.mxu0 %v214_v0  ;;  %v267_v3 = vld [vmem:[%s313_s0] sm:$0xff]  ;;  %v272_v4 = vld [vmem:[%s313_s0 + $0x8] sm:$0xff]  ;;  %v17_v7 = vld [vmem:[%s313_s0 + $0x10] sm:$0xff] }
   0x3   :  { %202 = vmatpush3.bf16.msra.mxu0 %v214_v0  ;;  %v19_v5 = vpack.c.bf16 %v272_v4, %v267_v3  ;;  %v217_v6 = vld [vmem:[%s312_s1] sm:$0xff]   ;;  %v286_v8 = vld [vmem:[%s313_s0 + $0x18] sm:$0xff]  ;;  %s234_s1 = smov 64  }
   0x4   :  { %203 = vmatprep.subr.bf16.mxu0 %v215_v1  ;;  %v20_v9 = vpack.c.bf16 %v286_v8, %v17_v7  ;;  %v184_v10 = vld [vmem:[%s314_s2] ss:$0 sm:$0xff] }
   0x5   :  { %209 = vmatprep.mubr.msk.bf16.mxu0 %vm60_vm0, %v19_v5 }
   0x7   :  { %204 = vmatpush3.bf16.msra.mxu0 %v215_v1 }
   0x8   :  { %205 = vmatprep.subr.bf16.mxu0 %v216_v2 }
   0xb   :  { %206 = vmatpush3.bf16.msra.mxu0 %v216_v2 }
   0xc   :  { %207 = vmatprep.subr.bf16.mxu0 %v217_v6 }
   0xf   :  { %208 = vmatpush3.bf16.msra.mxu0 %v217_v6 }
  0x12   :  { %210 = vmatmul.mubr.msk.bf16.vlgmr.msra.gmra.mxu0 %vm60_vm0, %v20_v9 }
  0xd2   :  { %v211_v11 = vpop.f32.mrf.mxu0 }
  0xd3   :  { %v110_v12 = vadd.f32 %v211_v11, %v184_v10 }
  0xd4   :  { %v101_v13 = vpop.f32.mrf.mxu0 }
  0xd5   :  { %v102_v14 = vadd.f32 %v184_v10, %v101_v13  ;;  %v142_v15 = vmax.f32 %v110_v12, 0.0  ;;  %v193_v23 = vmul.f32 -1.442695, %v110_v12 }
  0xd6   :  { %v212_v16 = vpop.f32.mrf.mxu0 }
  0xd7   :  { %v113_v17 = vadd.f32 %v212_v16, %v184_v10  ;;  %152 = vrot.lane.b32.xlu1 %v142_v15, %s234_s1  ;;  %v140_v18 = vmax.f32 %v102_v14, 0.0  ;;  %v191_v24 = vmul.f32 -1.442695, %v102_v14  ;;  %218 = vpow2.f32 %v193_v23 }
  0xd8   :  { %v104_v19 = vpop.f32.mrf.mxu0 }
  0xd9   :  { %v143_v20 = vmax.f32 %v113_v17, 0.0  ;;  %v105_v21 = vadd.f32 %v184_v10, %v104_v19  ;;  %148 = vrot.lane.b32.xlu0 %v140_v18, %s234_s1  ;;  %v194_v25 = vmul.f32 -1.442695, %v113_v17  ;;  %220 = vpow2.f32 %v191_v24 }
  0xdb   :  { %v141_v22 = vmax.f32 %v105_v21, 0.0  ;;  %154 = vrot.lane.b32.xlu1 %v143_v20, %s234_s1  ;;  %v192_v26 = vmul.f32 -1.442695, %v105_v21  ;;  %222 = vpow2.f32 %v194_v25 }
  0xdd   :  { %150 = vrot.lane.b32.xlu0 %v141_v22, %s234_s1  ;;  %224 = vpow2.f32 %v192_v26 }
  0xe4   :  { %v219_v27 = vpop.eup %218 }
  0xe5   :  { %v130_v29 = vadd.f32 1.0, %v219_v27 }
  0xe6   :  { %v221_v28 = vpop.eup %220 }
  0xe7   :  { %v128_v31 = vadd.f32 1.0, %v221_v28  ;;  %226 = vrcp.f32 %v130_v29 }
  0xe8   :  { %v223_v30 = vpop.eup %222 }
  0xe9   :  { %v131_v33 = vadd.f32 1.0, %v223_v30  ;;  %228 = vrcp.f32 %v128_v31 }
  0xea   :  { %v225_v32 = vpop.eup %224 }
  0xeb   :  { %v129_v34 = vadd.f32 1.0, %v225_v32  ;;  %230 = vrcp.f32 %v131_v33 }
  0xed   :  { %232 = vrcp.f32 %v129_v34 }
  0xf4   :  { %v227_v35 = vpop.eup %226 }
  0xf5   :  { %v166_v37 = vsub.f32 1.0, %v227_v35 }
  0xf6   :  { %v229_v36 = vpop.eup %228 }
  0xf7   :  { %v164_v39 = vsub.f32 1.0, %v229_v36  ;;  %v170_v43 = vmul.f32 %v166_v37, %v17_v7 }
  0xf8   :  { %v231_v38 = vpop.eup %230 }
  0xf9   :  { %v167_v44 = vsub.f32 1.0, %v231_v38  ;;  %v168_v48 = vmul.f32 %v164_v39, %v267_v3 }
  0xfa   :  { %v233_v40 = vpop.eup %232 }
  0xfb   :  { %v165_v49 = vsub.f32 1.0, %v233_v40  ;;  %v171_v53 = vmul.f32 %v167_v44, %v286_v8 }
  0xfd   :  { %v169_v56 = vmul.f32 %v165_v49, %v272_v4 }
 0x149   :  { %v153_v41 = vpop.permute.xlu1 %152 }
 0x14a   :  { %v162_v42 = vmul.f32 %v227_v35, %v153_v41 }
 0x14b   :  { %v149_v45 = vpop.permute.xlu0 %148 }
 0x14c   :  { %v174_v46 = vadd.f32 %v170_v43, %v162_v42  ;;  %v160_v47 = vmul.f32 %v229_v36, %v149_v45 }
 0x14d   :  { %v155_v50 = vpop.permute.xlu1 %154 }
 0x14e   :  { %178 = vst.msk [vmem:[%s315_s3 + $0x10] sm:$0xff] %vm60_vm0, %v174_v46  ;;  %v172_v51 = vadd.f32 %v168_v48, %v160_v47  ;;  %v163_v52 = vmul.f32 %v231_v38, %v155_v50 }
 0x14f   :  { %v151_v54 = vpop.permute.xlu0 %150 }
 0x150   :  { %176 = vst.msk [vmem:[%s315_s3] sm:$0xff] %vm60_vm0, %v172_v51  ;;  %v175_v55 = vadd.f32 %v171_v53, %v163_v52  ;;  %v161_v57 = vmul.f32 %v233_v40, %v151_v54 }
 0x152   :  { %179 = vst.msk [vmem:[%s315_s3 + $0x18] sm:$0xff] %vm60_vm0, %v175_v55  ;;  %v173_v58 = vadd.f32 %v169_v56, %v161_v57 }
 0x154   :  { %177 = vst.msk [vmem:[%s315_s3 + $0x8] sm:$0xff] %vm60_vm0, %v173_v58 }

// kernel: bidaf_forward.30
= control target key start
LH: loop header
LB: loop body
LE: loop exit
PB: predicated region body
PF: predicated region fallthrough
CT: control target
= control target key end

     0   :  { %vm1046_vm0 = vcmask 261120   ;;  %s2111_s1 = inlined_call_operand.vmem [shape: bf16[640,32], index: 1, kind: input, shape index: {}]   ;;  %s2112_s0 = inlined_call_operand.vmem [shape: bf16[32,1024], index: 0, kind: input, shape index: {}]   ;;  %s2113_s2 = inlined_call_operand.vmem [shape: f32[1,32], index: 2, kind: input, shape index: {}]   ;;  %s2114_s3 = inlined_call_operand.vmem [shape: f32[32,32], index: 3, kind: output, shape index: {}]  }
   0x1   :  { %v1519_v0 = vld [vmem:[%s2111_s1 + $0x78] sm:$0xff]   ;;  %v1542_v4 = vld [vmem:[%s2111_s1 + $0x70] sm:$0xff]   ;;  %v1566_v8 = vld [vmem:[%s2111_s1 + $0x68] sm:$0xff]  }
   0x2   :  { %v1524_v1 = vld [vmem:[%s2111_s1 + $0xf8] sm:$0xff]   ;;  %1112 = vmatprep.subr.bf16.mxu0 %v1519_v0  ;;  %v1548_v5 = vld [vmem:[%s2111_s1 + $0xf0] sm:$0xff]   ;;  %v1572_v9 = vld [vmem:[%s2111_s1 + $0xe8] sm:$0xff]  }
   0x3   :  { %v1530_v2 = vld [vmem:[%s2111_s1 + $0x38] sm:$0xff]   ;;  %1140 = vmatprep.subr.bf16.mxu1 %v1524_v1  ;;  %v1554_v6 = vld [vmem:[%s2111_s1 + $0x30] sm:$0xff]   ;;  %v1578_v10 = vld [vmem:[%s2111_s1 + $0x28] sm:$0xff]  }
   0x4   :  { %v1536_v3 = vld [vmem:[%s2111_s1 + $0xb8] sm:$0xff]   ;;  %1113 = vmatpush3.bf16.msra.mxu0 %v1530_v2  ;;  %v1560_v7 = vld [vmem:[%s2111_s1 + $0xb0] sm:$0xff]   ;;  %v1584_v11 = vld [vmem:[%s2111_s1 + $0xa8] sm:$0xff]  }
   0x5   :  { %1141 = vmatpush3.bf16.msra.mxu1 %v1536_v3  ;;  %1114 = vmatprep.subr.bf16.mxu0 %v1542_v4  ;;  %v1590_v12 = vld [vmem:[%s2111_s1 + $0x60] sm:$0xff]   ;;  %v1614_v16 = vld [vmem:[%s2111_s1 + $0x58] sm:$0xff]   ;;  %v1638_v20 = vld [vmem:[%s2111_s1 + $0x50] sm:$0xff]  }
   0x6   :  { %1142 = vmatprep.subr.bf16.mxu1 %v1548_v5  ;;  %v1596_v13 = vld [vmem:[%s2111_s1 + $0xe0] sm:$0xff]   ;;  %v1620_v17 = vld [vmem:[%s2111_s1 + $0xd8] sm:$0xff]   ;;  %v1644_v21 = vld [vmem:[%s2111_s1 + $0xd0] sm:$0xff]  }
   0x7   :  { %v1602_v14 = vld [vmem:[%s2111_s1 + $0x20] sm:$0xff]   ;;  %v1626_v18 = vld [vmem:[%s2111_s1 + $0x18] sm:$0xff]   ;;  %v1650_v22 = vld [vmem:[%s2111_s1 + $0x10] sm:$0xff]  }
   0x8   :  { %1115 = vmatpush3.bf16.msra.mxu0 %v1554_v6  ;;  %v1608_v15 = vld [vmem:[%s2111_s1 + $0xa0] sm:$0xff]   ;;  %v1632_v19 = vld [vmem:[%s2111_s1 + $0x98] sm:$0xff]   ;;  %v1656_v23 = vld [vmem:[%s2111_s1 + $0x90] sm:$0xff]  }
   0x9   :  { %1143 = vmatpush3.bf16.msra.mxu1 %v1560_v7  ;;  %1116 = vmatprep.subr.bf16.mxu0 %v1566_v8  ;;  %v1662_v24 = vld [vmem:[%s2111_s1 + $0x48] sm:$0xff]   ;;  %v1686_v28 = vld [vmem:[%s2111_s1 + $0x40] sm:$0xff]   ;;  %v1729_v40 = vld [vmem:[%s2111_s1 + $0x138] sm:$0xff]  }
   0xa   :  { %1144 = vmatprep.subr.bf16.mxu1 %v1572_v9  ;;  %v1668_v25 = vld [vmem:[%s2111_s1 + $0xc8] sm:$0xff]   ;;  %v1692_v29 = vld [vmem:[%s2111_s1 + $0xc0] sm:$0xff]   ;;  %v1736_v41 = vld [vmem:[%s2111_s1 + $0x130] sm:$0xff]  }
   0xb   :  { %v1674_v26 = vld [vmem:[%s2111_s1 + $0x8] sm:$0xff]   ;;  %v1698_v30 = vld [vmem:[%s2111_s1] sm:$0xff]   ;;  %v17_v51 = vld [vmem:[%s2112_s0 + $0x10] sm:$0xff] }
   0xc   :  { %1117 = vmatpush3.bf16.msra.mxu0 %v1578_v10  ;;  %v1680_v27 = vld [vmem:[%s2111_s1 + $0x88] sm:$0xff]   ;;  %v1704_v31 = vld [vmem:[%s2111_s1 + $0x80] sm:$0xff]   ;;  %v21_v53 = vld [vmem:[%s2112_s0 + $0x30] sm:$0xff] }
   0xd   :  { %1145 = vmatpush3.bf16.msra.mxu1 %v1584_v11  ;;  %1118 = vmatprep.subr.bf16.mxu0 %v1590_v12  ;;  %v15_v32 = vld [vmem:[%s2112_s0] sm:$0xff]  ;;  %v16_v34 = vld [vmem:[%s2112_s0 + $0x8] sm:$0xff]  ;;  %v1785_v54 = vcombine.low %v17_v51, %v21_v53  ;;  %v1795_v55 = vld [vmem:[%s2111_s1 + $0x118] sm:$0xff]   ;;  %v1854_v62 = vcombine.high %v17_v51, %v21_v53 }
   0xe   :  { %1146 = vmatprep.subr.bf16.mxu1 %v1596_v13  ;;  %v19_v33 = vld [vmem:[%s2112_s0 + $0x20] sm:$0xff]  ;;  %v20_v37 = vld [vmem:[%s2112_s0 + $0x28] sm:$0xff]  ;;  %v1806_v56 = vld [vmem:[%s2111_s1 + $0x110] sm:$0xff]  }
   0xf   :  { %v1055_v35 = vcombine.low %v15_v32, %v19_v33  ;;  %v1717_v36 = vcombine.high %v15_v32, %v19_v33  ;;  %v1722_v38 = vcombine.high %v16_v34, %v20_v37  ;;  %v1724_v39 = vcombine.low %v16_v34, %v20_v37  ;;  %v1746_v42 = vld [vmem:[%s2111_s1 + $0x128] sm:$0xff]   ;;  %v23_v43 = vld [vmem:[%s2112_s0 + $0x40] sm:$0xff]  ;;  %v25_v59 = vld [vmem:[%s2112_s0 + $0x50] sm:$0xff] }
  0x10   :  { %1119 = vmatpush3.bf16.msra.mxu0 %v1602_v14  ;;  %v27_v44 = vld [vmem:[%s2112_s0 + $0x60] sm:$0xff]  ;;  %v24_v46 = vld [vmem:[%s2112_s0 + $0x48] sm:$0xff]  ;;  %v29_v60 = vld [vmem:[%s2112_s0 + $0x70] sm:$0xff] }
  0x11   :  { %1147 = vmatpush3.bf16.msra.mxu1 %v1608_v15  ;;  %1120 = vmatprep.subr.bf16.mxu0 %v1614_v16  ;;  %v1756_v45 = vcombine.high %v23_v43, %v27_v44  ;;  %v28_v47 = vld [vmem:[%s2112_s0 + $0x68] sm:$0xff]  ;;  %v1060_v49 = vcombine.low %v23_v43, %v27_v44  ;;  %v1779_v52 = vld [vmem:[%s2111_s1 + $0x120] sm:$0xff]   ;;  %v1836_v61 = vcombine.low %v25_v59, %v29_v60  ;;  %v22_v32 = vld [vmem:[%s2112_s0 + $0x38] sm:$0xff] }
  0x12   :  { %1148 = vmatprep.subr.bf16.mxu1 %v1620_v17  ;;  %435 = vmatprep.mubr.bf16.mxu0 %v1717_v36  ;;  %v1764_v48 = vcombine.high %v24_v46, %v28_v47  ;;  %v1767_v50 = vcombine.low %v24_v46, %v28_v47  ;;  %v1815_v57 = vld [vmem:[%s2111_s1 + $0x108] sm:$0xff]   ;;  %v1824_v58 = vld [vmem:[%s2111_s1 + $0x100] sm:$0xff]   ;;  %v1878_v63 = vcombine.high %v25_v59, %v29_v60 }
  0x13   :  { %484 = vmatprep.mubr.bf16.mxu1 %v1722_v38 }
  0x14   :  { %1121 = vmatpush3.bf16.msra.mxu0 %v1626_v18 }
  0x15   :  { %1149 = vmatpush3.bf16.msra.mxu1 %v1632_v19  ;;  %1122 = vmatprep.subr.bf16.mxu0 %v1638_v20 }
  0x16   :  { %1150 = vmatprep.subr.bf16.mxu1 %v1644_v21 }
  0x18   :  { %1123 = vmatpush3.bf16.msra.mxu0 %v1650_v22 }
  0x19   :  { %1151 = vmatpush3.bf16.msra.mxu1 %v1656_v23  ;;  %1124 = vmatprep.subr.bf16.mxu0 %v1662_v24 }
  0x1a   :  { %1152 = vmatprep.subr.bf16.mxu1 %v1668_v25 }
  0x1c   :  { %1125 = vmatpush3.bf16.msra.mxu0 %v1674_v26 }
  0x1d   :  { %1153 = vmatpush3.bf16.msra.mxu1 %v1680_v27  ;;  %1126 = vmatprep.subr.bf16.mxu0 %v1686_v28 }
  0x1e   :  { %1154 = vmatprep.subr.bf16.mxu1 %v1692_v29 }
  0x20   :  { %1127 = vmatpush3.bf16.msra.mxu0 %v1698_v30 }
  0x21   :  { %1155 = vmatpush3.bf16.msra.mxu1 %v1704_v31  ;;  %1376 = vmatprep.subr.bf16.mxu0 %v1729_v40 }
  0x22   :  { %1178 = vmatprep.subr.bf16.mxu1 %v1519_v0 }
  0x23   :  { %436 = vmatmul.mubr.bf16.vlgmr.msra.gmra.mxu0 %v1055_v35 }
  0x24   :  { %485 = vmatmul.mubr.bf16.vlgmr.msra.gmra.mxu1 %v1724_v39  ;;  %1377 = vmatpush3.bf16.msra.mxu0 %v1729_v40 }
  0x25   :  { %1179 = vmatpush3.bf16.msra.mxu1 %v1530_v2  ;;  %1378 = vmatprep.subr.bf16.mxu0 %v1736_v41 }
  0x26   :  { %1180 = vmatprep.subr.bf16.mxu1 %v1542_v4  ;;  %443 = vmatprep.mubr.bf16.mxu0 %v1756_v45 }
  0x27   :  { %492 = vmatprep.mubr.bf16.mxu1 %v1764_v48 }
  0x28   :  { %1379 = vmatpush3.bf16.msra.mxu0 %v1736_v41 }
  0x29   :  { %1181 = vmatpush3.bf16.msra.mxu1 %v1554_v6  ;;  %1380 = vmatprep.subr.bf16.mxu0 %v1746_v42 }
  0x2a   :  { %1182 = vmatprep.subr.bf16.mxu1 %v1566_v8 }
  0x2b   :  { %444 = vmatmul.mubr.bf16.gmra.mxu0 %v1060_v49 }
  0x2c   :  { %493 = vmatmul.mubr.bf16.gmra.mxu1 %v1767_v50  ;;  %1381 = vmatpush3.bf16.msra.mxu0 %v1746_v42 }
  0x2d   :  { %1183 = vmatpush3.bf16.msra.mxu1 %v1578_v10  ;;  %1382 = vmatprep.subr.bf16.mxu0 %v1779_v52 }
  0x2e   :  { %1184 = vmatprep.subr.bf16.mxu1 %v1590_v12  ;;  %1392 = vmatprep.mubr.bf16.mxu0 %v1785_v54 }
  0x2f   :  { %590 = vmatprep.mubr.bf16.mxu1 %v1724_v39 }
  0x30   :  { %1383 = vmatpush3.bf16.msra.mxu0 %v1779_v52 }
  0x31   :  { %1185 = vmatpush3.bf16.msra.mxu1 %v1602_v14  ;;  %1384 = vmatprep.subr.bf16.mxu0 %v1795_v55 }
  0x32   :  { %1186 = vmatprep.subr.bf16.mxu1 %v1614_v16 }
  0x34   :  { %1385 = vmatpush3.bf16.msra.mxu0 %v1795_v55 }
  0x35   :  { %1187 = vmatpush3.bf16.msra.mxu1 %v1626_v18  ;;  %1386 = vmatprep.subr.bf16.mxu0 %v1806_v56 }
  0x36   :  { %1188 = vmatprep.subr.bf16.mxu1 %v1638_v20 }
  0x38   :  { %1387 = vmatpush3.bf16.msra.mxu0 %v1806_v56 }
  0x39   :  { %1189 = vmatpush3.bf16.msra.mxu1 %v1650_v22  ;;  %1388 = vmatprep.subr.bf16.mxu0 %v1815_v57 }
  0x3a   :  { %1190 = vmatprep.subr.bf16.mxu1 %v1662_v24 }
  0x3c   :  { %1389 = vmatpush3.bf16.msra.mxu0 %v1815_v57 }
  0x3d   :  { %1191 = vmatpush3.bf16.msra.mxu1 %v1674_v26  ;;  %1390 = vmatprep.subr.bf16.mxu0 %v1824_v58 }
  0x3e   :  { %1192 = vmatprep.subr.bf16.mxu1 %v1686_v28 }
  0x40   :  { %1391 = vmatpush3.bf16.msra.mxu0 %v1824_v58 }
  0x41   :  { %1193 = vmatpush3.bf16.msra.mxu1 %v1698_v30  ;;  %1206 = vmatprep.subr.bf16.mxu0 %v1524_v1 }
  0x42   :  { %1396 = vmatprep.subr.bf16.mxu1 %v1729_v40 }
  0x43   :  { %1393 = vmatmul.mubr.bf16.vlgmr.msra.gmra.mxu0 %v1836_v61 }
  0x44   :  { %591 = vmatmul.mubr.bf16.vlgmr.msra.gmra.mxu1 %v1717_v36  ;;  %1207 = vmatpush3.bf16.msra.mxu0 %v1536_v3 }
  0x45   :  { %1397 = vmatpush3.bf16.msra.mxu1 %v1729_v40  ;;  %1208 = vmatprep.subr.bf16.mxu0 %v1548_v5 }
  0x46   :  { %1398 = vmatprep.subr.bf16.mxu1 %v1736_v41  ;;  %598 = vmatprep.mubr.bf16.mxu1 %v1767_v50 }
  0x47   :  { %639 = vmatprep.mubr.bf16.mxu0 %v1785_v54 }
  0x48   :  { %1209 = vmatpush3.bf16.msra.mxu0 %v1560_v7 }
  0x49   :  { %1399 = vmatpush3.bf16.msra.mxu1 %v1736_v41  ;;  %1210 = vmatprep.subr.bf16.mxu0 %v1572_v9 }
  0x4a   :  { %1400 = vmatprep.subr.bf16.mxu1 %v1746_v42 }
  0x4c   :  { %599 = vmatmul.mubr.bf16.gmra.mxu1 %v1756_v45  ;;  %1211 = vmatpush3.bf16.msra.mxu0 %v1584_v11 }
  0x4d   :  { %1401 = vmatpush3.bf16.msra.mxu1 %v1746_v42  ;;  %1212 = vmatprep.subr.bf16.mxu0 %v1596_v13 }
  0x4e   :  { %1402 = vmatprep.subr.bf16.mxu1 %v1779_v52  ;;  %1412 = vmatprep.mubr.bf16.mxu1 %v1854_v62 }
  0x50   :  { %1213 = vmatpush3.bf16.msra.mxu0 %v1608_v15 }
  0x51   :  { %1403 = vmatpush3.bf16.msra.mxu1 %v1779_v52  ;;  %1214 = vmatprep.subr.bf16.mxu0 %v1620_v17 }
  0x52   :  { %1404 = vmatprep.subr.bf16.mxu1 %v1795_v55 }
  0x54   :  { %1215 = vmatpush3.bf16.msra.mxu0 %v1632_v19 }
  0x55   :  { %1405 = vmatpush3.bf16.msra.mxu1 %v1795_v55  ;;  %1216 = vmatprep.subr.bf16.mxu0 %v1644_v21 }
  0x56   :  { %1406 = vmatprep.subr.bf16.mxu1 %v1806_v56 }
  0x58   :  { %1217 = vmatpush3.bf16.msra.mxu0 %v1656_v23 }
  0x59   :  { %1407 = vmatpush3.bf16.msra.mxu1 %v1806_v56  ;;  %1218 = vmatprep.subr.bf16.mxu0 %v1668_v25 }
  0x5a   :  { %1408 = vmatprep.subr.bf16.mxu1 %v1815_v57 }
  0x5c   :  { %1219 = vmatpush3.bf16.msra.mxu0 %v1680_v27 }
  0x5d   :  { %1409 = vmatpush3.bf16.msra.mxu1 %v1815_v57  ;;  %1220 = vmatprep.subr.bf16.mxu0 %v1692_v29 }
  0x5e   :  { %1410 = vmatprep.subr.bf16.mxu1 %v1824_v58 }
  0x60   :  { %1221 = vmatpush3.bf16.msra.mxu0 %v1704_v31 }
  0x61   :  { %1411 = vmatpush3.bf16.msra.mxu1 %v1824_v58  ;;  %1244 = vmatprep.subr.bf16.mxu0 %v1519_v0 }
  0x62   :  { %1272 = vmatprep.subr.bf16.mxu1 %v1524_v1 }
  0x63   :  { %640 = vmatmul.mubr.bf16.vlgmr.msra.gmra.mxu0 %v1722_v38 }
  0x64   :  { %1413 = vmatmul.mubr.bf16.vlgmr.msra.gmra.mxu1 %v1878_v63  ;;  %1245 = vmatpush3.bf16.msra.mxu0 %v1530_v2 }
  0x65   :  { %1273 = vmatpush3.bf16.msra.mxu1 %v1536_v3  ;;  %1246 = vmatprep.subr.bf16.mxu0 %v1542_v4 }
  0x66   :  { %1274 = vmatprep.subr.bf16.mxu1 %v1548_v5  ;;  %647 = vmatprep.mubr.bf16.mxu0 %v1836_v61 }
  0x67   :  { %802 = vmatprep.mubr.bf16.mxu1 %v1854_v62 }
  0x68   :  { %1247 = vmatpush3.bf16.msra.mxu0 %v1554_v6 }
  0x69   :  { %1275 = vmatpush3.bf16.msra.mxu1 %v1560_v7  ;;  %1248 = vmatprep.subr.bf16.mxu0 %v1566_v8 }
  0x6a   :  { %1276 = vmatprep.subr.bf16.mxu1 %v1572_v9 }
  0x6b   :  { %648 = vmatmul.mubr.bf16.gmra.mxu0 %v1764_v48 }
  0x6c   :  { %1249 = vmatpush3.bf16.msra.mxu0 %v1578_v10  ;;  %753 = vmatprep.mubr.bf16.mxu0 %v1722_v38 }
  0x6d   :  { %1277 = vmatpush3.bf16.msra.mxu1 %v1584_v11  ;;  %1250 = vmatprep.subr.bf16.mxu0 %v1590_v12 }
  0x6e   :  { %1278 = vmatprep.subr.bf16.mxu1 %v1596_v13 }
  0x70   :  { %1251 = vmatpush3.bf16.msra.mxu0 %v1602_v14 }
  0x71   :  { %1279 = vmatpush3.bf16.msra.mxu1 %v1608_v15  ;;  %1252 = vmatprep.subr.bf16.mxu0 %v1614_v16 }
  0x72   :  { %1280 = vmatprep.subr.bf16.mxu1 %v1620_v17 }
  0x74   :  { %1253 = vmatpush3.bf16.msra.mxu0 %v1626_v18 }
  0x75   :  { %1281 = vmatpush3.bf16.msra.mxu1 %v1632_v19  ;;  %1254 = vmatprep.subr.bf16.mxu0 %v1638_v20 }
  0x76   :  { %1282 = vmatprep.subr.bf16.mxu1 %v1644_v21 }
  0x78   :  { %1255 = vmatpush3.bf16.msra.mxu0 %v1650_v22 }
  0x79   :  { %1283 = vmatpush3.bf16.msra.mxu1 %v1656_v23  ;;  %1256 = vmatprep.subr.bf16.mxu0 %v1662_v24 }
  0x7a   :  { %1284 = vmatprep.subr.bf16.mxu1 %v1668_v25 }
  0x7c   :  { %1257 = vmatpush3.bf16.msra.mxu0 %v1674_v26 }
  0x7d   :  { %1285 = vmatpush3.bf16.msra.mxu1 %v1680_v27  ;;  %1258 = vmatprep.subr.bf16.mxu0 %v1686_v28 }
  0x7e   :  { %1286 = vmatprep.subr.bf16.mxu1 %v1692_v29 }
  0x80   :  { %1259 = vmatpush3.bf16.msra.mxu0 %v1698_v30 }
  0x81   :  { %1287 = vmatpush3.bf16.msra.mxu1 %v1704_v31  ;;  %1416 = vmatprep.subr.bf16.mxu0 %v1729_v40 }
  0x82   :  { %1310 = vmatprep.subr.bf16.mxu1 %v1519_v0  ;;  %v18_v0 = vld [vmem:[%s2112_s0 + $0x18] sm:$0xff] }
  0x83   :  { %754 = vmatmul.mubr.bf16.vlgmr.msra.gmra.mxu0 %v1724_v39 }
  0x84   :  { %803 = vmatmul.mubr.bf16.vlgmr.msra.gmra.mxu1 %v1785_v54  ;;  %1417 = vmatpush3.bf16.msra.mxu0 %v1729_v40 }
  0x85   :  { %1311 = vmatpush3.bf16.msra.mxu1 %v1530_v2  ;;  %1418 = vmatprep.subr.bf16.mxu0 %v1736_v41  ;;  %v1107_v2 = vcombine.low %v18_v0, %v22_v32 }
  0x86   :  { %1312 = vmatprep.subr.bf16.mxu1 %v1542_v4  ;;  %761 = vmatprep.mubr.bf16.mxu0 %v1764_v48  ;;  %v26_v4 = vld [vmem:[%s2112_s0 + $0x58] sm:$0xff] }
  0x87   :  { %810 = vmatprep.mubr.bf16.mxu1 %v1878_v63 }
  0x88   :  { %1419 = vmatpush3.bf16.msra.mxu0 %v1736_v41 }
  0x89   :  { %1313 = vmatpush3.bf16.msra.mxu1 %v1554_v6  ;;  %1420 = vmatprep.subr.bf16.mxu0 %v1746_v42  ;;  %v30_v6 = vld [vmem:[%s2112_s0 + $0x78] sm:$0xff] }
  0x8a   :  { %1314 = vmatprep.subr.bf16.mxu1 %v1566_v8  ;;  %v1108_v8 = vcombine.low %v26_v4, %v30_v6 }
  0x8b   :  { %762 = vmatmul.mubr.bf16.gmra.mxu0 %v1767_v50 }
  0x8c   :  { %811 = vmatmul.mubr.bf16.gmra.mxu1 %v1836_v61  ;;  %1421 = vmatpush3.bf16.msra.mxu0 %v1746_v42 }
  0x8d   :  { %1315 = vmatpush3.bf16.msra.mxu1 %v1578_v10  ;;  %1422 = vmatprep.subr.bf16.mxu0 %v1779_v52 }
  0x8e   :  { %1316 = vmatprep.subr.bf16.mxu1 %v1590_v12  ;;  %1432 = vmatprep.mubr.bf16.mxu0 %v1107_v2 }
  0x8f   :  { %912 = vmatprep.mubr.bf16.mxu1 %v1785_v54 }
  0x90   :  { %1423 = vmatpush3.bf16.msra.mxu0 %v1779_v52 }
  0x91   :  { %1317 = vmatpush3.bf16.msra.mxu1 %v1602_v14  ;;  %1424 = vmatprep.subr.bf16.mxu0 %v1795_v55 }
  0x92   :  { %1318 = vmatprep.subr.bf16.mxu1 %v1614_v16 }
  0x94   :  { %1425 = vmatpush3.bf16.msra.mxu0 %v1795_v55 }
  0x95   :  { %1319 = vmatpush3.bf16.msra.mxu1 %v1626_v18  ;;  %1426 = vmatprep.subr.bf16.mxu0 %v1806_v56 }
  0x96   :  { %1320 = vmatprep.subr.bf16.mxu1 %v1638_v20 }
  0x98   :  { %1427 = vmatpush3.bf16.msra.mxu0 %v1806_v56 }
  0x99   :  { %1321 = vmatpush3.bf16.msra.mxu1 %v1650_v22  ;;  %1428 = vmatprep.subr.bf16.mxu0 %v1815_v57 }
  0x9a   :  { %1322 = vmatprep.subr.bf16.mxu1 %v1662_v24 }
  0x9c   :  { %1429 = vmatpush3.bf16.msra.mxu0 %v1815_v57 }
  0x9d   :  { %1323 = vmatpush3.bf16.msra.mxu1 %v1674_v26  ;;  %1430 = vmatprep.subr.bf16.mxu0 %v1824_v58 }
  0x9e   :  { %1324 = vmatprep.subr.bf16.mxu1 %v1686_v28 }
  0xa0   :  { %1431 = vmatpush3.bf16.msra.mxu0 %v1824_v58 }
  0xa1   :  { %1325 = vmatpush3.bf16.msra.mxu1 %v1698_v30  ;;  %1338 = vmatprep.subr.bf16.mxu0 %v1524_v1  ;;  %v1109_v1 = vcombine.high %v18_v0, %v22_v32 }
  0xa2   :  { %1436 = vmatprep.subr.bf16.mxu1 %v1729_v40 }
  0xa3   :  { %1433 = vmatmul.mubr.bf16.vlgmr.msra.gmra.mxu0 %v1108_v8 }
  0xa4   :  { %913 = vmatmul.mubr.bf16.vlgmr.msra.gmra.mxu1 %v1722_v38  ;;  %1339 = vmatpush3.bf16.msra.mxu0 %v1536_v3  ;;  %v1110_v3 = vcombine.high %v26_v4, %v30_v6 }
  0xa5   :  { %1437 = vmatpush3.bf16.msra.mxu1 %v1729_v40  ;;  %1340 = vmatprep.subr.bf16.mxu0 %v1548_v5 }
  0xa6   :  { %1438 = vmatprep.subr.bf16.mxu1 %v1736_v41  ;;  %920 = vmatprep.mubr.bf16.mxu1 %v1836_v61 }
  0xa7   :  { %961 = vmatprep.mubr.bf16.mxu0 %v1107_v2 }
  0xa8   :  { %1341 = vmatpush3.bf16.msra.mxu0 %v1560_v7 }
  0xa9   :  { %1439 = vmatpush3.bf16.msra.mxu1 %v1736_v41  ;;  %1342 = vmatprep.subr.bf16.mxu0 %v1572_v9 }
  0xaa   :  { %1440 = vmatprep.subr.bf16.mxu1 %v1746_v42 }
  0xac   :  { %921 = vmatmul.mubr.bf16.gmra.mxu1 %v1764_v48  ;;  %1343 = vmatpush3.bf16.msra.mxu0 %v1584_v11 }
  0xad   :  { %1441 = vmatpush3.bf16.msra.mxu1 %v1746_v42  ;;  %1344 = vmatprep.subr.bf16.mxu0 %v1596_v13 }
  0xae   :  { %1442 = vmatprep.subr.bf16.mxu1 %v1779_v52  ;;  %1452 = vmatprep.mubr.bf16.mxu1 %v1109_v1 }
  0xb0   :  { %1345 = vmatpush3.bf16.msra.mxu0 %v1608_v15 }
  0xb1   :  { %1443 = vmatpush3.bf16.msra.mxu1 %v1779_v52  ;;  %1346 = vmatprep.subr.bf16.mxu0 %v1620_v17 }
  0xb2   :  { %1444 = vmatprep.subr.bf16.mxu1 %v1795_v55 }
  0xb4   :  { %1347 = vmatpush3.bf16.msra.mxu0 %v1632_v19 }
  0xb5   :  { %1445 = vmatpush3.bf16.msra.mxu1 %v1795_v55  ;;  %1348 = vmatprep.subr.bf16.mxu0 %v1644_v21 }
  0xb6   :  { %1446 = vmatprep.subr.bf16.mxu1 %v1806_v56 }
  0xb8   :  { %1349 = vmatpush3.bf16.msra.mxu0 %v1656_v23 }
  0xb9   :  { %1447 = vmatpush3.bf16.msra.mxu1 %v1806_v56  ;;  %1350 = vmatprep.subr.bf16.mxu0 %v1668_v25 }
  0xba   :  { %1448 = vmatprep.subr.bf16.mxu1 %v1815_v57 }
  0xbc   :  { %1351 = vmatpush3.bf16.msra.mxu0 %v1680_v27 }
  0xbd   :  { %1449 = vmatpush3.bf16.msra.mxu1 %v1815_v57  ;;  %1352 = vmatprep.subr.bf16.mxu0 %v1692_v29 }
  0xbe   :  { %1450 = vmatprep.subr.bf16.mxu1 %v1824_v58 }
  0xc0   :  { %1353 = vmatpush3.bf16.msra.mxu0 %v1704_v31 }
  0xc1   :  { %1451 = vmatpush3.bf16.msra.mxu1 %v1824_v58 }
  0xc3   :  { %962 = vmatmul.mubr.bf16.vlgmr.msra.gmra.mxu0 %v1854_v62 }
  0xc4   :  { %1453 = vmatmul.mubr.bf16.vlgmr.msra.gmra.mxu1 %v1110_v3  ;;  %969 = vmatprep.mubr.bf16.mxu0 %v1108_v8 }
  0xcb   :  { %970 = vmatmul.mubr.bf16.gmra.mxu0 %v1878_v63 }
  0xe3   :  { %v1128_v19 = vpop.f32.mrf.mxu0 }
  0xe4   :  { %v1156_v5 = vpop.f32.mrf.mxu1 }
  0xe5   :  { %v1129_v20 = vpop.f32.mrf.mxu0 }
  0xe6   :  { %v1157_v7 = vpop.f32.mrf.mxu1 }
  0xe7   :  { %v2008_v9 = vadd.f32 %v1157_v7, %v1156_v5  ;;  %v1131_v21 = vpop.f32.mrf.mxu0 }
  0xe8   :  { %v1159_v10 = vpop.f32.mrf.mxu1 }
  0xe9   :  { %v1132_v22 = vpop.f32.mrf.mxu0 }
  0xea   :  { %v1160_v11 = vpop.f32.mrf.mxu1 }
  0xeb   :  { %v2010_v12 = vadd.f32 %v1160_v11, %v1159_v10  ;;  %v2016_v24 = vpop.f32.mrf.mxu0 }
  0xec   :  { %v1162_v13 = vpop.f32.mrf.mxu1 }
  0xed   :  { %v2018_v26 = vpop.f32.mrf.mxu0 }
  0xee   :  { %v1163_v14 = vpop.f32.mrf.mxu1 }
  0xef   :  { %v2012_v15 = vadd.f32 %v1163_v14, %v1162_v13  ;;  %v2020_v28 = vpop.f32.mrf.mxu0 }
  0xf0   :  { %v1165_v16 = vpop.f32.mrf.mxu1 }
  0xf1   :  { %v2022_v30 = vpop.f32.mrf.mxu0 }
  0xf2   :  { %v1166_v17 = vpop.f32.mrf.mxu1  ;;  %2116 = vst [vmem:[#allocation3_spill] sm:$0xff] %v2022_v30 }
  0xf3   :  { %v2014_v18 = vadd.f32 %v1166_v17, %v1165_v16 }
  0xf5   :  { %2115 = vst [vmem:[#allocation2_spill] sm:$0xff] %v2014_v18 }
 0x103   :  { %v2026_v33 = vpop.f32.mrf.mxu0 }
 0x104   :  { %v1194_v23 = vpop.f32.mrf.mxu1  ;;  %2117 = vst [vmem:[#allocation4_spill] sm:$0xff] %v2026_v33 }
 0x105   :  { %v2030_v35 = vpop.f32.mrf.mxu0 }
 0x106   :  { %v1195_v25 = vpop.f32.mrf.mxu1 }
 0x107   :  { %v2034_v37 = vpop.f32.mrf.mxu0 }
 0x108   :  { %v1197_v27 = vpop.f32.mrf.mxu1  ;;  %2119 = vst [vmem:[#allocation6_spill] sm:$0xff] %v2034_v37  ;;  %v1196_v37 = vadd.f32 %v1195_v25, %v1194_v23 }
 0x109   :  { %v2038_v39 = vpop.f32.mrf.mxu0 }
 0x10a   :  { %v1198_v29 = vpop.f32.mrf.mxu1 }
 0x10b   :  { %v1199_v18 = vadd.f32 %v1198_v29, %v1197_v27 }
 0x10c   :  { %v2024_v31 = vpop.f32.mrf.mxu1 }
 0x10e   :  { %v2028_v34 = vpop.f32.mrf.mxu1 }
 0x110   :  { %v2032_v36 = vpop.f32.mrf.mxu1 }
 0x111   :  { %2118 = vst [vmem:[#allocation5_spill] sm:$0xff] %v2032_v36 }
 0x112   :  { %v2036_v38 = vpop.f32.mrf.mxu1 }
 0x113   :  { %2120 = vst [vmem:[#allocation7_spill] sm:$0xff] %v2036_v38 }
 0x123   :  { %v1222_v40 = vpop.f32.mrf.mxu0 }
 0x124   :  { %v2040_v41 = vpop.f32.mrf.mxu1 }
 0x125   :  { %2121 = vst [vmem:[#allocation8_spill] sm:$0xff] %v2040_v41  ;;  %v1223_v42 = vpop.f32.mrf.mxu0 }
 0x126   :  { %v690_v43 = vpop.f32.mrf.mxu1  ;;  %v1224_v14 = vadd.f32 %v1223_v42, %v1222_v40 }
 0x127   :  { %v1225_v44 = vpop.f32.mrf.mxu0 }
 0x128   :  { %v2042_v45 = vpop.f32.mrf.mxu1 }
 0x129   :  { %2122 = vst [vmem:[#allocation9_spill] sm:$0xff] %v2042_v45  ;;  %v1226_v46 = vpop.f32.mrf.mxu0  ;;  %v1130_v45 = vadd.f32 %v1129_v20, %v1128_v19  ;;  %v1136_v19 = vadd.f32 %v2018_v26, %v2016_v24 }
 0x12a   :  { %v693_v47 = vpop.f32.mrf.mxu1  ;;  %v1227_v16 = vadd.f32 %v1226_v46, %v1225_v44 }
 0x12b   :  { %v1228_v49 = vpop.f32.mrf.mxu0 }
 0x12c   :  { %v645_v38 = vadd.f32 %v1227_v16, %v1199_v18  ;;  %v1202_v18 = vadd.f32 %v2028_v34, %v2024_v31  ;;  %v2129_v34 = vld [vmem:[#allocation3_spill] sm:$0xff] }
 0x12d   :  { %v1229_v51 = vpop.f32.mrf.mxu0 }
 0x12e   :  { %v1230_v36 = vadd.f32 %v1229_v51, %v1228_v49  ;;  %v694_v25 = vadd.f32 %v693_v47, %v645_v38  ;;  %v1139_v38 = vadd.f32 %v2129_v34, %v2020_v28  ;;  %v2130_v47 = vld [vmem:[#allocation5_spill] sm:$0xff]  ;;  %v1111_v28 = vld [vmem:[%s2113_s2] ss:$0 sm:$0xff] }
 0x12f   :  { %v2044_v53 = vpop.f32.mrf.mxu0 }
 0x130   :  { %v650_v46 = vadd.f32 %v1230_v36, %v1202_v18 }
 0x131   :  { %v1232_v55 = vpop.f32.mrf.mxu0 }
 0x132   :  { %v1233_v49 = vadd.f32 %v1232_v55, %v2044_v53 }
 0x143   :  { %v1260_v57 = vpop.f32.mrf.mxu0 }
 0x144   :  { %v1288_v48 = vpop.f32.mrf.mxu1 }
 0x145   :  { %v1261_v59 = vpop.f32.mrf.mxu0 }
 0x146   :  { %v1289_v50 = vpop.f32.mrf.mxu1  ;;  %v1262_v41 = vadd.f32 %v1261_v59, %v1260_v57 }
 0x147   :  { %v1263_v61 = vpop.f32.mrf.mxu0 }
 0x148   :  { %v1291_v52 = vpop.f32.mrf.mxu1 }
 0x149   :  { %v1264_v63 = vpop.f32.mrf.mxu0 }
 0x14a   :  { %v1292_v54 = vpop.f32.mrf.mxu1  ;;  %v1265_v30 = vadd.f32 %v1264_v63, %v1263_v61 }
 0x14b   :  { %v1266_v32 = vpop.f32.mrf.mxu0 }
 0x14c   :  { %v1294_v56 = vpop.f32.mrf.mxu1 }
 0x14d   :  { %v1267_v4 = vpop.f32.mrf.mxu0 }
 0x14e   :  { %v1295_v58 = vpop.f32.mrf.mxu1 }
 0x14f   :  { %v1269_v8 = vpop.f32.mrf.mxu0  ;;  %v1296_v24 = vadd.f32 %v1295_v58, %v1294_v56  ;;  %v2132_v58 = vld [vmem:[#allocation8_spill] sm:$0xff] }
 0x150   :  { %v2046_v60 = vpop.f32.mrf.mxu1  ;;  %v699_v59 = vadd.f32 %v2132_v58, %v650_v46 }
 0x151   :  { %2123 = vst [vmem:[#allocation10_spill] sm:$0xff] %v2046_v60  ;;  %v1270_v3 = vpop.f32.mrf.mxu0  ;;  %v642_v60 = vadd.f32 %v1224_v14, %v1196_v37 }
 0x152   :  { %v2048_v62 = vpop.f32.mrf.mxu1 }
 0x153   :  { %2124 = vst [vmem:[#allocation11_spill] sm:$0xff] %v2048_v62  ;;  %v1133_v62 = vadd.f32 %v1132_v22, %v1131_v21  ;;  %v691_v23 = vadd.f32 %v690_v43, %v642_v60 }
 0x155   :  { %v490_v20 = vadd.f32 %v2010_v12, %v1133_v62 }
 0x157   :  { %v539_v29 = vadd.f32 %v2038_v39, %v490_v20  ;;  %v2131_v39 = vld [vmem:[#allocation7_spill] sm:$0xff] }
 0x158   :  { %v2133_v60 = vld [vmem:[#allocation10_spill] sm:$0xff] }
 0x159   :  { %v706_v51 = vmax.f32 %v539_v29, %v694_v25  ;;  %v2141_v29 = vld [vmem:[#allocation6_spill] sm:$0xff] }
 0x15a   :  { %v2134_v61 = vld [vmem:[#allocation11_spill] sm:$0xff] }
 0x15b   :  { %v1299_v53 = vadd.f32 %v2134_v61, %v2133_v60 }
 0x163   :  { %v2052_v7 = vpop.f32.mrf.mxu0 }
 0x164   :  { %v1326_v0 = vpop.f32.mrf.mxu1  ;;  %2126 = vst [vmem:[#allocation13_spill] sm:$0xff] %v2052_v7 }
 0x165   :  { %v853_v11 = vpop.f32.mrf.mxu0 }
 0x166   :  { %v1327_v2 = vpop.f32.mrf.mxu1 }
 0x167   :  { %v2058_v17 = vpop.f32.mrf.mxu0  ;;  %v1328_v44 = vadd.f32 %v1327_v2, %v1326_v0 }
 0x168   :  { %v1329_v6 = vpop.f32.mrf.mxu1 }
 0x169   :  { %v856_v7 = vpop.f32.mrf.mxu0 }
 0x16a   :  { %v1330_v1 = vpop.f32.mrf.mxu1 }
 0x16b   :  { %v1331_v56 = vadd.f32 %v1330_v1, %v1329_v6  ;;  %v2136_v1 = vld [vmem:[#allocation13_spill] sm:$0xff] }
 0x16c   :  { %v2050_v5 = vpop.f32.mrf.mxu1 }
 0x16d   :  { %2125 = vst [vmem:[#allocation12_spill] sm:$0xff] %v2050_v5  ;;  %v1290_v5 = vadd.f32 %v1289_v50, %v1288_v48  ;;  %v1268_v48 = vadd.f32 %v1267_v4, %v1266_v32  ;;  %v1205_v50 = vadd.f32 %v2131_v39, %v2130_v47  ;;  %v2135_v4 = vld [vmem:[#allocation4_spill] sm:$0xff] }
 0x16e   :  { %v2054_v10 = vpop.f32.mrf.mxu1 }
 0x16f   :  { %2127 = vst [vmem:[#allocation14_spill] sm:$0xff] %v2054_v10  ;;  %v487_v10 = vadd.f32 %v2008_v9, %v1130_v45  ;;  %v805_v21 = vadd.f32 %v1290_v5, %v1262_v41  ;;  %v495_v41 = vadd.f32 %v2012_v15, %v1136_v19  ;;  %v1271_v15 = vadd.f32 %v1270_v3, %v1269_v8 }
 0x170   :  { %v2056_v13 = vpop.f32.mrf.mxu1  ;;  %v813_v55 = vadd.f32 %v1296_v24, %v1268_v48  ;;  %v653_v0 = vadd.f32 %v1233_v49, %v1205_v50 }
 0x171   :  { %2128 = vst [vmem:[#allocation15_spill] sm:$0xff] %v2056_v13  ;;  %v1293_v13 = vadd.f32 %v1292_v54, %v1291_v52  ;;  %v536_v22 = vadd.f32 %v2030_v35, %v487_v10  ;;  %v854_v37 = vadd.f32 %v853_v11, %v805_v21  ;;  %v544_v6 = vadd.f32 %v2135_v4, %v495_v41 }
 0x172   :  { %v2060_v33 = vpop.f32.mrf.mxu1  ;;  %v862_v5 = vadd.f32 %v2136_v1, %v813_v55 }
 0x173   :  { %v808_v26 = vadd.f32 %v1293_v13, %v1265_v30  ;;  %v705_v35 = vmax.f32 %v536_v22, %v691_v23  ;;  %v707_v20 = vmax.f32 %v544_v6, %v699_v59  ;;  %v816_v23 = vadd.f32 %v1299_v53, %v1271_v15  ;;  %v2140_v22 = vld [vmem:[#allocation9_spill] sm:$0xff] }
 0x174   :  { %v2137_v8 = vld [vmem:[#allocation12_spill] sm:$0xff]  ;;  %v702_v18 = vadd.f32 %v2140_v22, %v653_v0 }
 0x175   :  { %v857_v52 = vadd.f32 %v856_v7, %v808_v26  ;;  %v868_v54 = vmax.f32 %v705_v35, %v854_v37 }
 0x176   :  { %v2138_v3 = vld [vmem:[#allocation14_spill] sm:$0xff] }
 0x177   :  { %v869_v7 = vmax.f32 %v706_v51, %v857_v52  ;;  %v1334_v11 = vadd.f32 %v2138_v3, %v2137_v8 }
 0x178   :  { %v2142_v48 = vld [vmem:[#allocation15_spill] sm:$0xff] }
 0x179   :  { %v1337_v24 = vadd.f32 %v2060_v33, %v2142_v48 }
 0x183   :  { %v1354_v40 = vpop.f32.mrf.mxu0 }
 0x184   :  { %v2063_v42 = vpop.f32.mrf.mxu1 }
 0x185   :  { %v1355_v9 = vpop.f32.mrf.mxu0 }
 0x186   :  { %v1012_v27 = vpop.f32.mrf.mxu1  ;;  %v1356_v45 = vadd.f32 %v1355_v9, %v1354_v40  ;;  %v2139_v40 = vld [vmem:[#allocation2_spill] sm:$0xff] }
 0x187   :  { %v1357_v12 = vpop.f32.mrf.mxu0  ;;  %v498_v19 = vadd.f32 %v2139_v40, %v1139_v38 }
 0x188   :  { %v1455_v43 = vpop.f32.mrf.mxu1  ;;  %v964_v31 = vadd.f32 %v1356_v45, %v1328_v44  ;;  %v870_v44 = vmax.f32 %v707_v20, %v862_v5  ;;  %v865_v45 = vadd.f32 %v2058_v17, %v816_v23 }
 0x189   :  { %v1358_v36 = vpop.f32.mrf.mxu0  ;;  %v547_v37 = vadd.f32 %v2141_v29, %v498_v19 }
 0x18a   :  { %v1359_v30 = vadd.f32 %v1358_v36, %v1357_v12  ;;  %v1013_v57 = vadd.f32 %v1012_v27, %v964_v31  ;;  %v1015_v63 = vpop.f32.mrf.mxu1 }
 0x18b   :  { %v1360_v62 = vpop.f32.mrf.mxu0  ;;  %v708_v35 = vmax.f32 %v547_v37, %v702_v18 }
 0x18c   :  { %v1027_v32 = vmax.f32 %v868_v54, %v1013_v57  ;;  %v967_v2 = vadd.f32 %v1359_v30, %v1331_v56 }
 0x18d   :  { %v1361_v10 = vpop.f32.mrf.mxu0  ;;  %v871_v38 = vmax.f32 %v708_v35, %v865_v45 }
 0x18e   :  { %v1038_v13 = vadd.f32 %v1111_v28, %v1027_v32  ;;  %v1362_v14 = vadd.f32 %v1361_v10, %v1360_v62  ;;  %v1016_v16 = vadd.f32 %v1015_v63, %v967_v2 }
 0x18f   :  { %v1363_v21 = vpop.f32.mrf.mxu0 }
 0x190   :  { %v1042_v25 = vmax.f32 %v1038_v13, 0.0  ;;  %v972_v9 = vadd.f32 %v1362_v14, %v1334_v11  ;;  %v1028_v27 = vmax.f32 %v869_v7, %v1016_v16 }
 0x191   :  { %v1364_v46 = vpop.f32.mrf.mxu0 }
 0x192   :  { %1047 = vst.msk [vmem:[%s2114_s3] sm:$0xff] %vm1046_vm0, %v1042_v25  ;;  %v1021_v26 = vadd.f32 %v2063_v42, %v972_v9  ;;  %v1039_v12 = vadd.f32 %v1111_v28, %v1028_v27  ;;  %v1365_v41 = vadd.f32 %v1364_v46, %v1363_v21 }
 0x194   :  { %v1029_v49 = vmax.f32 %v870_v44, %v1021_v26  ;;  %v1043_v31 = vmax.f32 %v1039_v12, 0.0  ;;  %v975_v34 = vadd.f32 %v1365_v41, %v1337_v24 }
 0x196   :  { %v1040_v47 = vadd.f32 %v1111_v28, %v1029_v49  ;;  %1048 = vst.msk [vmem:[%s2114_s3 + $0x8] sm:$0xff] %vm1046_vm0, %v1043_v31  ;;  %v1024_v33 = vadd.f32 %v1455_v43, %v975_v34 }
 0x198   :  { %v1044_v17 = vmax.f32 %v1040_v47, 0.0  ;;  %v1030_v39 = vmax.f32 %v871_v38, %v1024_v33 }
 0x19a   :  { %1049 = vst.msk [vmem:[%s2114_s3 + $0x10] sm:$0xff] %vm1046_vm0, %v1044_v17  ;;  %v1041_v42 = vadd.f32 %v1111_v28, %v1030_v39 }
 0x19c   :  { %v1045_v50 = vmax.f32 %v1041_v42, 0.0 }
 0x19e   :  { %1050 = vst.msk [vmem:[%s2114_s3 + $0x18] sm:$0xff] %vm1046_vm0, %v1045_v50 }

// kernel: bidaf_forward.37
= control target key start
LH: loop header
LB: loop body
LE: loop exit
PB: predicated region body
PF: predicated region fallthrough
CT: control target
= control target key end

     0   :  { %v196_v1 = vmov 0   ;;  %vm89_vm0 = vcmask 523264   ;;  %v29_v11 = vlaneseq  ;;  %s274_s1 = inlined_call_operand.vmem [shape: bf16[64,256], index: 1, kind: input, shape index: {}]   ;;  %s275_s0 = inlined_call_operand.vmem [shape: bf16[32,64], index: 0, kind: input, shape index: {}]   ;;  %s276_s2 = inlined_call_operand.vmem [shape: f32[1,256], index: 2, kind: input, shape index: {}]   ;;  %s277_s3 = inlined_call_operand.vmem [shape: f32[32,256], index: 3, kind: output, shape index: {}]  }
   0x1   :  { %v182_v0 = vld [vmem:[%s274_s1 + $0x34] ss:$8 sps:$4 sm:$0xff]   ;;  %128 = vmatprep.mubr.bf16.mxu0 %v196_v1  ;;  %138 = vmatprep.mubr.bf16.mxu1 %v196_v1  ;;  %v184_v2 = vld [vmem:[%s274_s1 + $0x30] ss:$8 sps:$4 sm:$0xff]   ;;  %v185_v3 = vld [vmem:[%s274_s1 + $0x24] ss:$8 sps:$4 sm:$0xff]  }
   0x2   :  { %104 = vmatprep.subr.bf16.mxu0 %v182_v0  ;;  %173 = vmatprep.subr.bf16.mxu1 %v182_v0  ;;  %v187_v4 = vld [vmem:[%s274_s1 + $0x20] ss:$8 sps:$4 sm:$0xff]   ;;  %v188_v5 = vld [vmem:[%s274_s1 + $0x14] ss:$8 sps:$4 sm:$0xff]   ;;  %v190_v6 = vld [vmem:[%s274_s1 + $0x10] ss:$8 sps:$4 sm:$0xff]  }
   0x3   :  { %105 = vmatpush1.bf16.msra.mxu0 %v184_v2  ;;  %177 = vmatpush1.bf16.msra.mxu1 %v184_v2  ;;  %v191_v7 = vld [vmem:[%s274_s1 + $0x4] ss:$8 sps:$4 sm:$0xff]   ;;  %v193_v8 = vld [vmem:[%s274_s1] ss:$8 sps:$4 sm:$0xff]   ;;  %v30_v12 = vshrl.u32 %v29_v11, 7 }
   0x4   :  { %106 = vmatprep.subr.bf16.mxu0 %v185_v3  ;;  %174 = vmatprep.subr.bf16.mxu1 %v185_v3  ;;  %v194_v9 = vld [vmem:[%s275_s0] sm:$0xff]   ;;  %v195_v10 = vld [vmem:[%s275_s0 + $0x8] sm:$0xff]  }
   0x5   :  { %v31_v13 = vsub.s32 0, %v30_v12  ;;  %v27_v14 = vld [vmem:[%s276_s2] sm:$0x3]  ;;  %v35_v15 = vsub.s32 1, %v30_v12 }
   0x7   :  { %107 = vmatpush1.bf16.msra.mxu0 %v187_v4  ;;  %178 = vmatpush1.bf16.msra.mxu1 %v187_v4  ;;  %v32_v16 = vrot.slane %v27_v14, %v31_v13  ;;  %v36_v17 = vrot.slane %v27_v14, %v35_v15 }
   0x8   :  { %108 = vmatprep.subr.bf16.mxu0 %v188_v5  ;;  %175 = vmatprep.subr.bf16.mxu1 %v188_v5 }
   0xb   :  { %109 = vmatpush1.bf16.msra.mxu0 %v190_v6  ;;  %179 = vmatpush1.bf16.msra.mxu1 %v190_v6 }
   0xc   :  { %110 = vmatprep.subr.bf16.mxu0 %v191_v7  ;;  %176 = vmatprep.subr.bf16.mxu1 %v191_v7 }
   0xf   :  { %111 = vmatpush1.bf16.msra.mxu0 %v193_v8  ;;  %180 = vmatpush1.bf16.msra.mxu1 %v193_v8 }
  0x12   :  { %171 = vmatmul.mubr.msk.bf16.vlgmr.msra.gmra.mxu0 %vm89_vm0, %v194_v9  ;;  %172 = vmatmul.mubr.msk.bf16.vlgmr.msra.gmra.mxu1 %vm89_vm0, %v195_v10 }
  0xd2   :  { %v130_v18 = vpop.f32.mrf.mxu0  ;;  %v140_v19 = vpop.f32.mrf.mxu1 }
  0xd3   :  { %v131_v20 = vadd.f32 %v130_v18, %v32_v16  ;;  %v141_v21 = vadd.f32 %v140_v19, %v32_v16 }
  0xd4   :  { %v132_v22 = vpop.f32.mrf.mxu0  ;;  %v142_v23 = vpop.f32.mrf.mxu1 }
  0xd5   :  { %149 = vst [vmem:[%s277_s3] sm:$0xff] %v131_v20  ;;  %153 = vst [vmem:[%s277_s3 + $0x20] sm:$0xff] %v141_v21  ;;  %v133_v24 = vadd.f32 %v132_v22, %v36_v17  ;;  %v143_v25 = vadd.f32 %v142_v23, %v36_v17 }
  0xd6   :  { %v134_v26 = vpop.f32.mrf.mxu0  ;;  %v144_v27 = vpop.f32.mrf.mxu1 }
  0xd7   :  { %150 = vst [vmem:[%s277_s3 + $0x8] sm:$0xff] %v133_v24  ;;  %154 = vst [vmem:[%s277_s3 + $0x28] sm:$0xff] %v143_v25  ;;  %v135_v28 = vadd.f32 %v134_v26, %v32_v16  ;;  %v145_v29 = vadd.f32 %v144_v27, %v32_v16 }
  0xd8   :  { %v136_v30 = vpop.f32.mrf.mxu0  ;;  %v146_v31 = vpop.f32.mrf.mxu1 }
  0xd9   :  { %151 = vst [vmem:[%s277_s3 + $0x10] sm:$0xff] %v135_v28  ;;  %155 = vst [vmem:[%s277_s3 + $0x30] sm:$0xff] %v145_v29  ;;  %v137_v32 = vadd.f32 %v136_v30, %v36_v17  ;;  %v147_v33 = vadd.f32 %v146_v31, %v36_v17 }
  0xdb   :  { %152 = vst [vmem:[%s277_s3 + $0x18] sm:$0xff] %v137_v32  ;;  %156 = vst [vmem:[%s277_s3 + $0x38] sm:$0xff] %v147_v33 }

// kernel: bidaf_forward.38
= control target key start
LH: loop header
LB: loop body
LE: loop exit
PB: predicated region body
PF: predicated region fallthrough
CT: control target
= control target key end

     0   :  { %s717_s18 = smov 0   ;;  %s774_s0 = inlined_call_operand.vmem [shape: f32[16,2,256], index: 0, kind: input, shape index: {}, may-alias: {0,1}]   ;;  %s775_s1 = inlined_call_operand.vmem [shape: f32[16,2,256], index: 1, kind: input, shape index: {}, may-alias: {0,1}]   ;;  %s776_s2 = inlined_call_operand.vmem [shape: bf16[32,128], index: 2, kind: input, shape index: {}]   ;;  %s777_s3 = inlined_call_operand.vmem [shape: bf16[32,128], index: 3, kind: input, shape index: {}]   ;;  %s778_s4 = inlined_call_operand.vmem [shape: f32[16,2,32], index: 4, kind: output, shape index: {0}]   ;;  %s779_s5 = inlined_call_operand.vmem [shape: f32[16,2,32], index: 5, kind: output, shape index: {1}]  }
   0x1 LB: > { %s592_s19 = sadd.s32 4294967295, %s679_s18   ;;  %p596_p0 = scmp.ge.s32.totalorder %s679_s18, 1  ;;  %s679_s18 = sphi %s717_s18, %s16_s18  }
   0x2   : > { %p207_p1 = scmp.lt.s32.totalorder %s679_s18, 17 }
   0x4   : > { %p208_p2 = pnand %p596_p0, %p207_p1 }
   0x5   : > { %p246_p3 = scmp.lt.s32.totalorder (!%p208_p2), %s592_s19, 15  ;;  %s251_s20 = ssub.s32 (!%p208_p2), 15, %s592_s19 }
   0x6   : > { %211 = sbr.rel (%p208_p2) target bundleno = 727 (0x2d7), region = 36  ;;  %p252_p4 = scmp.lt.s32.totalorder (!%p208_p2), %s251_s20, 15 }
   0x7   : > { %p603_p5 = scmp.ne.s32.totalorder (!%p208_p2), %s592_s19, 0 }
   0xb   : > { %s247_s21 = scalar_select %p246_p3, %s592_s19, 15 }
   0xc   : > { %s781_s20 = smov (!%p252_p4, %s251_s20), 15 }
   0xd   : > { %s615_s22 = sshll.u32 %s247_s21, 2  ;;  %s601_s23 = sshll.u32 %s247_s21, 1 }
   0xe   : > { %s728_s26 = scalar_lea.vmem %s774_s0, %s615_s22  ;;  %s616_s27 = sshll.u32 %s781_s20, 2 }
   0xf   : > { %s733_s30 = scalar_lea.vmem %s775_s1, %s616_s27  ;;  %s738_s8 = scalar_lea.vmem %s778_s4, %s601_s23 }
  0x10   : > { %s602_s9 = sshll.u32 %s781_s20, 1  ;;  %273 = sbr.rel (%p603_p5) target bundleno = 24 (0x18), region = 40 }
  0x11   : > { %s743_s12 = scalar_lea.vmem %s779_s5, %s602_s9 }
  0x15   : > { %vm274_vm0 = vcmask 254976   ;;  %v681_v0 = vmov 0.0  }
  0x16   : > { %275 = vst.msk [vmem:[#allocation2] sm:$0x3] %vm274_vm0, %v681_v0  ;;  %276 = vst.msk [vmem:[#allocation3] sm:$0x3] %vm274_vm0, %v681_v0 }
  0x17   : > { %277 = vst.msk [vmem:[#allocation4] sm:$0x3] %vm274_vm0, %v681_v0  ;;  %278 = vst.msk [vmem:[#allocation5] sm:$0x3] %vm274_vm0, %v681_v0 }
  0x18 PF: > { %v653_v1 = vld [vmem:[%s776_s2 + $0x8] sm:$0xff]   ;;  %v682_v2 = vmov 0.0   ;;  %v655_v4 = vld [vmem:[%s776_s2] sm:$0xff]   ;;  %vm683_vm1 = vmmov 0   ;;  %s684_s22 = smov 32   ;;  %vm298_vm2 = vcmask 261120  }
  0x19   : > { %623 = vmatprep.subr.bf16.mxu0 %v682_v2  ;;  %631 = vmatprep.subr.bf16.mxu1 %v682_v2  ;;  %v654_v3 = vld [vmem:[%s777_s3 + $0x8] sm:$0xff]   ;;  %v656_v5 = vld [vmem:[%s777_s3] sm:$0xff]   ;;  %s685_s23 = smov 64   ;;  %s686_s24 = smov 96   ;;  %vm376_vm3 = vcmask 254976  }
  0x1a   : > { %624 = vmatpush3.bf16.msra.mxu0 %v653_v1  ;;  %627 = vmatprep.mubr.msk.bf16.mxu0 %vm683_vm1, %v682_v2  ;;  %v279_v12 = vld [vmem:[%s728_s26] sm:$0x3]  ;;  %v608_v13 = vld [vmem:[%s733_s30 + $0x2] sm:$0x3] }
  0x1b   : > { %632 = vmatpush3.bf16.msra.mxu1 %v654_v3  ;;  %625 = vmatprep.subr.bf16.mxu0 %v682_v2 }
  0x1c   : > { %633 = vmatprep.subr.bf16.mxu1 %v682_v2  ;;  %635 = vmatprep.mubr.msk.bf16.mxu1 %vm683_vm1, %v682_v2 }
  0x1d   : > { %v280_v6 = vld [vmem:[#allocation2] sm:$0x3]  ;;  %v350_v8 = vld [vmem:[#allocation3] sm:$0x3] }
  0x1e   : > { %v385_v7 = vld [vmem:[#allocation4] sm:$0x3]  ;;  %v281_v9 = vpack.c.bf16 %v280_v6, %v280_v6  ;;  %352 = vrot.lane.b32.xlu1 %v350_v8, %s684_s22  ;;  %626 = vmatpush3.bf16.msra.mxu0 %v655_v4  ;;  %v454_v11 = vld [vmem:[#allocation5] sm:$0x3] }
  0x1f   : > { %v386_v10 = vpack.c.bf16 %v385_v7, %v385_v7  ;;  %634 = vmatpush3.bf16.msra.mxu1 %v656_v5 }
  0x21   : > { %628 = vmatmul.mubr.msk.bf16.vlgmr.msra.gmra.mxu0 %vm298_vm2, %v281_v9 }
  0x22   : > { %456 = vrot.lane.b32.xlu1 %v454_v11, %s684_s22  ;;  %636 = vmatmul.mubr.msk.bf16.vlgmr.msra.gmra.mxu1 %vm298_vm2, %v386_v10 }
  0x90   : > { %v353_v38 = vpop.permute.xlu1 %352 }
  0x94   : > { %v457_v40 = vpop.permute.xlu1 %456 }
  0xe1   : > { %v336_v14 = vpop.f32.mrf.mxu0 }
  0xe2   : > { %v342_v15 = vadd.f32 %v336_v14, %v279_v12  ;;  %v440_v16 = vpop.f32.mrf.mxu1 }
  0xe3   : > { %v446_v17 = vadd.f32 %v608_v13, %v440_v16  ;;  %v629_v18 = vpop.f32.mrf.mxu0 }
  0xe4   : > { %657 = vtanh.f32 %v342_v15  ;;  %v637_v19 = vpop.f32.mrf.mxu1  ;;  %v607_v26 = vmul.f32 -1.442695, %v342_v15 }
  0xe5   : > { %v339_v20 = vpop.f32.mrf.mxu0  ;;  %659 = vtanh.f32 %v446_v17  ;;  %v612_v27 = vmul.f32 -1.442695, %v446_v17 }
  0xe6   : > { %v443_v21 = vpop.f32.mrf.mxu1  ;;  %661 = vpow2.f32 %v607_v26 }
  0xe7   : > { %v630_v22 = vpop.f32.mrf.mxu0  ;;  %663 = vpow2.f32 %v612_v27 }
  0xe8   : > { %v638_v23 = vpop.f32.mrf.mxu1 }
  0xf1   : > { %v658_v24 = vpop.eup %657 }
  0xf2   : > { %357 = vrot.lane.b32.xlu0 %v658_v24, %s685_s23  ;;  %v660_v25 = vpop.eup %659 }
  0xf3   : > { %v662_v28 = vpop.eup %661 }
  0xf4   : > { %v346_v29 = vadd.f32 1.0, %v662_v28  ;;  %v664_v30 = vpop.eup %663 }
  0xf5   : > { %v450_v31 = vadd.f32 1.0, %v664_v30 }
  0xf6   : > { %461 = vrot.lane.b32.xlu0 %v660_v25, %s685_s23  ;;  %665 = vrcp.f32 %v346_v29 }
  0xf7   : > { %667 = vrcp.f32 %v450_v31 }
 0x103   : > { %v666_v32 = vpop.eup %665 }
 0x104   : > { %v668_v35 = vpop.eup %667  ;;  %v355_v39 = vmul.f32 %v666_v32, %v353_v38 }
 0x105   : > { %v459_v43 = vmul.f32 %v668_v35, %v457_v40 }
 0x164   : > { %v358_v33 = vpop.permute.xlu0 %357 }
 0x165   : > { %v360_v34 = vmul.f32 %v666_v32, %v358_v33 }
 0x167   : > { %362 = vrot.lane.b32.xlu0 %v360_v34, %s684_s22 }
 0x168   : > { %v462_v36 = vpop.permute.xlu0 %461 }
 0x169   : > { %v464_v37 = vmul.f32 %v668_v35, %v462_v36 }
 0x16b   : > { %466 = vrot.lane.b32.xlu1 %v464_v37, %s684_s22 }
 0x1d9   : > { %v363_v41 = vpop.permute.xlu0 %362 }
 0x1da   : > { %v365_v42 = vadd.f32 %v363_v41, %v355_v39 }
 0x1dc   : > { %669 = vtanh.f32 %v365_v42 }
 0x1dd   : > { %v467_v44 = vpop.permute.xlu1 %466 }
 0x1de   : > { %v469_v45 = vadd.f32 %v467_v44, %v459_v43 }
 0x1e0   : > { %671 = vtanh.f32 %v469_v45 }
 0x1e9   : > { %v670_v46 = vpop.eup %669 }
 0x1ea   : > { %368 = vrot.lane.b32.xlu0 %v670_v46, %s685_s23 }
 0x1ed   : > { %v672_v47 = vpop.eup %671 }
 0x1ee   : > { %472 = vrot.lane.b32.xlu1 %v672_v47, %s685_s23  ;;  %373 = vrot.lane.b32.xlu0 %v365_v42, %s686_s24 }
 0x1f2   : > { %477 = vrot.lane.b32.xlu0 %v469_v45, %s686_s24 }
 0x25c   : > { %v369_v48 = vpop.permute.xlu0 %368 }
 0x25d   : > { %v371_v49 = vmul.f32 %v666_v32, %v369_v48 }
 0x25f   : > { %379 = vrot.lane.b32.xlu1 %v371_v49, %s684_s22 }
 0x260   : > { %v473_v50 = vpop.permute.xlu1 %472  ;;  %v374_v51 = vpop.permute.xlu0 %373 }
 0x261   : > { %v475_v52 = vmul.f32 %v668_v35, %v473_v50  ;;  %377 = vst.msk [vmem:[#allocation3] sm:$0x3] %vm376_vm3, %v374_v51 }
 0x263   : > { %482 = vrot.lane.b32.xlu1 %v475_v52, %s684_s22 }
 0x264   : > { %v478_v53 = vpop.permute.xlu0 %477 }
 0x265   : > { %480 = vst.msk [vmem:[#allocation5] sm:$0x3] %vm376_vm3, %v478_v53 }
 0x2d1   : > { %v380_v54 = vpop.permute.xlu1 %379 }
 0x2d2   : > { %382 = vst.msk [vmem:[#allocation2] sm:$0x3] %vm376_vm3, %v380_v54  ;;  %383 = vst.msk [vmem:[%s738_s8] sm:$0x3] %vm376_vm3, %v380_v54 }
 0x2d5   : > { %v483_v55 = vpop.permute.xlu1 %482 }
 0x2d6   : > { %485 = vst.msk [vmem:[#allocation4] sm:$0x3] %vm376_vm3, %v483_v55  ;;  %486 = vst.msk [vmem:[%s743_s12] sm:$0x3] %vm376_vm3, %v483_v55 }
 0x2d7 PF: > { %s16_s18 = sadd.s32 1, %s679_s18  }
 0x2d8   : > { %p13_p6 = scmp.ge.s32.totalorder %s16_s18, 18  }
 0x2da   :  { %15 = sbr.rel (!%p13_p6) target bundleno = 1 (0x1), region = 85 }

// kernel: bidaf_forward.33
= control target key start
LH: loop header
LB: loop body
LE: loop exit
PB: predicated region body
PF: predicated region fallthrough
CT: control target
= control target key end

     0   :  { %v144_v0 = vmov 0.0   ;;  %vm145_vm0 = vmmov 0   ;;  %vm61_vm1 = vcmask 523264   ;;  %vm106_vm2 = vcmask 261120   ;;  %s190_s1 = inlined_call_operand.vmem [shape: bf16[64,32], index: 1, kind: input, shape index: {}]   ;;  %s191_s0 = inlined_call_operand.vmem [shape: bf16[16,64], index: 0, kind: input, shape index: {}]   ;;  %s192_s2 = inlined_call_operand.vmem [shape: f32[1,32], index: 2, kind: input, shape index: {}]   ;;  %s193_s3 = inlined_call_operand.vmem [shape: f32[16,32], index: 3, kind: output, shape index: {}]  }
   0x1   :  { %125 = vmatprep.subr.bf16.mxu0 %v144_v0  ;;  %v139_v1 = vld [vmem:[%s190_s1 + $0x18] sm:$0xff]   ;;  %133 = vmatprep.mubr.msk.bf16.mxu0 %vm145_vm0, %v144_v0  ;;  %v140_v2 = vld [vmem:[%s190_s1 + $0x10] sm:$0xff]   ;;  %v141_v3 = vld [vmem:[%s190_s1 + $0x8] sm:$0xff]  }
   0x2   :  { %126 = vmatpush3.bf16.msra.mxu0 %v139_v1  ;;  %v142_v4 = vld [vmem:[%s190_s1] sm:$0xff]  }
   0x3   :  { %127 = vmatprep.subr.bf16.mxu0 %v144_v0  ;;  %v143_v5 = vld [vmem:[%s191_s0] sm:$0xff]  }
   0x4   :  { %v113_v6 = vld [vmem:[%s192_s2] ss:$0 sm:$0xff] }
   0x6   :  { %128 = vmatpush3.bf16.msra.mxu0 %v140_v2 }
   0x7   :  { %129 = vmatprep.subr.bf16.mxu0 %v144_v0 }
   0xa   :  { %130 = vmatpush3.bf16.msra.mxu0 %v141_v3 }
   0xb   :  { %131 = vmatprep.subr.bf16.mxu0 %v144_v0 }
   0xe   :  { %132 = vmatpush3.bf16.msra.mxu0 %v142_v4 }
  0x11   :  { %134 = vmatmul.mubr.msk.bf16.vlgmr.msra.gmra.mxu0 %vm61_vm1, %v143_v5 }
  0xd1   :  { %v99_v7 = vpop.f32.mrf.mxu0 }
  0xd2   :  { %v100_v8 = vadd.f32 %v113_v6, %v99_v7 }
  0xd3   :  { %v135_v9 = vpop.f32.mrf.mxu0 }
  0xd4   :  { %107 = vst.msk [vmem:[%s193_s3] sm:$0xff] %vm106_vm2, %v100_v8 }
  0xd5   :  { %v102_v10 = vpop.f32.mrf.mxu0 }
  0xd6   :  { %v103_v11 = vadd.f32 %v113_v6, %v102_v10 }
  0xd7   :  { %v136_v12 = vpop.f32.mrf.mxu0 }
  0xd8   :  { %108 = vst.msk [vmem:[%s193_s3 + $0x8] sm:$0xff] %vm106_vm2, %v103_v11 }

// kernel: bidaf_forward.34
= control target key start
LH: loop header
LB: loop body
LE: loop exit
PB: predicated region body
PF: predicated region fallthrough
CT: control target
= control target key end

     0   :  { %v1282_v38 = vmov 0.0   ;;  %vm1283_vm0 = vmmov 0   ;;  %vm892_vm1 = vcmask 261120   ;;  %s1762_s1 = inlined_call_operand.vmem [shape: bf16[640,32], index: 1, kind: input, shape index: {}]   ;;  %s1763_s0 = inlined_call_operand.vmem [shape: bf16[16,1024], index: 0, kind: input, shape index: {}]   ;;  %s1764_s2 = inlined_call_operand.vmem [shape: f32[1,32], index: 2, kind: input, shape index: {}]   ;;  %s1765_s3 = inlined_call_operand.vmem [shape: f32[16,32], index: 3, kind: output, shape index: {}]  }
   0x1   :  { %v1307_v0 = vld [vmem:[%s1762_s1 + $0x78] sm:$0xff]   ;;  %v1330_v4 = vld [vmem:[%s1762_s1 + $0x70] sm:$0xff]   ;;  %v1354_v8 = vld [vmem:[%s1762_s1 + $0x68] sm:$0xff]  }
   0x2   :  { %v1312_v1 = vld [vmem:[%s1762_s1 + $0xf8] sm:$0xff]   ;;  %948 = vmatprep.subr.bf16.mxu0 %v1307_v0  ;;  %v1336_v5 = vld [vmem:[%s1762_s1 + $0xf0] sm:$0xff]   ;;  %v1360_v9 = vld [vmem:[%s1762_s1 + $0xe8] sm:$0xff]  }
   0x3   :  { %v1318_v2 = vld [vmem:[%s1762_s1 + $0x38] sm:$0xff]   ;;  %970 = vmatprep.subr.bf16.mxu1 %v1312_v1  ;;  %v1342_v6 = vld [vmem:[%s1762_s1 + $0x30] sm:$0xff]   ;;  %v1366_v10 = vld [vmem:[%s1762_s1 + $0x28] sm:$0xff]  }
   0x4   :  { %v1324_v3 = vld [vmem:[%s1762_s1 + $0xb8] sm:$0xff]   ;;  %949 = vmatpush3.bf16.msra.mxu0 %v1318_v2  ;;  %v1348_v7 = vld [vmem:[%s1762_s1 + $0xb0] sm:$0xff]   ;;  %v1372_v11 = vld [vmem:[%s1762_s1 + $0xa8] sm:$0xff]  }
   0x5   :  { %971 = vmatpush3.bf16.msra.mxu1 %v1324_v3  ;;  %950 = vmatprep.subr.bf16.mxu0 %v1330_v4  ;;  %v1378_v12 = vld [vmem:[%s1762_s1 + $0x60] sm:$0xff]   ;;  %v1402_v16 = vld [vmem:[%s1762_s1 + $0x58] sm:$0xff]   ;;  %v1426_v20 = vld [vmem:[%s1762_s1 + $0x50] sm:$0xff]  }
   0x6   :  { %972 = vmatprep.subr.bf16.mxu1 %v1336_v5  ;;  %v1384_v13 = vld [vmem:[%s1762_s1 + $0xe0] sm:$0xff]   ;;  %v1408_v17 = vld [vmem:[%s1762_s1 + $0xd8] sm:$0xff]   ;;  %v1432_v21 = vld [vmem:[%s1762_s1 + $0xd0] sm:$0xff]  }
   0x7   :  { %v1390_v14 = vld [vmem:[%s1762_s1 + $0x20] sm:$0xff]   ;;  %v1414_v18 = vld [vmem:[%s1762_s1 + $0x18] sm:$0xff]   ;;  %v1438_v22 = vld [vmem:[%s1762_s1 + $0x10] sm:$0xff]  }
   0x8   :  { %951 = vmatpush3.bf16.msra.mxu0 %v1342_v6  ;;  %v1396_v15 = vld [vmem:[%s1762_s1 + $0xa0] sm:$0xff]   ;;  %v1420_v19 = vld [vmem:[%s1762_s1 + $0x98] sm:$0xff]   ;;  %v1444_v23 = vld [vmem:[%s1762_s1 + $0x90] sm:$0xff]  }
   0x9   :  { %973 = vmatpush3.bf16.msra.mxu1 %v1348_v7  ;;  %952 = vmatprep.subr.bf16.mxu0 %v1354_v8  ;;  %v1450_v24 = vld [vmem:[%s1762_s1 + $0x48] sm:$0xff]   ;;  %v1474_v28 = vld [vmem:[%s1762_s1 + $0x40] sm:$0xff]   ;;  %v1517_v41 = vld [vmem:[%s1762_s1 + $0x138] sm:$0xff]  }
   0xa   :  { %974 = vmatprep.subr.bf16.mxu1 %v1360_v9  ;;  %v1456_v25 = vld [vmem:[%s1762_s1 + $0xc8] sm:$0xff]   ;;  %v1480_v29 = vld [vmem:[%s1762_s1 + $0xc0] sm:$0xff]   ;;  %v1525_v42 = vld [vmem:[%s1762_s1 + $0x130] sm:$0xff]  }
   0xb   :  { %v1462_v26 = vld [vmem:[%s1762_s1 + $0x8] sm:$0xff]   ;;  %v1486_v30 = vld [vmem:[%s1762_s1] sm:$0xff]   ;;  %v1555_v45 = vld [vmem:[%s1762_s1 + $0x118] sm:$0xff]  }
   0xc   :  { %953 = vmatpush3.bf16.msra.mxu0 %v1366_v10  ;;  %v1468_v27 = vld [vmem:[%s1762_s1 + $0x88] sm:$0xff]   ;;  %v1492_v31 = vld [vmem:[%s1762_s1 + $0x80] sm:$0xff]   ;;  %v1564_v46 = vld [vmem:[%s1762_s1 + $0x110] sm:$0xff]  }
   0xd   :  { %975 = vmatpush3.bf16.msra.mxu1 %v1372_v11  ;;  %954 = vmatprep.subr.bf16.mxu0 %v1378_v12  ;;  %v15_v32 = vld [vmem:[%s1763_s0] sm:$0xff]  ;;  %v16_v34 = vld [vmem:[%s1763_s0 + $0x8] sm:$0xff]  ;;  %v17_v49 = vld [vmem:[%s1763_s0 + $0x10] sm:$0xff] }
   0xe   :  { %976 = vmatprep.subr.bf16.mxu1 %v1384_v13  ;;  %v19_v33 = vld [vmem:[%s1763_s0 + $0x20] sm:$0xff]  ;;  %v20_v37 = vld [vmem:[%s1763_s0 + $0x28] sm:$0xff]  ;;  %v21_v50 = vld [vmem:[%s1763_s0 + $0x30] sm:$0xff] }
   0xf   :  { %v899_v35 = vcombine.low %v15_v32, %v19_v33  ;;  %v900_v36 = vcombine.high %v15_v32, %v19_v33  ;;  %v1509_v39 = vcombine.high %v16_v34, %v20_v37  ;;  %v1511_v40 = vcombine.low %v16_v34, %v20_v37  ;;  %v1537_v43 = vld [vmem:[%s1762_s1 + $0x128] sm:$0xff]   ;;  %v1546_v44 = vld [vmem:[%s1762_s1 + $0x120] sm:$0xff]   ;;  %v18_v53 = vld [vmem:[%s1763_s0 + $0x18] sm:$0xff] }
  0x10   :  { %955 = vmatpush3.bf16.msra.mxu0 %v1390_v14  ;;  %v1573_v47 = vld [vmem:[%s1762_s1 + $0x108] sm:$0xff]   ;;  %v1582_v48 = vld [vmem:[%s1762_s1 + $0x100] sm:$0xff]   ;;  %v1593_v51 = vcombine.low %v17_v49, %v21_v50  ;;  %v1632_v52 = vcombine.high %v17_v49, %v21_v50  ;;  %v22_v54 = vld [vmem:[%s1763_s0 + $0x38] sm:$0xff] }
  0x11   :  { %977 = vmatpush3.bf16.msra.mxu1 %v1396_v15  ;;  %956 = vmatprep.subr.bf16.mxu0 %v1402_v16  ;;  %v945_v55 = vcombine.low %v18_v53, %v22_v54  ;;  %v946_v56 = vcombine.high %v18_v53, %v22_v54 }
  0x12   :  { %978 = vmatprep.subr.bf16.mxu1 %v1408_v17  ;;  %401 = vmatprep.mubr.bf16.mxu0 %v900_v36 }
  0x13   :  { %442 = vmatprep.mubr.bf16.mxu1 %v1509_v39 }
  0x14   :  { %957 = vmatpush3.bf16.msra.mxu0 %v1414_v18 }
  0x15   :  { %979 = vmatpush3.bf16.msra.mxu1 %v1420_v19  ;;  %958 = vmatprep.subr.bf16.mxu0 %v1426_v20 }
  0x16   :  { %980 = vmatprep.subr.bf16.mxu1 %v1432_v21 }
  0x18   :  { %959 = vmatpush3.bf16.msra.mxu0 %v1438_v22 }
  0x19   :  { %981 = vmatpush3.bf16.msra.mxu1 %v1444_v23  ;;  %960 = vmatprep.subr.bf16.mxu0 %v1450_v24 }
  0x1a   :  { %982 = vmatprep.subr.bf16.mxu1 %v1456_v25 }
  0x1c   :  { %961 = vmatpush3.bf16.msra.mxu0 %v1462_v26 }
  0x1d   :  { %983 = vmatpush3.bf16.msra.mxu1 %v1468_v27  ;;  %962 = vmatprep.subr.bf16.mxu0 %v1474_v28 }
  0x1e   :  { %984 = vmatprep.subr.bf16.mxu1 %v1480_v29 }
  0x20   :  { %963 = vmatpush3.bf16.msra.mxu0 %v1486_v30 }
  0x21   :  { %985 = vmatpush3.bf16.msra.mxu1 %v1492_v31  ;;  %1160 = vmatprep.subr.bf16.mxu0 %v1282_v38 }
  0x22   :  { %1001 = vmatprep.subr.bf16.mxu1 %v1307_v0 }
  0x23   :  { %402 = vmatmul.mubr.bf16.vlgmr.msra.gmra.mxu0 %v899_v35 }
  0x24   :  { %443 = vmatmul.mubr.bf16.vlgmr.msra.gmra.mxu1 %v1511_v40  ;;  %1161 = vmatpush3.bf16.msra.mxu0 %v1517_v41 }
  0x25   :  { %1002 = vmatpush3.bf16.msra.mxu1 %v1318_v2  ;;  %1162 = vmatprep.subr.bf16.mxu0 %v1282_v38 }
  0x26   :  { %1003 = vmatprep.subr.bf16.mxu1 %v1330_v4  ;;  %1176 = vmatprep.mubr.msk.bf16.mxu0 %vm1283_vm0, %v1282_v38 }
  0x27   :  { %528 = vmatprep.mubr.bf16.mxu1 %v1511_v40 }
  0x28   :  { %1163 = vmatpush3.bf16.msra.mxu0 %v1525_v42 }
  0x29   :  { %1004 = vmatpush3.bf16.msra.mxu1 %v1342_v6  ;;  %1164 = vmatprep.subr.bf16.mxu0 %v1282_v38 }
  0x2a   :  { %1005 = vmatprep.subr.bf16.mxu1 %v1354_v8 }
  0x2c   :  { %1165 = vmatpush3.bf16.msra.mxu0 %v1537_v43 }
  0x2d   :  { %1006 = vmatpush3.bf16.msra.mxu1 %v1366_v10  ;;  %1166 = vmatprep.subr.bf16.mxu0 %v1282_v38 }
  0x2e   :  { %1007 = vmatprep.subr.bf16.mxu1 %v1378_v12 }
  0x30   :  { %1167 = vmatpush3.bf16.msra.mxu0 %v1546_v44 }
  0x31   :  { %1008 = vmatpush3.bf16.msra.mxu1 %v1390_v14  ;;  %1168 = vmatprep.subr.bf16.mxu0 %v1282_v38 }
  0x32   :  { %1009 = vmatprep.subr.bf16.mxu1 %v1402_v16 }
  0x34   :  { %1169 = vmatpush3.bf16.msra.mxu0 %v1555_v45 }
  0x35   :  { %1010 = vmatpush3.bf16.msra.mxu1 %v1414_v18  ;;  %1170 = vmatprep.subr.bf16.mxu0 %v1282_v38 }
  0x36   :  { %1011 = vmatprep.subr.bf16.mxu1 %v1426_v20 }
  0x38   :  { %1171 = vmatpush3.bf16.msra.mxu0 %v1564_v46 }
  0x39   :  { %1012 = vmatpush3.bf16.msra.mxu1 %v1438_v22  ;;  %1172 = vmatprep.subr.bf16.mxu0 %v1282_v38 }
  0x3a   :  { %1013 = vmatprep.subr.bf16.mxu1 %v1450_v24 }
  0x3c   :  { %1173 = vmatpush3.bf16.msra.mxu0 %v1573_v47 }
  0x3d   :  { %1014 = vmatpush3.bf16.msra.mxu1 %v1462_v26  ;;  %1174 = vmatprep.subr.bf16.mxu0 %v1282_v38 }
  0x3e   :  { %1015 = vmatprep.subr.bf16.mxu1 %v1474_v28 }
  0x40   :  { %1175 = vmatpush3.bf16.msra.mxu0 %v1582_v48 }
  0x41   :  { %1016 = vmatpush3.bf16.msra.mxu1 %v1486_v30  ;;  %1023 = vmatprep.subr.bf16.mxu0 %v1312_v1 }
  0x42   :  { %1180 = vmatprep.subr.bf16.mxu1 %v1282_v38 }
  0x43   :  { %1177 = vmatmul.mubr.bf16.vlgmr.msra.gmra.mxu0 %v1593_v51 }
  0x44   :  { %529 = vmatmul.mubr.bf16.vlgmr.msra.gmra.mxu1 %v900_v36  ;;  %1024 = vmatpush3.bf16.msra.mxu0 %v1324_v3 }
  0x45   :  { %1181 = vmatpush3.bf16.msra.mxu1 %v1517_v41  ;;  %1025 = vmatprep.subr.bf16.mxu0 %v1336_v5 }
  0x46   :  { %1182 = vmatprep.subr.bf16.mxu1 %v1282_v38  ;;  %569 = vmatprep.mubr.bf16.mxu0 %v1593_v51 }
  0x47   :  { %1196 = vmatprep.mubr.msk.bf16.mxu1 %vm1283_vm0, %v1282_v38 }
  0x48   :  { %1026 = vmatpush3.bf16.msra.mxu0 %v1348_v7 }
  0x49   :  { %1183 = vmatpush3.bf16.msra.mxu1 %v1525_v42  ;;  %1027 = vmatprep.subr.bf16.mxu0 %v1360_v9 }
  0x4a   :  { %1184 = vmatprep.subr.bf16.mxu1 %v1282_v38 }
  0x4c   :  { %1028 = vmatpush3.bf16.msra.mxu0 %v1372_v11 }
  0x4d   :  { %1185 = vmatpush3.bf16.msra.mxu1 %v1537_v43  ;;  %1029 = vmatprep.subr.bf16.mxu0 %v1384_v13 }
  0x4e   :  { %1186 = vmatprep.subr.bf16.mxu1 %v1282_v38 }
  0x50   :  { %1030 = vmatpush3.bf16.msra.mxu0 %v1396_v15 }
  0x51   :  { %1187 = vmatpush3.bf16.msra.mxu1 %v1546_v44  ;;  %1031 = vmatprep.subr.bf16.mxu0 %v1408_v17 }
  0x52   :  { %1188 = vmatprep.subr.bf16.mxu1 %v1282_v38 }
  0x54   :  { %1032 = vmatpush3.bf16.msra.mxu0 %v1420_v19 }
  0x55   :  { %1189 = vmatpush3.bf16.msra.mxu1 %v1555_v45  ;;  %1033 = vmatprep.subr.bf16.mxu0 %v1432_v21 }
  0x56   :  { %1190 = vmatprep.subr.bf16.mxu1 %v1282_v38 }
  0x58   :  { %1034 = vmatpush3.bf16.msra.mxu0 %v1444_v23 }
  0x59   :  { %1191 = vmatpush3.bf16.msra.mxu1 %v1564_v46  ;;  %1035 = vmatprep.subr.bf16.mxu0 %v1456_v25 }
  0x5a   :  { %1192 = vmatprep.subr.bf16.mxu1 %v1282_v38 }
  0x5c   :  { %1036 = vmatpush3.bf16.msra.mxu0 %v1468_v27 }
  0x5d   :  { %1193 = vmatpush3.bf16.msra.mxu1 %v1573_v47  ;;  %1037 = vmatprep.subr.bf16.mxu0 %v1480_v29 }
  0x5e   :  { %1194 = vmatprep.subr.bf16.mxu1 %v1282_v38 }
  0x60   :  { %1038 = vmatpush3.bf16.msra.mxu0 %v1492_v31 }
  0x61   :  { %1195 = vmatpush3.bf16.msra.mxu1 %v1582_v48  ;;  %1054 = vmatprep.subr.bf16.mxu0 %v1307_v0 }
  0x62   :  { %1076 = vmatprep.subr.bf16.mxu1 %v1312_v1 }
  0x63   :  { %570 = vmatmul.mubr.bf16.vlgmr.msra.gmra.mxu0 %v1509_v39 }
  0x64   :  { %1197 = vmatmul.mubr.bf16.vlgmr.msra.gmra.mxu1 %v1632_v52  ;;  %1055 = vmatpush3.bf16.msra.mxu0 %v1318_v2 }
  0x65   :  { %1077 = vmatpush3.bf16.msra.mxu1 %v1324_v3  ;;  %1056 = vmatprep.subr.bf16.mxu0 %v1330_v4 }
  0x66   :  { %1078 = vmatprep.subr.bf16.mxu1 %v1336_v5  ;;  %659 = vmatprep.mubr.bf16.mxu0 %v1509_v39 }
  0x67   :  { %700 = vmatprep.mubr.bf16.mxu1 %v1632_v52 }
  0x68   :  { %1057 = vmatpush3.bf16.msra.mxu0 %v1342_v6 }
  0x69   :  { %1079 = vmatpush3.bf16.msra.mxu1 %v1348_v7  ;;  %1058 = vmatprep.subr.bf16.mxu0 %v1354_v8 }
  0x6a   :  { %1080 = vmatprep.subr.bf16.mxu1 %v1360_v9 }
  0x6c   :  { %1059 = vmatpush3.bf16.msra.mxu0 %v1366_v10 }
  0x6d   :  { %1081 = vmatpush3.bf16.msra.mxu1 %v1372_v11  ;;  %1060 = vmatprep.subr.bf16.mxu0 %v1378_v12 }
  0x6e   :  { %1082 = vmatprep.subr.bf16.mxu1 %v1384_v13 }
  0x70   :  { %1061 = vmatpush3.bf16.msra.mxu0 %v1390_v14 }
  0x71   :  { %1083 = vmatpush3.bf16.msra.mxu1 %v1396_v15  ;;  %1062 = vmatprep.subr.bf16.mxu0 %v1402_v16 }
  0x72   :  { %1084 = vmatprep.subr.bf16.mxu1 %v1408_v17 }
  0x74   :  { %1063 = vmatpush3.bf16.msra.mxu0 %v1414_v18 }
  0x75   :  { %1085 = vmatpush3.bf16.msra.mxu1 %v1420_v19  ;;  %1064 = vmatprep.subr.bf16.mxu0 %v1426_v20 }
  0x76   :  { %1086 = vmatprep.subr.bf16.mxu1 %v1432_v21 }
  0x78   :  { %1065 = vmatpush3.bf16.msra.mxu0 %v1438_v22 }
  0x79   :  { %1087 = vmatpush3.bf16.msra.mxu1 %v1444_v23  ;;  %1066 = vmatprep.subr.bf16.mxu0 %v1450_v24 }
  0x7a   :  { %1088 = vmatprep.subr.bf16.mxu1 %v1456_v25 }
  0x7c   :  { %1067 = vmatpush3.bf16.msra.mxu0 %v1462_v26 }
  0x7d   :  { %1089 = vmatpush3.bf16.msra.mxu1 %v1468_v27  ;;  %1068 = vmatprep.subr.bf16.mxu0 %v1474_v28 }
  0x7e   :  { %1090 = vmatprep.subr.bf16.mxu1 %v1480_v29 }
  0x80   :  { %1069 = vmatpush3.bf16.msra.mxu0 %v1486_v30 }
  0x81   :  { %1091 = vmatpush3.bf16.msra.mxu1 %v1492_v31  ;;  %1200 = vmatprep.subr.bf16.mxu0 %v1282_v38 }
  0x82   :  { %1107 = vmatprep.subr.bf16.mxu1 %v1307_v0 }
  0x83   :  { %660 = vmatmul.mubr.bf16.vlgmr.msra.gmra.mxu0 %v1511_v40 }
  0x84   :  { %701 = vmatmul.mubr.bf16.vlgmr.msra.gmra.mxu1 %v1593_v51  ;;  %1201 = vmatpush3.bf16.msra.mxu0 %v1517_v41 }
  0x85   :  { %1108 = vmatpush3.bf16.msra.mxu1 %v1318_v2  ;;  %1202 = vmatprep.subr.bf16.mxu0 %v1282_v38 }
  0x86   :  { %1109 = vmatprep.subr.bf16.mxu1 %v1330_v4  ;;  %1216 = vmatprep.mubr.msk.bf16.mxu0 %vm1283_vm0, %v1282_v38 }
  0x87   :  { %788 = vmatprep.mubr.bf16.mxu1 %v1593_v51 }
  0x88   :  { %1203 = vmatpush3.bf16.msra.mxu0 %v1525_v42 }
  0x89   :  { %1110 = vmatpush3.bf16.msra.mxu1 %v1342_v6  ;;  %1204 = vmatprep.subr.bf16.mxu0 %v1282_v38 }
  0x8a   :  { %1111 = vmatprep.subr.bf16.mxu1 %v1354_v8 }
  0x8c   :  { %1205 = vmatpush3.bf16.msra.mxu0 %v1537_v43 }
  0x8d   :  { %1112 = vmatpush3.bf16.msra.mxu1 %v1366_v10  ;;  %1206 = vmatprep.subr.bf16.mxu0 %v1282_v38 }
  0x8e   :  { %1113 = vmatprep.subr.bf16.mxu1 %v1378_v12 }
  0x90   :  { %1207 = vmatpush3.bf16.msra.mxu0 %v1546_v44 }
  0x91   :  { %1114 = vmatpush3.bf16.msra.mxu1 %v1390_v14  ;;  %1208 = vmatprep.subr.bf16.mxu0 %v1282_v38 }
  0x92   :  { %1115 = vmatprep.subr.bf16.mxu1 %v1402_v16 }
  0x94   :  { %1209 = vmatpush3.bf16.msra.mxu0 %v1555_v45 }
  0x95   :  { %1116 = vmatpush3.bf16.msra.mxu1 %v1414_v18  ;;  %1210 = vmatprep.subr.bf16.mxu0 %v1282_v38 }
  0x96   :  { %1117 = vmatprep.subr.bf16.mxu1 %v1426_v20 }
  0x98   :  { %1211 = vmatpush3.bf16.msra.mxu0 %v1564_v46 }
  0x99   :  { %1118 = vmatpush3.bf16.msra.mxu1 %v1438_v22  ;;  %1212 = vmatprep.subr.bf16.mxu0 %v1282_v38 }
  0x9a   :  { %1119 = vmatprep.subr.bf16.mxu1 %v1450_v24 }
  0x9c   :  { %1213 = vmatpush3.bf16.msra.mxu0 %v1573_v47 }
  0x9d   :  { %1120 = vmatpush3.bf16.msra.mxu1 %v1462_v26  ;;  %1214 = vmatprep.subr.bf16.mxu0 %v1282_v38 }
  0x9e   :  { %1121 = vmatprep.subr.bf16.mxu1 %v1474_v28 }
  0xa0   :  { %1215 = vmatpush3.bf16.msra.mxu0 %v1582_v48 }
  0xa1   :  { %1122 = vmatpush3.bf16.msra.mxu1 %v1486_v30  ;;  %1129 = vmatprep.subr.bf16.mxu0 %v1312_v1 }
  0xa2   :  { %1220 = vmatprep.subr.bf16.mxu1 %v1282_v38 }
  0xa3   :  { %1217 = vmatmul.mubr.bf16.vlgmr.msra.gmra.mxu0 %v945_v55 }
  0xa4   :  { %789 = vmatmul.mubr.bf16.vlgmr.msra.gmra.mxu1 %v1509_v39  ;;  %1130 = vmatpush3.bf16.msra.mxu0 %v1324_v3 }
  0xa5   :  { %1221 = vmatpush3.bf16.msra.mxu1 %v1517_v41  ;;  %1131 = vmatprep.subr.bf16.mxu0 %v1336_v5 }
  0xa6   :  { %1222 = vmatprep.subr.bf16.mxu1 %v1282_v38  ;;  %829 = vmatprep.mubr.bf16.mxu0 %v945_v55 }
  0xa7   :  { %1236 = vmatprep.mubr.msk.bf16.mxu1 %vm1283_vm0, %v1282_v38 }
  0xa8   :  { %1132 = vmatpush3.bf16.msra.mxu0 %v1348_v7 }
  0xa9   :  { %1223 = vmatpush3.bf16.msra.mxu1 %v1525_v42  ;;  %1133 = vmatprep.subr.bf16.mxu0 %v1360_v9 }
  0xaa   :  { %1224 = vmatprep.subr.bf16.mxu1 %v1282_v38 }
  0xac   :  { %1134 = vmatpush3.bf16.msra.mxu0 %v1372_v11 }
  0xad   :  { %1225 = vmatpush3.bf16.msra.mxu1 %v1537_v43  ;;  %1135 = vmatprep.subr.bf16.mxu0 %v1384_v13 }
  0xae   :  { %1226 = vmatprep.subr.bf16.mxu1 %v1282_v38 }
  0xb0   :  { %1136 = vmatpush3.bf16.msra.mxu0 %v1396_v15 }
  0xb1   :  { %1227 = vmatpush3.bf16.msra.mxu1 %v1546_v44  ;;  %1137 = vmatprep.subr.bf16.mxu0 %v1408_v17 }
  0xb2   :  { %1228 = vmatprep.subr.bf16.mxu1 %v1282_v38 }
  0xb4   :  { %1138 = vmatpush3.bf16.msra.mxu0 %v1420_v19 }
  0xb5   :  { %1229 = vmatpush3.bf16.msra.mxu1 %v1555_v45  ;;  %1139 = vmatprep.subr.bf16.mxu0 %v1432_v21 }
  0xb6   :  { %1230 = vmatprep.subr.bf16.mxu1 %v1282_v38 }
  0xb8   :  { %1140 = vmatpush3.bf16.msra.mxu0 %v1444_v23 }
  0xb9   :  { %1231 = vmatpush3.bf16.msra.mxu1 %v1564_v46  ;;  %1141 = vmatprep.subr.bf16.mxu0 %v1456_v25 }
  0xba   :  { %1232 = vmatprep.subr.bf16.mxu1 %v1282_v38 }
  0xbc   :  { %1142 = vmatpush3.bf16.msra.mxu0 %v1468_v27 }
  0xbd   :  { %1233 = vmatpush3.bf16.msra.mxu1 %v1573_v47  ;;  %1143 = vmatprep.subr.bf16.mxu0 %v1480_v29 }
  0xbe   :  { %1234 = vmatprep.subr.bf16.mxu1 %v1282_v38 }
  0xc0   :  { %1144 = vmatpush3.bf16.msra.mxu0 %v1492_v31 }
  0xc1   :  { %1235 = vmatpush3.bf16.msra.mxu1 %v1582_v48 }
  0xc3   :  { %830 = vmatmul.mubr.bf16.vlgmr.msra.gmra.mxu0 %v1632_v52 }
  0xc4   :  { %1237 = vmatmul.mubr.bf16.vlgmr.msra.gmra.mxu1 %v946_v56 }
  0xe3   :  { %v964_v57 = vpop.f32.mrf.mxu0 }
  0xe4   :  { %v986_v58 = vpop.f32.mrf.mxu1 }
  0xe5   :  { %v965_v59 = vpop.f32.mrf.mxu0 }
  0xe6   :  { %v966_v60 = vadd.f32 %v965_v59, %v964_v57  ;;  %v987_v61 = vpop.f32.mrf.mxu1 }
  0xe7   :  { %v988_v62 = vadd.f32 %v987_v61, %v986_v58  ;;  %v967_v63 = vpop.f32.mrf.mxu0 }
  0xe8   :  { %v989_v0 = vpop.f32.mrf.mxu1 }
  0xe9   :  { %v968_v1 = vpop.f32.mrf.mxu0  ;;  %v445_v2 = vadd.f32 %v988_v62, %v966_v60 }
  0xea   :  { %v969_v3 = vadd.f32 %v968_v1, %v967_v63  ;;  %v990_v4 = vpop.f32.mrf.mxu1 }
  0xeb   :  { %v991_v5 = vadd.f32 %v990_v4, %v989_v0 }
  0xed   :  { %v448_v6 = vadd.f32 %v991_v5, %v969_v3 }
 0x103   :  { %v485_v7 = vpop.f32.mrf.mxu0 }
 0x104   :  { %v486_v8 = vadd.f32 %v485_v7, %v445_v2  ;;  %v1017_v9 = vpop.f32.mrf.mxu1 }
 0x105   :  { %v1178_v10 = vpop.f32.mrf.mxu0 }
 0x106   :  { %v1018_v11 = vpop.f32.mrf.mxu1  ;;  %v947_v10 = vld [vmem:[%s1764_s2] ss:$0 sm:$0xff] }
 0x107   :  { %v1019_v12 = vadd.f32 %v1018_v11, %v1017_v9  ;;  %v488_v13 = vpop.f32.mrf.mxu0 }
 0x108   :  { %v1750_v14 = vadd.f32 %v488_v13, %v448_v6  ;;  %v1020_v15 = vpop.f32.mrf.mxu1 }
 0x109   :  { %v1179_v16 = vpop.f32.mrf.mxu0 }
 0x10a   :  { %v1021_v17 = vpop.f32.mrf.mxu1 }
 0x10b   :  { %v1022_v18 = vadd.f32 %v1021_v17, %v1020_v15 }
 0x123   :  { %v1039_v19 = vpop.f32.mrf.mxu0 }
 0x124   :  { %v612_v20 = vpop.f32.mrf.mxu1 }
 0x125   :  { %v1040_v21 = vpop.f32.mrf.mxu0 }
 0x126   :  { %v1041_v22 = vadd.f32 %v1040_v21, %v1039_v19  ;;  %v1198_v23 = vpop.f32.mrf.mxu1 }
 0x127   :  { %v1042_v24 = vpop.f32.mrf.mxu0 }
 0x128   :  { %v572_v25 = vadd.f32 %v1041_v22, %v1019_v12  ;;  %v615_v26 = vpop.f32.mrf.mxu1 }
 0x129   :  { %v1043_v27 = vpop.f32.mrf.mxu0 }
 0x12a   :  { %v613_v28 = vadd.f32 %v612_v20, %v572_v25  ;;  %v1044_v29 = vadd.f32 %v1043_v27, %v1042_v24  ;;  %v1199_v30 = vpop.f32.mrf.mxu1 }
 0x12c   :  { %v575_v31 = vadd.f32 %v1044_v29, %v1022_v18  ;;  %v619_v32 = vmax.f32 %v486_v8, %v613_v28 }
 0x12e   :  { %v616_v33 = vadd.f32 %v615_v26, %v575_v31 }
 0x130   :  { %v620_v34 = vmax.f32 %v1750_v14, %v616_v33 }
 0x143   :  { %v1070_v35 = vpop.f32.mrf.mxu0 }
 0x144   :  { %v1092_v42 = vpop.f32.mrf.mxu1 }
 0x145   :  { %v1071_v36 = vpop.f32.mrf.mxu0 }
 0x146   :  { %v1093_v44 = vpop.f32.mrf.mxu1  ;;  %v1072_v50 = vadd.f32 %v1071_v36, %v1070_v35 }
 0x147   :  { %v1073_v37 = vpop.f32.mrf.mxu0  ;;  %v1094_v51 = vadd.f32 %v1093_v44, %v1092_v42 }
 0x148   :  { %v1095_v45 = vpop.f32.mrf.mxu1 }
 0x149   :  { %v1074_v38 = vpop.f32.mrf.mxu0  ;;  %v703_v53 = vadd.f32 %v1094_v51, %v1072_v50 }
 0x14a   :  { %v1096_v46 = vpop.f32.mrf.mxu1  ;;  %v1075_v55 = vadd.f32 %v1074_v38, %v1073_v37 }
 0x14b   :  { %v1097_v56 = vadd.f32 %v1096_v46, %v1095_v45 }
 0x14d   :  { %v706_v0 = vadd.f32 %v1097_v56, %v1075_v55 }
 0x163   :  { %v743_v39 = vpop.f32.mrf.mxu0 }
 0x164   :  { %v1123_v47 = vpop.f32.mrf.mxu1  ;;  %v744_v58 = vadd.f32 %v743_v39, %v703_v53 }
 0x165   :  { %v1218_v40 = vpop.f32.mrf.mxu0 }
 0x166   :  { %v1124_v48 = vpop.f32.mrf.mxu1  ;;  %v750_v3 = vmax.f32 %v619_v32, %v744_v58 }
 0x167   :  { %v746_v41 = vpop.f32.mrf.mxu0  ;;  %v1125_v60 = vadd.f32 %v1124_v48, %v1123_v47 }
 0x168   :  { %v1126_v49 = vpop.f32.mrf.mxu1  ;;  %v747_v5 = vadd.f32 %v746_v41, %v706_v0 }
 0x169   :  { %v1219_v43 = vpop.f32.mrf.mxu0 }
 0x16a   :  { %v1127_v52 = vpop.f32.mrf.mxu1  ;;  %v751_v13 = vmax.f32 %v620_v34, %v747_v5 }
 0x16b   :  { %v1128_v6 = vadd.f32 %v1127_v52, %v1126_v49 }
 0x183   :  { %v1145_v54 = vpop.f32.mrf.mxu0 }
 0x184   :  { %v872_v57 = vpop.f32.mrf.mxu1 }
 0x185   :  { %v1146_v59 = vpop.f32.mrf.mxu0 }
 0x186   :  { %v1147_v61 = vadd.f32 %v1146_v59, %v1145_v54  ;;  %v1238_v62 = vpop.f32.mrf.mxu1 }
 0x187   :  { %v1148_v63 = vpop.f32.mrf.mxu0 }
 0x188   :  { %v832_v1 = vadd.f32 %v1147_v61, %v1125_v60  ;;  %v875_v2 = vpop.f32.mrf.mxu1 }
 0x189   :  { %v1149_v4 = vpop.f32.mrf.mxu0 }
 0x18a   :  { %v873_v7 = vadd.f32 %v872_v57, %v832_v1  ;;  %v1150_v8 = vadd.f32 %v1149_v4, %v1148_v63  ;;  %v1239_v9 = vpop.f32.mrf.mxu1 }
 0x18c   :  { %v879_v11 = vmax.f32 %v750_v3, %v873_v7  ;;  %v835_v12 = vadd.f32 %v1150_v8, %v1128_v6 }
 0x18e   :  { %v888_v14 = vadd.f32 %v947_v10, %v879_v11  ;;  %v876_v15 = vadd.f32 %v875_v2, %v835_v12 }
 0x190   :  { %v890_v16 = vmax.f32 %v888_v14, 0.0  ;;  %v880_v17 = vmax.f32 %v751_v13, %v876_v15 }
 0x192   :  { %893 = vst.msk [vmem:[%s1765_s3] sm:$0xff] %vm892_vm1, %v890_v16  ;;  %v889_v18 = vadd.f32 %v947_v10, %v880_v17 }
 0x194   :  { %v891_v19 = vmax.f32 %v889_v18, 0.0 }
 0x196   :  { %894 = vst.msk [vmem:[%s1765_s3 + $0x8] sm:$0xff] %vm892_vm1, %v891_v19 }

// kernel: bidaf_forward.35
= control target key start
LH: loop header
LB: loop body
LE: loop exit
PB: predicated region body
PF: predicated region fallthrough
CT: control target
= control target key end

     0   :  { %v178_v0 = vmov 0.0   ;;  %vm179_vm0 = vmmov 0   ;;  %vm57_vm1 = vcmask 523264   ;;  %s231_s1 = inlined_call_operand.vmem [shape: bf16[64,128], index: 1, kind: input, shape index: {}]   ;;  %s232_s0 = inlined_call_operand.vmem [shape: f32[16,64], index: 0, kind: input, shape index: {}]   ;;  %s233_s2 = inlined_call_operand.vmem [shape: f32[1,128], index: 2, kind: input, shape index: {}]   ;;  %s234_s3 = inlined_call_operand.vmem [shape: f32[16,64], index: 3, kind: output, shape index: {}]  }
   0x1   :  { %151 = vmatprep.subr.bf16.mxu0 %v178_v0  ;;  %v166_v1 = vld [vmem:[%s231_s1 + $0x18] sm:$0xff]   ;;  %159 = vmatprep.mubr.msk.bf16.mxu0 %vm179_vm0, %v178_v0  ;;  %v167_v2 = vld [vmem:[%s231_s1 + $0x10] sm:$0xff]   ;;  %v168_v3 = vld [vmem:[%s231_s1 + $0x8] sm:$0xff]  }
   0x2   :  { %152 = vmatpush3.bf16.msra.mxu0 %v166_v1  ;;  %v169_v4 = vld [vmem:[%s231_s1] sm:$0xff]   ;;  %v16_v6 = vld [vmem:[%s232_s0 + $0x8] sm:$0xff]  ;;  %s180_s1 = smov 64  }
   0x3   :  { %153 = vmatprep.subr.bf16.mxu0 %v178_v0  ;;  %v15_v5 = vld [vmem:[%s232_s0] sm:$0xff] }
   0x4   :  { %v17_v7 = vpack.c.bf16 %v16_v6, %v15_v5  ;;  %v138_v8 = vld [vmem:[%s233_s2] ss:$0 sm:$0xff] }
   0x6   :  { %154 = vmatpush3.bf16.msra.mxu0 %v167_v2 }
   0x7   :  { %155 = vmatprep.subr.bf16.mxu0 %v178_v0 }
   0xa   :  { %156 = vmatpush3.bf16.msra.mxu0 %v168_v3 }
   0xb   :  { %157 = vmatprep.subr.bf16.mxu0 %v178_v0 }
   0xe   :  { %158 = vmatpush3.bf16.msra.mxu0 %v169_v4 }
  0x11   :  { %160 = vmatmul.mubr.msk.bf16.vlgmr.msra.gmra.mxu0 %vm57_vm1, %v17_v7 }
  0xd1   :  { %v95_v9 = vpop.f32.mrf.mxu0 }
  0xd2   :  { %v96_v10 = vadd.f32 %v138_v8, %v95_v9 }
  0xd3   :  { %v161_v11 = vpop.f32.mrf.mxu0 }
  0xd4   :  { %v114_v12 = vmax.f32 %v96_v10, 0.0  ;;  %v144_v17 = vmul.f32 -1.442695, %v96_v10 }
  0xd5   :  { %v98_v13 = vpop.f32.mrf.mxu0 }
  0xd6   :  { %v99_v14 = vadd.f32 %v138_v8, %v98_v13  ;;  %118 = vrot.lane.b32.xlu0 %v114_v12, %s180_s1  ;;  %170 = vpow2.f32 %v144_v17 }
  0xd7   :  { %v162_v15 = vpop.f32.mrf.mxu0 }
  0xd8   :  { %v115_v16 = vmax.f32 %v99_v14, 0.0  ;;  %v145_v18 = vmul.f32 -1.442695, %v99_v14 }
  0xda   :  { %120 = vrot.lane.b32.xlu0 %v115_v16, %s180_s1  ;;  %172 = vpow2.f32 %v145_v18 }
  0xe3   :  { %v171_v19 = vpop.eup %170 }
  0xe4   :  { %v108_v20 = vadd.f32 1.0, %v171_v19 }
  0xe6   :  { %174 = vrcp.f32 %v108_v20 }
  0xe7   :  { %v173_v21 = vpop.eup %172 }
  0xe8   :  { %v109_v22 = vadd.f32 1.0, %v173_v21 }
  0xea   :  { %176 = vrcp.f32 %v109_v22 }
  0xf3   :  { %v175_v23 = vpop.eup %174 }
  0xf4   :  { %v126_v24 = vsub.f32 1.0, %v175_v23 }
  0xf6   :  { %v128_v28 = vmul.f32 %v126_v24, %v15_v5 }
  0xf7   :  { %v177_v25 = vpop.eup %176 }
  0xf8   :  { %v127_v29 = vsub.f32 1.0, %v177_v25 }
  0xfa   :  { %v129_v33 = vmul.f32 %v127_v29, %v16_v6 }
 0x148   :  { %v119_v26 = vpop.permute.xlu0 %118 }
 0x149   :  { %v124_v27 = vmul.f32 %v175_v23, %v119_v26 }
 0x14b   :  { %v130_v30 = vadd.f32 %v128_v28, %v124_v27 }
 0x14c   :  { %v121_v31 = vpop.permute.xlu0 %120 }
 0x14d   :  { %132 = vst.msk [vmem:[%s234_s3] sm:$0xff] %vm57_vm1, %v130_v30  ;;  %v125_v32 = vmul.f32 %v177_v25, %v121_v31 }
 0x14f   :  { %v131_v34 = vadd.f32 %v129_v33, %v125_v32 }
 0x151   :  { %133 = vst.msk [vmem:[%s234_s3 + $0x8] sm:$0xff] %vm57_vm1, %v131_v34 }

// kernel: bidaf_forward.39
= control target key start
LH: loop header
LB: loop body
LE: loop exit
PB: predicated region body
PF: predicated region fallthrough
CT: control target
= control target key end

     0   :  { %v161_v1 = vmov 0   ;;  %vm82_vm0 = vcmask 523264   ;;  %v27_v10 = vlaneseq  ;;  %s224_s1 = inlined_call_operand.vmem [shape: bf16[64,256], index: 1, kind: input, shape index: {}]   ;;  %s225_s0 = inlined_call_operand.vmem [shape: bf16[16,64], index: 0, kind: input, shape index: {}]   ;;  %s226_s2 = inlined_call_operand.vmem [shape: f32[1,256], index: 2, kind: input, shape index: {}]   ;;  %s227_s3 = inlined_call_operand.vmem [shape: f32[16,256], index: 3, kind: output, shape index: {}]  }
   0x1   :  { %v148_v0 = vld [vmem:[%s224_s1 + $0x34] ss:$8 sps:$4 sm:$0xff]   ;;  %118 = vmatprep.mubr.bf16.mxu0 %v161_v1  ;;  %v150_v2 = vld [vmem:[%s224_s1 + $0x30] ss:$8 sps:$4 sm:$0xff]   ;;  %v151_v3 = vld [vmem:[%s224_s1 + $0x24] ss:$8 sps:$4 sm:$0xff]  }
   0x2   :  { %94 = vmatprep.subr.bf16.mxu0 %v148_v0  ;;  %v153_v4 = vld [vmem:[%s224_s1 + $0x20] ss:$8 sps:$4 sm:$0xff]   ;;  %v154_v5 = vld [vmem:[%s224_s1 + $0x14] ss:$8 sps:$4 sm:$0xff]   ;;  %v156_v6 = vld [vmem:[%s224_s1 + $0x10] ss:$8 sps:$4 sm:$0xff]  }
   0x3   :  { %95 = vmatpush1.bf16.msra.mxu0 %v150_v2  ;;  %v157_v7 = vld [vmem:[%s224_s1 + $0x4] ss:$8 sps:$4 sm:$0xff]   ;;  %v159_v8 = vld [vmem:[%s224_s1] ss:$8 sps:$4 sm:$0xff]   ;;  %v28_v11 = vshrl.u32 %v27_v10, 7 }
   0x4   :  { %96 = vmatprep.subr.bf16.mxu0 %v151_v3  ;;  %v160_v9 = vld [vmem:[%s225_s0] sm:$0xff]  }
   0x5   :  { %v29_v12 = vsub.s32 0, %v28_v11  ;;  %v25_v13 = vld [vmem:[%s226_s2] sm:$0x3]  ;;  %v33_v14 = vsub.s32 1, %v28_v11 }
   0x7   :  { %97 = vmatpush1.bf16.msra.mxu0 %v153_v4  ;;  %v30_v15 = vrot.slane %v25_v13, %v29_v12  ;;  %v34_v16 = vrot.slane %v25_v13, %v33_v14 }
   0x8   :  { %98 = vmatprep.subr.bf16.mxu0 %v154_v5 }
   0xb   :  { %99 = vmatpush1.bf16.msra.mxu0 %v156_v6 }
   0xc   :  { %100 = vmatprep.subr.bf16.mxu0 %v157_v7 }
   0xf   :  { %101 = vmatpush1.bf16.msra.mxu0 %v159_v8 }
  0x12   :  { %146 = vmatmul.mubr.msk.bf16.vlgmr.msra.gmra.mxu0 %vm82_vm0, %v160_v9 }
  0xd2   :  { %v120_v17 = vpop.f32.mrf.mxu0 }
  0xd3   :  { %v121_v18 = vadd.f32 %v120_v17, %v30_v15 }
  0xd4   :  { %v122_v19 = vpop.f32.mrf.mxu0 }
  0xd5   :  { %129 = vst [vmem:[%s227_s3] sm:$0xff] %v121_v18  ;;  %v123_v20 = vadd.f32 %v122_v19, %v34_v16 }
  0xd6   :  { %v124_v21 = vpop.f32.mrf.mxu0 }
  0xd7   :  { %130 = vst [vmem:[%s227_s3 + $0x8] sm:$0xff] %v123_v20  ;;  %v125_v22 = vadd.f32 %v124_v21, %v30_v15 }
  0xd8   :  { %v126_v23 = vpop.f32.mrf.mxu0 }
  0xd9   :  { %131 = vst [vmem:[%s227_s3 + $0x10] sm:$0xff] %v125_v22  ;;  %v127_v24 = vadd.f32 %v126_v23, %v34_v16 }
  0xdb   :  { %132 = vst [vmem:[%s227_s3 + $0x18] sm:$0xff] %v127_v24 }

// kernel: bidaf_forward.40
= control target key start
LH: loop header
LB: loop body
LE: loop exit
PB: predicated region body
PF: predicated region fallthrough
CT: control target
= control target key end

     0   :  { %s717_s18 = smov 0   ;;  %s774_s0 = inlined_call_operand.vmem [shape: f32[8,2,256], index: 0, kind: input, shape index: {}, may-alias: {0,1}]   ;;  %s775_s1 = inlined_call_operand.vmem [shape: f32[8,2,256], index: 1, kind: input, shape index: {}, may-alias: {0,1}]   ;;  %s776_s2 = inlined_call_operand.vmem [shape: bf16[32,128], index: 2, kind: input, shape index: {}]   ;;  %s777_s3 = inlined_call_operand.vmem [shape: bf16[32,128], index: 3, kind: input, shape index: {}]   ;;  %s778_s4 = inlined_call_operand.vmem [shape: f32[8,2,32], index: 4, kind: output, shape index: {0}]   ;;  %s779_s5 = inlined_call_operand.vmem [shape: f32[8,2,32], index: 5, kind: output, shape index: {1}]  }
   0x1 LB: > { %s592_s19 = sadd.s32 4294967295, %s679_s18   ;;  %p596_p0 = scmp.ge.s32.totalorder %s679_s18, 1  ;;  %s679_s18 = sphi %s717_s18, %s16_s18  }
   0x2   : > { %p207_p1 = scmp.lt.s32.totalorder %s679_s18, 9 }
   0x4   : > { %p208_p2 = pnand %p596_p0, %p207_p1 }
   0x5   : > { %p246_p3 = scmp.lt.s32.totalorder (!%p208_p2), %s592_s19, 7  ;;  %s251_s20 = ssub.s32 (!%p208_p2), 7, %s592_s19 }
   0x6   : > { %211 = sbr.rel (%p208_p2) target bundleno = 727 (0x2d7), region = 36  ;;  %p252_p4 = scmp.lt.s32.totalorder (!%p208_p2), %s251_s20, 7 }
   0x7   : > { %p603_p5 = scmp.ne.s32.totalorder (!%p208_p2), %s592_s19, 0 }
   0xb   : > { %s247_s21 = scalar_select %p246_p3, %s592_s19, 7 }
   0xc   : > { %s781_s20 = smov (!%p252_p4, %s251_s20), 7 }
   0xd   : > { %s615_s22 = sshll.u32 %s247_s21, 2  ;;  %s601_s23 = sshll.u32 %s247_s21, 1 }
   0xe   : > { %s728_s26 = scalar_lea.vmem %s774_s0, %s615_s22  ;;  %s616_s27 = sshll.u32 %s781_s20, 2 }
   0xf   : > { %s733_s30 = scalar_lea.vmem %s775_s1, %s616_s27  ;;  %s738_s8 = scalar_lea.vmem %s778_s4, %s601_s23 }
  0x10   : > { %s602_s9 = sshll.u32 %s781_s20, 1  ;;  %273 = sbr.rel (%p603_p5) target bundleno = 24 (0x18), region = 40 }
  0x11   : > { %s743_s12 = scalar_lea.vmem %s779_s5, %s602_s9 }
  0x15   : > { %vm274_vm0 = vcmask 254976   ;;  %v681_v0 = vmov 0.0  }
  0x16   : > { %275 = vst.msk [vmem:[#allocation2] sm:$0x3] %vm274_vm0, %v681_v0  ;;  %276 = vst.msk [vmem:[#allocation3] sm:$0x3] %vm274_vm0, %v681_v0 }
  0x17   : > { %277 = vst.msk [vmem:[#allocation4] sm:$0x3] %vm274_vm0, %v681_v0  ;;  %278 = vst.msk [vmem:[#allocation5] sm:$0x3] %vm274_vm0, %v681_v0 }
  0x18 PF: > { %v653_v1 = vld [vmem:[%s776_s2 + $0x8] sm:$0xff]   ;;  %v682_v2 = vmov 0.0   ;;  %v655_v4 = vld [vmem:[%s776_s2] sm:$0xff]   ;;  %vm683_vm1 = vmmov 0   ;;  %s684_s22 = smov 32   ;;  %vm298_vm2 = vcmask 261120  }
  0x19   : > { %623 = vmatprep.subr.bf16.mxu0 %v682_v2  ;;  %631 = vmatprep.subr.bf16.mxu1 %v682_v2  ;;  %v654_v3 = vld [vmem:[%s777_s3 + $0x8] sm:$0xff]   ;;  %v656_v5 = vld [vmem:[%s777_s3] sm:$0xff]   ;;  %s685_s23 = smov 64   ;;  %s686_s24 = smov 96   ;;  %vm376_vm3 = vcmask 254976  }
  0x1a   : > { %624 = vmatpush3.bf16.msra.mxu0 %v653_v1  ;;  %627 = vmatprep.mubr.msk.bf16.mxu0 %vm683_vm1, %v682_v2  ;;  %v279_v12 = vld [vmem:[%s728_s26] sm:$0x3]  ;;  %v608_v13 = vld [vmem:[%s733_s30 + $0x2] sm:$0x3] }
  0x1b   : > { %632 = vmatpush3.bf16.msra.mxu1 %v654_v3  ;;  %625 = vmatprep.subr.bf16.mxu0 %v682_v2 }
  0x1c   : > { %633 = vmatprep.subr.bf16.mxu1 %v682_v2  ;;  %635 = vmatprep.mubr.msk.bf16.mxu1 %vm683_vm1, %v682_v2 }
  0x1d   : > { %v280_v6 = vld [vmem:[#allocation2] sm:$0x3]  ;;  %v350_v8 = vld [vmem:[#allocation3] sm:$0x3] }
  0x1e   : > { %v385_v7 = vld [vmem:[#allocation4] sm:$0x3]  ;;  %v281_v9 = vpack.c.bf16 %v280_v6, %v280_v6  ;;  %352 = vrot.lane.b32.xlu1 %v350_v8, %s684_s22  ;;  %626 = vmatpush3.bf16.msra.mxu0 %v655_v4  ;;  %v454_v11 = vld [vmem:[#allocation5] sm:$0x3] }
  0x1f   : > { %v386_v10 = vpack.c.bf16 %v385_v7, %v385_v7  ;;  %634 = vmatpush3.bf16.msra.mxu1 %v656_v5 }
  0x21   : > { %628 = vmatmul.mubr.msk.bf16.vlgmr.msra.gmra.mxu0 %vm298_vm2, %v281_v9 }
  0x22   : > { %456 = vrot.lane.b32.xlu1 %v454_v11, %s684_s22  ;;  %636 = vmatmul.mubr.msk.bf16.vlgmr.msra.gmra.mxu1 %vm298_vm2, %v386_v10 }
  0x90   : > { %v353_v38 = vpop.permute.xlu1 %352 }
  0x94   : > { %v457_v40 = vpop.permute.xlu1 %456 }
  0xe1   : > { %v336_v14 = vpop.f32.mrf.mxu0 }
  0xe2   : > { %v342_v15 = vadd.f32 %v336_v14, %v279_v12  ;;  %v440_v16 = vpop.f32.mrf.mxu1 }
  0xe3   : > { %v446_v17 = vadd.f32 %v608_v13, %v440_v16  ;;  %v629_v18 = vpop.f32.mrf.mxu0 }
  0xe4   : > { %657 = vtanh.f32 %v342_v15  ;;  %v637_v19 = vpop.f32.mrf.mxu1  ;;  %v607_v26 = vmul.f32 -1.442695, %v342_v15 }
  0xe5   : > { %v339_v20 = vpop.f32.mrf.mxu0  ;;  %659 = vtanh.f32 %v446_v17  ;;  %v612_v27 = vmul.f32 -1.442695, %v446_v17 }
  0xe6   : > { %v443_v21 = vpop.f32.mrf.mxu1  ;;  %661 = vpow2.f32 %v607_v26 }
  0xe7   : > { %v630_v22 = vpop.f32.mrf.mxu0  ;;  %663 = vpow2.f32 %v612_v27 }
  0xe8   : > { %v638_v23 = vpop.f32.mrf.mxu1 }
  0xf1   : > { %v658_v24 = vpop.eup %657 }
  0xf2   : > { %357 = vrot.lane.b32.xlu0 %v658_v24, %s685_s23  ;;  %v660_v25 = vpop.eup %659 }
  0xf3   : > { %v662_v28 = vpop.eup %661 }
  0xf4   : > { %v346_v29 = vadd.f32 1.0, %v662_v28  ;;  %v664_v30 = vpop.eup %663 }
  0xf5   : > { %v450_v31 = vadd.f32 1.0, %v664_v30 }
  0xf6   : > { %461 = vrot.lane.b32.xlu0 %v660_v25, %s685_s23  ;;  %665 = vrcp.f32 %v346_v29 }
  0xf7   : > { %667 = vrcp.f32 %v450_v31 }
 0x103   : > { %v666_v32 = vpop.eup %665 }
 0x104   : > { %v668_v35 = vpop.eup %667  ;;  %v355_v39 = vmul.f32 %v666_v32, %v353_v38 }
 0x105   : > { %v459_v43 = vmul.f32 %v668_v35, %v457_v40 }
 0x164   : > { %v358_v33 = vpop.permute.xlu0 %357 }
 0x165   : > { %v360_v34 = vmul.f32 %v666_v32, %v358_v33 }
 0x167   : > { %362 = vrot.lane.b32.xlu0 %v360_v34, %s684_s22 }
 0x168   : > { %v462_v36 = vpop.permute.xlu0 %461 }
 0x169   : > { %v464_v37 = vmul.f32 %v668_v35, %v462_v36 }
 0x16b   : > { %466 = vrot.lane.b32.xlu1 %v464_v37, %s684_s22 }
 0x1d9   : > { %v363_v41 = vpop.permute.xlu0 %362 }
 0x1da   : > { %v365_v42 = vadd.f32 %v363_v41, %v355_v39 }
 0x1dc   : > { %669 = vtanh.f32 %v365_v42 }
 0x1dd   : > { %v467_v44 = vpop.permute.xlu1 %466 }
 0x1de   : > { %v469_v45 = vadd.f32 %v467_v44, %v459_v43 }
 0x1e0   : > { %671 = vtanh.f32 %v469_v45 }
 0x1e9   : > { %v670_v46 = vpop.eup %669 }
 0x1ea   : > { %368 = vrot.lane.b32.xlu0 %v670_v46, %s685_s23 }
 0x1ed   : > { %v672_v47 = vpop.eup %671 }
 0x1ee   : > { %472 = vrot.lane.b32.xlu1 %v672_v47, %s685_s23  ;;  %373 = vrot.lane.b32.xlu0 %v365_v42, %s686_s24 }
 0x1f2   : > { %477 = vrot.lane.b32.xlu0 %v469_v45, %s686_s24 }
 0x25c   : > { %v369_v48 = vpop.permute.xlu0 %368 }
 0x25d   : > { %v371_v49 = vmul.f32 %v666_v32, %v369_v48 }
 0x25f   : > { %379 = vrot.lane.b32.xlu1 %v371_v49, %s684_s22 }
 0x260   : > { %v473_v50 = vpop.permute.xlu1 %472  ;;  %v374_v51 = vpop.permute.xlu0 %373 }
 0x261   : > { %v475_v52 = vmul.f32 %v668_v35, %v473_v50  ;;  %377 = vst.msk [vmem:[#allocation3] sm:$0x3] %vm376_vm3, %v374_v51 }
 0x263   : > { %482 = vrot.lane.b32.xlu1 %v475_v52, %s684_s22 }
 0x264   : > { %v478_v53 = vpop.permute.xlu0 %477 }
 0x265   : > { %480 = vst.msk [vmem:[#allocation5] sm:$0x3] %vm376_vm3, %v478_v53 }
 0x2d1   : > { %v380_v54 = vpop.permute.xlu1 %379 }
 0x2d2   : > { %382 = vst.msk [vmem:[#allocation2] sm:$0x3] %vm376_vm3, %v380_v54  ;;  %383 = vst.msk [vmem:[%s738_s8] sm:$0x3] %vm376_vm3, %v380_v54 }
 0x2d5   : > { %v483_v55 = vpop.permute.xlu1 %482 }
 0x2d6   : > { %485 = vst.msk [vmem:[#allocation4] sm:$0x3] %vm376_vm3, %v483_v55  ;;  %486 = vst.msk [vmem:[%s743_s12] sm:$0x3] %vm376_vm3, %v483_v55 }
 0x2d7 PF: > { %s16_s18 = sadd.s32 1, %s679_s18  }
 0x2d8   : > { %p13_p6 = scmp.ge.s32.totalorder %s16_s18, 10  }
 0x2da   :  { %15 = sbr.rel (!%p13_p6) target bundleno = 1 (0x1), region = 85 }

// kernel: bidaf_forward.41
= control target key start
LH: loop header
LB: loop body
LE: loop exit
PB: predicated region body
PF: predicated region fallthrough
CT: control target
= control target key end

     0   :  { %s938_s23 = smov 0   ;;  %s1077_s0 = inlined_call_operand.vmem [shape: f32[2,16,64], index: 0, kind: input, shape index: {}]   ;;  %s1078_s1 = inlined_call_operand.vmem [shape: f32[2,128,64], index: 1, kind: input, shape index: {}]   ;;  %s1079_s2 = inlined_call_operand.vmem [shape: f32[2,16,1], index: 2, kind: input, shape index: {}]   ;;  %s1080_s3 = inlined_call_operand.vmem [shape: f32[2,1,128], index: 3, kind: input, shape index: {}]   ;;  %s1081_s4 = inlined_call_operand.vmem [shape: f32[3,64], index: 4, kind: input, shape index: {}]   ;;  %s1082_s5 = inlined_call_operand.<no memory space> [shape: f32[1,1], index: 5, kind: input, shape index: {}]   ;;  %s1083_s6 = inlined_call_operand.vmem [shape: f32[2,16,256], index: 6, kind: output, shape index: {}]  }
   0x1   :  { %v11_v0 = vstv %s1082_s5 }
   0x2   :  { %12 = vst [vmem:[#allocation2] sm:$0x1] %v11_v0 }
   0x3 LB: > { %s761_s24 = sadd.s32 4294967295, %s894_s23   ;;  %p765_p0 = scmp.ge.s32.totalorder %s894_s23, 1  ;;  %s894_s23 = sphi %s938_s23, %s18_s23  }
   0x4   : > { %p242_p1 = scmp.lt.s32.totalorder %s894_s23, 3 }
   0x6   : > { %p243_p2 = pnand %p765_p0, %p242_p1 }
   0x7   : > { %p285_p3 = scmp.lt.s32.totalorder (!%p243_p2), %s761_s24, 1 }
   0x8   : > { %246 = sbr.rel (%p243_p2) target bundleno = 1119 (0x45f), region = 44 }
   0xd   : > { %v896_v1 = vmov 0.0   ;;  %vm897_vm0 = vmmov 0   ;;  %s1085_s24 = smov (!%p285_p3, %s761_s24), 1  ;;  %v898_v2 = vmov 0   ;;  %v778_v3 = vld [vmem:[#allocation2] ss:$0 sm:$0xff]  ;;  %v452_v50 = vlaneseq }
   0xe   : > { %808 = vmatprep.subr.bf16.mxu0 %v896_v1  ;;  %824 = vmatprep.mubr.msk.bf16.mxu0 %vm897_vm0, %v896_v1  ;;  %s783_s5 = sshll.u32 %s1085_s24, 7  ;;  %vm348_vm1 = vcmask 523264   ;;  %s782_s28 = sshll.u32 %s1085_s24, 4  ;;  %v774_v10 = vld [vmem:[%s1081_s4] ss:$0 sm:$0xff]  ;;  %vm599_vm8 = vcmask 130048  }
   0xf   : > { %872 = vset.pattern.permute.xlu1 %v898_v2  ;;  %873 = vset.pattern.permute.xlu0 %v898_v2  ;;  %s960_s27 = scalar_lea.vmem %s1078_s1, %s783_s5  ;;  %s289_s7 = scalar_lea.vmem %s1077_s0, %s782_s28  ;;  %v775_v42 = vld [vmem:[%s1081_s4 + $0x2] ss:$0 sm:$0xff]  ;;  %v776_v45 = vld [vmem:[%s1081_s4 + $0x1] ss:$0 sm:$0xff]  ;;  %v453_v52 = vshrl.u32 %v452_v50, 7  ;;  %vm654_vm9 = vcmask 1048064  }
  0x10   : > { %445 = vperm.xlu1 %872, %v778_v3   ;;  %828 = vmatprep.subr.bf16.mxu1 %v896_v1  ;;  %v325_v4 = vld [vmem:[%s960_s27 + $0x70] sm:$0xff]  ;;  %v326_v5 = vld [vmem:[%s960_s27 + $0x78] sm:$0xff]  ;;  %v323_v7 = vld [vmem:[%s960_s27 + $0x60] sm:$0xff]  ;;  %s302_s16 = scalar_lea.vmem %s1080_s3, %s1085_s24  ;;  %s299_s19 = scalar_lea.vmem %s1079_s2, %s782_s28 }
  0x11   : > { %844 = vmatprep.mubr.msk.bf16.mxu1 %vm897_vm0, %v896_v1  ;;  %v341_v6 = vpack.c.bf16 %v326_v5, %v325_v4  ;;  %v324_v8 = vld [vmem:[%s960_s27 + $0x68] sm:$0xff]  ;;  %v321_v12 = vld [vmem:[%s960_s27 + $0x50] sm:$0xff]  ;;  %v322_v13 = vld [vmem:[%s960_s27 + $0x58] sm:$0xff]  ;;  %v454_v53 = vsub.s32 0, %v453_v52  ;;  %s785_s20 = sshll.u32 %s1085_s24, 5  ;;  %s899_s24 = smov 64  }
  0x12   : > { %v340_v11 = vpack.c.bf16 %v324_v8, %v323_v7  ;;  %v980_v14 = vld [vmem:[%s289_s7] sm:$0xff]  ;;  %v982_v15 = vld [vmem:[%s289_s7 + $0x8] sm:$0xff]  ;;  %v339_v19 = vpack.c.bf16 %v322_v13, %v321_v12  ;;  %v317_v25 = vld [vmem:[%s960_s27 + $0x30] sm:$0xff]  ;;  %s1043_s5 = scalar_lea.vmem %s1083_s6, %s785_s20 }
  0x13   : > { %v393_v9 = vsel %vm348_vm1, %v341_v6, 0  ;;  %829 = vmatpush3.bf16.msra.mxu1 %v341_v6  ;;  %v346_v16 = vmul.f32 %v774_v10, %v980_v14  ;;  %v347_v17 = vmul.f32 %v774_v10, %v982_v15  ;;  %v319_v21 = vld [vmem:[%s960_s27 + $0x40] sm:$0xff]  ;;  %v320_v22 = vld [vmem:[%s960_s27 + $0x48] sm:$0xff]  ;;  %v318_v26 = vld [vmem:[%s960_s27 + $0x38] sm:$0xff]  ;;  %v359_v43 = vmul.f32 %v775_v42, %v980_v14  ;;  %644 = vst.msk [vmem:[%s1043_s5] sm:$0xff] %vm348_vm1, %v980_v14 }
  0x14   : > { %809 = vmatpush3.bf16.xpose.msra.mxu0 %v393_v9  ;;  %830 = vmatprep.subr.bf16.mxu1 %v896_v1  ;;  %v390_v18 = vsel %vm348_vm1, %v340_v11, 0  ;;  %v338_v24 = vpack.c.bf16 %v320_v22, %v319_v21  ;;  %v387_v27 = vsel %vm348_vm1, %v339_v19, 0  ;;  %v337_v28 = vpack.c.bf16 %v318_v26, %v317_v25  ;;  %v315_v29 = vld [vmem:[%s960_s27 + $0x20] sm:$0xff]  ;;  %v316_v30 = vld [vmem:[%s960_s27 + $0x28] sm:$0xff]  ;;  %v313_v32 = vld [vmem:[%s960_s27 + $0x10] sm:$0xff]  ;;  %645 = vst.msk [vmem:[%s1043_s5 + $0x10] sm:$0xff] %vm348_vm1, %v982_v15 }
  0x15   : > { %810 = vmatprep.subr.bf16.mxu0 %v896_v1  ;;  %v349_v20 = vsel %vm348_vm1, %v346_v16, 0.0  ;;  %v352_v23 = vsel %vm348_vm1, %v347_v17, 0.0  ;;  %v336_v31 = vpack.c.bf16 %v316_v30, %v315_v29  ;;  %v314_v33 = vld [vmem:[%s960_s27 + $0x18] sm:$0xff]  ;;  %v311_v36 = vld [vmem:[%s960_s27] sm:$0xff]  ;;  %v312_v37 = vld [vmem:[%s960_s27 + $0x8] sm:$0xff]  ;;  %v360_v44 = vmul.f32 %v775_v42, %v982_v15 }
  0x16   : > { %350 = vadd.xlane.f32.xlu0 %v349_v20  ;;  %v384_v34 = vsel %vm348_vm1, %v338_v24, 0  ;;  %v335_v35 = vpack.c.bf16 %v314_v33, %v313_v32  ;;  %v334_v38 = vpack.c.bf16 %v312_v37, %v311_v36  ;;  %v381_v39 = vsel %vm348_vm1, %v337_v28, 0  ;;  %v329_v51 = vld [vmem:[%s302_s16] sm:$0x1]  ;;  %v328_v7 = vld [vmem:[%s299_s19 + $0x8] sm:$0xff] }
  0x17   : > { %831 = vmatpush3.bf16.msra.mxu1 %v340_v11  ;;  %v378_v40 = vsel %vm348_vm1, %v336_v31, 0  ;;  %v365_v47 = vadd.f32 %v776_v45, %v359_v43  ;;  %v366_v48 = vadd.f32 %v776_v45, %v360_v44  ;;  %vm450_vm2 = vcmp.gt.f32.partialorder %v329_v51, 0.0  ;;  %v327_v9 = vld [vmem:[%s299_s19] sm:$0xff] }
  0x18   : > { %832 = vmatprep.subr.bf16.mxu1 %v896_v1  ;;  %v375_v41 = vsel %vm348_vm1, %v335_v35, 0  ;;  %v372_v46 = vsel %vm348_vm1, %v334_v38, 0  ;;  %v451_v54 = vsel %vm450_vm2, 1, %v898_v2  ;;  %vm478_vm4 = vcmp.gt.f32.partialorder %v328_v7, 0.0 }
  0x19   : > { %v367_v49 = vpack.c.bf16 %v366_v48, %v365_v47  ;;  %v455_v56 = vrot.slane %v451_v54, %v454_v53  ;;  %v480_v8 = vsel %vm478_vm4, 1, %v898_v2  ;;  %vm477_vm5 = vcmp.gt.f32.partialorder %v327_v9, 0.0 }
  0x1a   : > { %353 = vadd.xlane.f32.xlu0 %v352_v23  ;;  %v479_v10 = vsel %vm477_vm5, 1, %v898_v2 }
  0x1b   : > { %833 = vmatpush3.bf16.msra.mxu1 %v339_v19  ;;  %vm456_vm3 = vcmp.eq.s32.totalorder %v455_v56, 1 }
  0x1c   : > { %811 = vmatpush3.bf16.xpose.msra.mxu0 %v390_v18  ;;  %834 = vmatprep.subr.bf16.mxu1 %v896_v1 }
  0x1d   : > { %812 = vmatprep.subr.bf16.mxu0 %v896_v1 }
  0x1f   : > { %835 = vmatpush3.bf16.msra.mxu1 %v338_v24 }
  0x20   : > { %836 = vmatprep.subr.bf16.mxu1 %v896_v1 }
  0x23   : > { %837 = vmatpush3.bf16.msra.mxu1 %v337_v28 }
  0x24   : > { %813 = vmatpush3.bf16.xpose.msra.mxu0 %v387_v27  ;;  %838 = vmatprep.subr.bf16.mxu1 %v896_v1 }
  0x25   : > { %814 = vmatprep.subr.bf16.mxu0 %v896_v1 }
  0x27   : > { %839 = vmatpush3.bf16.msra.mxu1 %v336_v31 }
  0x28   : > { %840 = vmatprep.subr.bf16.mxu1 %v896_v1 }
  0x2b   : > { %841 = vmatpush3.bf16.msra.mxu1 %v335_v35 }
  0x2c   : > { %815 = vmatpush3.bf16.xpose.msra.mxu0 %v384_v34  ;;  %842 = vmatprep.subr.bf16.mxu1 %v896_v1 }
  0x2d   : > { %816 = vmatprep.subr.bf16.mxu0 %v896_v1 }
  0x2f   : > { %843 = vmatpush3.bf16.msra.mxu1 %v334_v38 }
  0x30   : > { %848 = vmatprep.subr.bf16.mxu1 %v896_v1 }
  0x34   : > { %817 = vmatpush3.bf16.xpose.msra.mxu0 %v381_v39 }
  0x35   : > { %818 = vmatprep.subr.bf16.mxu0 %v896_v1 }
  0x3c   : > { %819 = vmatpush3.bf16.xpose.msra.mxu0 %v378_v40 }
  0x3d   : > { %820 = vmatprep.subr.bf16.mxu0 %v896_v1 }
  0x44   : > { %821 = vmatpush3.bf16.xpose.msra.mxu0 %v375_v41 }
  0x45   : > { %822 = vmatprep.subr.bf16.mxu0 %v896_v1 }
  0x4c   : > { %823 = vmatpush3.bf16.xpose.msra.mxu0 %v372_v46 }
  0x53   : > { %825 = vmatmul.mubr.msk.bf16.vlgmr.msra.gmra.mxu0 %vm348_vm1, %v367_v49 }
  0x8b   : > { %v446_v58 = vpop.permute.xlu1 %445 }
  0x9f   : > { %v351_v55 = vpop.xlane.xlu0 %350 }
  0xa3   : > { %v354_v61 = vpop.xlane.xlu0 %353 }
 0x113   : > { %v429_v57 = vpop.f32.mrf.mxu0 }
 0x114   : > { %v436_v59 = vadd.f32 %v429_v57, %v351_v55  ;;  %v333_v55 = vpack.c.bf16 %v982_v15, %v980_v14 }
 0x115   : > { %v826_v60 = vpop.f32.mrf.mxu0 }
 0x116   : > { %v448_v62 = vadd.f32 %v446_v58, %v436_v59 }
 0x117   : > { %v432_v63 = vpop.f32.mrf.mxu0 }
 0x118   : > { %v437_v0 = vadd.f32 %v432_v63, %v354_v61  ;;  %v457_v3 = vsel %vm456_vm3, %v448_v62, -1e+30 }
 0x119   : > { %v827_v4 = vpop.f32.mrf.mxu0  ;;  %459 = vmax.xlane.f32.xlu1 %v457_v3 }
 0x11a   : > { %v449_v5 = vadd.f32 %v446_v58, %v437_v0 }
 0x11c   : > { %v458_v6 = vsel %vm456_vm3, %v449_v5, -1e+30 }
 0x11d   : > { %461 = vmax.xlane.f32.xlu0 %v458_v6 }
 0x12a   : > { %485 = vperm.xlu1 %872, %v480_v8  }
 0x133   : > { %482 = vperm.xlu0 %873, %v479_v10  }
 0x1a2   : > { %v460_v11 = vpop.xlane.xlu1 %459 }
 0x1a3   : > { %v463_v12 = vsub.f32 %v457_v3, %v460_v11 }
 0x1a5   : > { %v465_v13 = vmul.f32 1.442695, %v463_v12 }
 0x1a6   : > { %v462_v16 = vpop.xlane.xlu0 %461  ;;  %v486_v21 = vpop.permute.xlu1 %485 }
 0x1a7   : > { %874 = vpow2.f32 %v465_v13  ;;  %v464_v17 = vsub.f32 %v458_v6, %v462_v16  ;;  %vm488_vm7 = vcmp.eq.s32.totalorder %v486_v21, 1 }
 0x1a8   : > { %v490_v23 = vsel %vm488_vm7, %v449_v5, -1e+30 }
 0x1a9   : > { %v467_v18 = vmul.f32 1.442695, %v464_v17 }
 0x1ab   : > { %876 = vpow2.f32 %v467_v18 }
 0x1ae   : > { %v483_v2 = vpop.permute.xlu0 %482 }
 0x1af   : > { %vm487_vm6 = vcmp.eq.s32.totalorder %v483_v2, 1 }
 0x1b0   : > { %v489_v22 = vsel %vm487_vm6, %v448_v62, -1e+30 }
 0x1b1   : > { %v491_v24 = vmax.f32 %v489_v22, %v490_v23 }
 0x1b3   : > { %v492_v25 = vrot.slane %v491_v24, 4 }
 0x1b4   : > { %v875_v19 = vpop.eup %874 }
 0x1b5   : > { %469 = vadd.xlane.f32.xlu0 %v875_v19  ;;  %v493_v26 = vmax.f32 %v491_v24, %v492_v25 }
 0x1b7   : > { %v494_v27 = vrot.slane %v493_v26, 2 }
 0x1b8   : > { %v877_v20 = vpop.eup %876 }
 0x1b9   : > { %471 = vadd.xlane.f32.xlu1 %v877_v20  ;;  %v495_v28 = vmax.f32 %v493_v26, %v494_v27 }
 0x1bb   : > { %v496_v29 = vrot.slane %v495_v28, 1 }
 0x1bd   : > { %v497_v30 = vmax.f32 %v495_v28, %v496_v29 }
 0x1bf   : > { %v498_v31 = vsub.f32 %v489_v22, %v497_v30  ;;  %v499_v32 = vsub.f32 %v490_v23, %v497_v30 }
 0x1c1   : > { %v500_v33 = vmul.f32 1.442695, %v498_v31  ;;  %v502_v34 = vmul.f32 1.442695, %v499_v32 }
 0x1c3   : > { %878 = vpow2.f32 %v500_v33 }
 0x1c4   : > { %880 = vpow2.f32 %v502_v34 }
 0x1d0   : > { %v879_v35 = vpop.eup %878 }
 0x1d1   : > { %v881_v36 = vpop.eup %880 }
 0x1d2   : > { %v504_v37 = vadd.f32 %v881_v36, %v879_v35 }
 0x1d4   : > { %v505_v38 = vrot.slane %v504_v37, 4 }
 0x1d6   : > { %v506_v39 = vadd.f32 %v505_v38, %v504_v37 }
 0x1d8   : > { %v507_v40 = vrot.slane %v506_v39, 2 }
 0x1da   : > { %v508_v41 = vadd.f32 %v507_v40, %v506_v39 }
 0x1dc   : > { %v509_v42 = vrot.slane %v508_v41, 1 }
 0x1de   : > { %v510_v43 = vadd.f32 %v509_v42, %v508_v41 }
 0x1e0   : > { %882 = vrcp.f32 %v510_v43 }
 0x1ed   : > { %v883_v46 = vpop.eup %882 }
 0x1ee   : > { %v512_v49 = vmul.f32 %v883_v46, %v879_v35  ;;  %v513_v50 = vmul.f32 %v883_v46, %v881_v36 }
 0x1f0   : > { %v556_v54 = vpack.c.bf16 %v513_v50, %v512_v49 }
 0x23e   : > { %v470_v44 = vpop.xlane.xlu0 %469 }
 0x23f   : > { %884 = vrcp.f32 %v470_v44 }
 0x242   : > { %v472_v45 = vpop.xlane.xlu1 %471 }
 0x243   : > { %886 = vrcp.f32 %v472_v45 }
 0x24c   : > { %v885_v47 = vpop.eup %884 }
 0x24d   : > { %v475_v51 = vmul.f32 %v885_v47, %v875_v19 }
 0x250   : > { %v887_v48 = vpop.eup %886 }
 0x251   : > { %v476_v52 = vmul.f32 %v887_v48, %v877_v20 }
 0x253   : > { %v514_v53 = vpack.c.bf16 %v476_v52, %v475_v51 }
 0x255   : > { %845 = vmatmul.mubr.bf16.vlgmr.msra.gmra.mxu1 %v514_v53 }
 0x256   : > { %849 = vmatpush3.bf16.xpose.msra.mxu1 %v556_v54  ;;  %850 = vmatprep.mubr.msk.bf16.mxu1 %vm897_vm0, %v896_v1 }
 0x257   : > { %854 = vmatprep.subr.bf16.mxu1 %v896_v1 }
 0x25d   : > { %851 = vmatmul.mubr.bf16.vlgmr.msra.gmra.mxu1 %v514_v53 }
 0x25e   : > { %856 = vmatprep.mubr.msk.bf16.mxu1 %vm897_vm0, %v896_v1  ;;  %855 = vmatpush3.bf16.msra.mxu1 %v333_v55 }
 0x315   : > { %v549_v56 = vpop.f32.mrf.mxu1 }
 0x316   : > { %v657_v57 = vmul.f32 %v549_v56, %v980_v14  ;;  %648 = vrot.lane.b32.xlu0 %v549_v56, %s899_s24 }
 0x317   : > { %v846_v58 = vpop.f32.mrf.mxu1 }
 0x318   : > { %659 = vst.msk [vmem:[%s1043_s5 + $0x8] sm:$0xff] %vm348_vm1, %v657_v57 }
 0x319   : > { %v552_v59 = vpop.f32.mrf.mxu1 }
 0x31a   : > { %v658_v60 = vmul.f32 %v552_v59, %v982_v15  ;;  %650 = vrot.lane.b32.xlu1 %v552_v59, %s899_s24 }
 0x31b   : > { %v847_v61 = vpop.f32.mrf.mxu1 }
 0x31c   : > { %660 = vst.msk [vmem:[%s1043_s5 + $0x18] sm:$0xff] %vm348_vm1, %v658_v60 }
 0x31d   : > { %v591_v1 = vpop.f32.mrf.mxu1 }
 0x31f   : > { %v852_v62 = vpop.f32.mrf.mxu1 }
 0x321   : > { %v594_v63 = vpop.f32.mrf.mxu1 }
 0x322   : > { %v598_v0 = vpack.c.bf16 %v594_v63, %v591_v1 }
 0x323   : > { %v853_v3 = vpop.f32.mrf.mxu1 }
 0x324   : > { %857 = vmatmul.mubr.msk.bf16.vlgmr.msra.gmra.mxu1 %vm599_vm8, %v598_v0 }
 0x388   : > { %v649_v4 = vpop.permute.xlu0 %648 }
 0x389   : > { %655 = vst.msk [vmem:[%s1043_s5] sm:$0xff] %vm654_vm9, %v649_v4 }
 0x38c   : > { %v651_v5 = vpop.permute.xlu1 %650 }
 0x38d   : > { %656 = vst.msk [vmem:[%s1043_s5 + $0x10] sm:$0xff] %vm654_vm9, %v651_v5 }
 0x3e4   : > { %v637_v6 = vpop.f32.mrf.mxu1 }
 0x3e5   : > { %v661_v7 = vmul.f32 %v637_v6, %v980_v14 }
 0x3e6   : > { %v858_v8 = vpop.f32.mrf.mxu1 }
 0x3e7   : > { %665 = vrot.lane.b32.xlu0 %v661_v7, %s899_s24 }
 0x3e8   : > { %v640_v9 = vpop.f32.mrf.mxu1 }
 0x3e9   : > { %v662_v10 = vmul.f32 %v640_v9, %v982_v15 }
 0x3ea   : > { %v859_v11 = vpop.f32.mrf.mxu1 }
 0x3eb   : > { %667 = vrot.lane.b32.xlu1 %v662_v10, %s899_s24 }
 0x459   : > { %v666_v12 = vpop.permute.xlu0 %665 }
 0x45a   : > { %671 = vst.msk [vmem:[%s1043_s5 + $0x8] sm:$0xff] %vm654_vm9, %v666_v12 }
 0x45d   : > { %v668_v13 = vpop.permute.xlu1 %667 }
 0x45e   : > { %672 = vst.msk [vmem:[%s1043_s5 + $0x18] sm:$0xff] %vm654_vm9, %v668_v13 }
 0x45f PF: > { %s18_s23 = sadd.s32 1, %s894_s23  }
 0x460   : > { %p15_p4 = scmp.ge.s32.totalorder %s18_s23, 4  }
 0x462   :  { %17 = sbr.rel (!%p15_p4) target bundleno = 3 (0x3), region = 83 }

// kernel: bidaf_forward.42
= control target key start
LH: loop header
LB: loop body
LE: loop exit
PB: predicated region body
PF: predicated region fallthrough
CT: control target
= control target key end

     0   :  { %v52_v36 = vlaneseq  ;;  %s584_s1 = inlined_call_operand.vmem [shape: bf16[256,256], index: 1, kind: input, shape index: {}]   ;;  %s585_s0 = inlined_call_operand.vmem [shape: bf16[32,256], index: 0, kind: input, shape index: {}]   ;;  %s586_s2 = inlined_call_operand.vmem [shape: f32[1,256], index: 2, kind: input, shape index: {}]   ;;  %s587_s3 = inlined_call_operand.vmem [shape: f32[32,256], index: 3, kind: output, shape index: {}]  }
   0x1   :  { %v375_v0 = vld [vmem:[%s584_s1 + $0x74] ss:$8 sps:$4 sm:$0xff]   ;;  %v377_v1 = vld [vmem:[%s584_s1 + $0x70] ss:$8 sps:$4 sm:$0xff]   ;;  %v378_v2 = vld [vmem:[%s584_s1 + $0x64] ss:$8 sps:$4 sm:$0xff]  }
   0x2   :  { %242 = vmatprep.subr.bf16.mxu0 %v375_v0  ;;  %343 = vmatprep.subr.bf16.mxu1 %v375_v0  ;;  %v380_v3 = vld [vmem:[%s584_s1 + $0x60] ss:$8 sps:$4 sm:$0xff]   ;;  %v381_v4 = vld [vmem:[%s584_s1 + $0x54] ss:$8 sps:$4 sm:$0xff]   ;;  %v383_v5 = vld [vmem:[%s584_s1 + $0x50] ss:$8 sps:$4 sm:$0xff]  }
   0x3   :  { %243 = vmatpush1.bf16.msra.mxu0 %v377_v1  ;;  %359 = vmatpush1.bf16.msra.mxu1 %v377_v1  ;;  %v384_v6 = vld [vmem:[%s584_s1 + $0x44] ss:$8 sps:$4 sm:$0xff]   ;;  %v386_v7 = vld [vmem:[%s584_s1 + $0x40] ss:$8 sps:$4 sm:$0xff]   ;;  %v387_v8 = vld [vmem:[%s584_s1 + $0x34] ss:$8 sps:$4 sm:$0xff]  }
   0x4   :  { %244 = vmatprep.subr.bf16.mxu0 %v378_v2  ;;  %344 = vmatprep.subr.bf16.mxu1 %v378_v2  ;;  %v389_v9 = vld [vmem:[%s584_s1 + $0x30] ss:$8 sps:$4 sm:$0xff]   ;;  %v390_v10 = vld [vmem:[%s584_s1 + $0x24] ss:$8 sps:$4 sm:$0xff]   ;;  %v392_v11 = vld [vmem:[%s584_s1 + $0x20] ss:$8 sps:$4 sm:$0xff]  }
   0x5   :  { %v393_v12 = vld [vmem:[%s584_s1 + $0x14] ss:$8 sps:$4 sm:$0xff]   ;;  %v425_v13 = vld [vmem:[%s585_s0 + $0x4] ss:$8 sps:$4 sm:$0xff]   ;;  %v395_v14 = vld [vmem:[%s584_s1 + $0x10] ss:$8 sps:$4 sm:$0xff]  }
   0x6   :  { %v428_v15 = vld [vmem:[%s585_s0 + $0x14] ss:$8 sps:$4 sm:$0xff]   ;;  %v396_v16 = vld [vmem:[%s584_s1 + $0x4] ss:$8 sps:$4 sm:$0xff]   ;;  %274 = vmatprep.mubr.bf16.mxu0 %v425_v13  ;;  %v398_v17 = vld [vmem:[%s584_s1] ss:$8 sps:$4 sm:$0xff]  }
   0x7   :  { %245 = vmatpush1.bf16.msra.mxu0 %v380_v3  ;;  %360 = vmatpush1.bf16.msra.mxu1 %v380_v3  ;;  %v399_v18 = vld [vmem:[%s584_s1 + $0xf4] ss:$8 sps:$4 sm:$0xff]   ;;  %v401_v19 = vld [vmem:[%s584_s1 + $0xf0] ss:$8 sps:$4 sm:$0xff]   ;;  %v402_v20 = vld [vmem:[%s584_s1 + $0xe4] ss:$8 sps:$4 sm:$0xff]  }
   0x8   :  { %246 = vmatprep.subr.bf16.mxu0 %v381_v4  ;;  %345 = vmatprep.subr.bf16.mxu1 %v381_v4  ;;  %v404_v21 = vld [vmem:[%s584_s1 + $0xe0] ss:$8 sps:$4 sm:$0xff]   ;;  %v405_v22 = vld [vmem:[%s584_s1 + $0xd4] ss:$8 sps:$4 sm:$0xff]   ;;  %v407_v23 = vld [vmem:[%s584_s1 + $0xd0] ss:$8 sps:$4 sm:$0xff]  }
   0x9   :  { %284 = vmatprep.mubr.bf16.mxu1 %v428_v15  ;;  %v408_v24 = vld [vmem:[%s584_s1 + $0xc4] ss:$8 sps:$4 sm:$0xff]   ;;  %v410_v25 = vld [vmem:[%s584_s1 + $0xc0] ss:$8 sps:$4 sm:$0xff]   ;;  %v411_v26 = vld [vmem:[%s584_s1 + $0xb4] ss:$8 sps:$4 sm:$0xff]  }
   0xa   :  { %v413_v27 = vld [vmem:[%s584_s1 + $0xb0] ss:$8 sps:$4 sm:$0xff]   ;;  %v414_v28 = vld [vmem:[%s584_s1 + $0xa4] ss:$8 sps:$4 sm:$0xff]   ;;  %v416_v29 = vld [vmem:[%s584_s1 + $0xa0] ss:$8 sps:$4 sm:$0xff]  }
   0xb   :  { %247 = vmatpush1.bf16.msra.mxu0 %v383_v5  ;;  %361 = vmatpush1.bf16.msra.mxu1 %v383_v5  ;;  %v417_v30 = vld [vmem:[%s584_s1 + $0x94] ss:$8 sps:$4 sm:$0xff]   ;;  %v419_v31 = vld [vmem:[%s584_s1 + $0x90] ss:$8 sps:$4 sm:$0xff]   ;;  %v420_v32 = vld [vmem:[%s584_s1 + $0x84] ss:$8 sps:$4 sm:$0xff]  }
   0xc   :  { %248 = vmatprep.subr.bf16.mxu0 %v384_v6  ;;  %346 = vmatprep.subr.bf16.mxu1 %v384_v6  ;;  %v422_v33 = vld [vmem:[%s584_s1 + $0x80] ss:$8 sps:$4 sm:$0xff]   ;;  %v426_v35 = vld [vmem:[%s585_s0 + $0x10] ss:$8 sps:$4 sm:$0xff]   ;;  %v53_v37 = vshrl.u32 %v52_v36, 7 }
   0xd   :  { %v423_v34 = vld [vmem:[%s585_s0] ss:$8 sps:$4 sm:$0xff]  }
   0xe   :  { %v54_v38 = vsub.s32 0, %v53_v37  ;;  %v50_v39 = vld [vmem:[%s586_s2] sm:$0x3]  ;;  %v58_v40 = vsub.s32 1, %v53_v37 }
   0xf   :  { %249 = vmatpush1.bf16.msra.mxu0 %v386_v7  ;;  %362 = vmatpush1.bf16.msra.mxu1 %v386_v7 }
  0x10   :  { %250 = vmatprep.subr.bf16.mxu0 %v387_v8  ;;  %347 = vmatprep.subr.bf16.mxu1 %v387_v8  ;;  %v55_v41 = vrot.slane %v50_v39, %v54_v38  ;;  %v59_v42 = vrot.slane %v50_v39, %v58_v40 }
  0x13   :  { %251 = vmatpush1.bf16.msra.mxu0 %v389_v9  ;;  %363 = vmatpush1.bf16.msra.mxu1 %v389_v9 }
  0x14   :  { %252 = vmatprep.subr.bf16.mxu0 %v390_v10  ;;  %348 = vmatprep.subr.bf16.mxu1 %v390_v10 }
  0x17   :  { %253 = vmatpush1.bf16.msra.mxu0 %v392_v11  ;;  %364 = vmatpush1.bf16.msra.mxu1 %v392_v11 }
  0x18   :  { %254 = vmatprep.subr.bf16.mxu0 %v393_v12  ;;  %349 = vmatprep.subr.bf16.mxu1 %v393_v12 }
  0x1b   :  { %255 = vmatpush1.bf16.msra.mxu0 %v395_v14  ;;  %365 = vmatpush1.bf16.msra.mxu1 %v395_v14 }
  0x1c   :  { %256 = vmatprep.subr.bf16.mxu0 %v396_v16  ;;  %350 = vmatprep.subr.bf16.mxu1 %v396_v16 }
  0x1f   :  { %257 = vmatpush1.bf16.msra.mxu0 %v398_v17  ;;  %366 = vmatpush1.bf16.msra.mxu1 %v398_v17 }
  0x20   :  { %258 = vmatprep.subr.bf16.mxu0 %v399_v18  ;;  %351 = vmatprep.subr.bf16.mxu1 %v399_v18 }
  0x23   :  { %259 = vmatpush2.bf16.msra.mxu0 %v401_v19  ;;  %367 = vmatpush2.bf16.msra.mxu1 %v401_v19 }
  0x24   :  { %260 = vmatprep.subr.bf16.mxu0 %v402_v20  ;;  %352 = vmatprep.subr.bf16.mxu1 %v402_v20 }
  0x27   :  { %261 = vmatpush2.bf16.msra.mxu0 %v404_v21  ;;  %368 = vmatpush2.bf16.msra.mxu1 %v404_v21 }
  0x28   :  { %262 = vmatprep.subr.bf16.mxu0 %v405_v22  ;;  %353 = vmatprep.subr.bf16.mxu1 %v405_v22 }
  0x2b   :  { %263 = vmatpush2.bf16.msra.mxu0 %v407_v23  ;;  %369 = vmatpush2.bf16.msra.mxu1 %v407_v23 }
  0x2c   :  { %264 = vmatprep.subr.bf16.mxu0 %v408_v24  ;;  %354 = vmatprep.subr.bf16.mxu1 %v408_v24 }
  0x2f   :  { %265 = vmatpush2.bf16.msra.mxu0 %v410_v25  ;;  %370 = vmatpush2.bf16.msra.mxu1 %v410_v25 }
  0x30   :  { %266 = vmatprep.subr.bf16.mxu0 %v411_v26  ;;  %355 = vmatprep.subr.bf16.mxu1 %v411_v26 }
  0x33   :  { %267 = vmatpush2.bf16.msra.mxu0 %v413_v27  ;;  %371 = vmatpush2.bf16.msra.mxu1 %v413_v27 }
  0x34   :  { %268 = vmatprep.subr.bf16.mxu0 %v414_v28  ;;  %356 = vmatprep.subr.bf16.mxu1 %v414_v28 }
  0x37   :  { %269 = vmatpush2.bf16.msra.mxu0 %v416_v29  ;;  %372 = vmatpush2.bf16.msra.mxu1 %v416_v29 }
  0x38   :  { %270 = vmatprep.subr.bf16.mxu0 %v417_v30  ;;  %357 = vmatprep.subr.bf16.mxu1 %v417_v30 }
  0x3b   :  { %271 = vmatpush2.bf16.msra.mxu0 %v419_v31  ;;  %373 = vmatpush2.bf16.msra.mxu1 %v419_v31 }
  0x3c   :  { %272 = vmatprep.subr.bf16.mxu0 %v420_v32  ;;  %358 = vmatprep.subr.bf16.mxu1 %v420_v32 }
  0x3f   :  { %273 = vmatpush2.bf16.msra.mxu0 %v422_v33  ;;  %374 = vmatpush2.bf16.msra.mxu1 %v422_v33 }
  0x42   :  { %275 = vmatmul.mubr.bf16.vlgmr.msra.gmra.mxu0 %v423_v34  ;;  %285 = vmatmul.mubr.bf16.vlgmr.msra.gmra.mxu1 %v426_v35 }
 0x102   :  { %v276_v43 = vpop.f32.mrf.mxu0  ;;  %v286_v44 = vpop.f32.mrf.mxu1 }
 0x103   :  { %v277_v45 = vadd.f32 %v276_v43, %v55_v41  ;;  %v287_v46 = vadd.f32 %v286_v44, %v55_v41 }
 0x104   :  { %v278_v47 = vpop.f32.mrf.mxu0  ;;  %v288_v48 = vpop.f32.mrf.mxu1 }
 0x105   :  { %295 = vst [vmem:[%s587_s3] sm:$0xff] %v277_v45  ;;  %299 = vst [vmem:[%s587_s3 + $0x20] sm:$0xff] %v287_v46  ;;  %v279_v49 = vadd.f32 %v278_v47, %v59_v42  ;;  %v289_v50 = vadd.f32 %v288_v48, %v59_v42 }
 0x106   :  { %v280_v51 = vpop.f32.mrf.mxu0  ;;  %v290_v52 = vpop.f32.mrf.mxu1 }
 0x107   :  { %296 = vst [vmem:[%s587_s3 + $0x8] sm:$0xff] %v279_v49  ;;  %300 = vst [vmem:[%s587_s3 + $0x28] sm:$0xff] %v289_v50  ;;  %v281_v53 = vadd.f32 %v280_v51, %v55_v41  ;;  %v291_v54 = vadd.f32 %v290_v52, %v55_v41 }
 0x108   :  { %v282_v55 = vpop.f32.mrf.mxu0  ;;  %v292_v56 = vpop.f32.mrf.mxu1 }
 0x109   :  { %297 = vst [vmem:[%s587_s3 + $0x10] sm:$0xff] %v281_v53  ;;  %301 = vst [vmem:[%s587_s3 + $0x30] sm:$0xff] %v291_v54  ;;  %v283_v57 = vadd.f32 %v282_v55, %v59_v42  ;;  %v293_v58 = vadd.f32 %v292_v56, %v59_v42 }
 0x10b   :  { %298 = vst [vmem:[%s587_s3 + $0x18] sm:$0xff] %v283_v57  ;;  %302 = vst [vmem:[%s587_s3 + $0x38] sm:$0xff] %v293_v58 }

// kernel: bidaf_forward.45
= control target key start
LH: loop header
LB: loop body
LE: loop exit
PB: predicated region body
PF: predicated region fallthrough
CT: control target
= control target key end

     0   :  { %v55_v36 = vlaneseq  ;;  %s640_s1 = inlined_call_operand.vmem [shape: bf16[256,256], index: 1, kind: input, shape index: {}]   ;;  %s641_s0 = inlined_call_operand.vmem [shape: bf16[32,256], index: 0, kind: input, shape index: {}]   ;;  %s642_s2 = inlined_call_operand.vmem [shape: f32[1,256], index: 2, kind: input, shape index: {}]   ;;  %s643_s3 = inlined_call_operand.vmem [shape: f32[32,256], index: 3, kind: input, shape index: {}]   ;;  %s644_s4 = inlined_call_operand.vmem [shape: f32[32,256], index: 4, kind: output, shape index: {}]  }
   0x1   :  { %v402_v0 = vld [vmem:[%s640_s1 + $0x74] ss:$8 sps:$4 sm:$0xff]   ;;  %v404_v1 = vld [vmem:[%s640_s1 + $0x70] ss:$8 sps:$4 sm:$0xff]   ;;  %v405_v2 = vld [vmem:[%s640_s1 + $0x64] ss:$8 sps:$4 sm:$0xff]  }
   0x2   :  { %245 = vmatprep.subr.bf16.mxu0 %v402_v0  ;;  %370 = vmatprep.subr.bf16.mxu1 %v402_v0  ;;  %v407_v3 = vld [vmem:[%s640_s1 + $0x60] ss:$8 sps:$4 sm:$0xff]   ;;  %v408_v4 = vld [vmem:[%s640_s1 + $0x54] ss:$8 sps:$4 sm:$0xff]   ;;  %v410_v5 = vld [vmem:[%s640_s1 + $0x50] ss:$8 sps:$4 sm:$0xff]  }
   0x3   :  { %246 = vmatpush1.bf16.msra.mxu0 %v404_v1  ;;  %386 = vmatpush1.bf16.msra.mxu1 %v404_v1  ;;  %v411_v6 = vld [vmem:[%s640_s1 + $0x44] ss:$8 sps:$4 sm:$0xff]   ;;  %v413_v7 = vld [vmem:[%s640_s1 + $0x40] ss:$8 sps:$4 sm:$0xff]   ;;  %v414_v8 = vld [vmem:[%s640_s1 + $0x34] ss:$8 sps:$4 sm:$0xff]  }
   0x4   :  { %247 = vmatprep.subr.bf16.mxu0 %v405_v2  ;;  %371 = vmatprep.subr.bf16.mxu1 %v405_v2  ;;  %v416_v9 = vld [vmem:[%s640_s1 + $0x30] ss:$8 sps:$4 sm:$0xff]   ;;  %v417_v10 = vld [vmem:[%s640_s1 + $0x24] ss:$8 sps:$4 sm:$0xff]   ;;  %v419_v11 = vld [vmem:[%s640_s1 + $0x20] ss:$8 sps:$4 sm:$0xff]  }
   0x5   :  { %v420_v12 = vld [vmem:[%s640_s1 + $0x14] ss:$8 sps:$4 sm:$0xff]   ;;  %v452_v13 = vld [vmem:[%s641_s0 + $0x4] ss:$8 sps:$4 sm:$0xff]   ;;  %v422_v14 = vld [vmem:[%s640_s1 + $0x10] ss:$8 sps:$4 sm:$0xff]  }
   0x6   :  { %v455_v15 = vld [vmem:[%s641_s0 + $0x14] ss:$8 sps:$4 sm:$0xff]   ;;  %v423_v16 = vld [vmem:[%s640_s1 + $0x4] ss:$8 sps:$4 sm:$0xff]   ;;  %277 = vmatprep.mubr.bf16.mxu0 %v452_v13  ;;  %v425_v17 = vld [vmem:[%s640_s1] ss:$8 sps:$4 sm:$0xff]  }
   0x7   :  { %248 = vmatpush1.bf16.msra.mxu0 %v407_v3  ;;  %387 = vmatpush1.bf16.msra.mxu1 %v407_v3  ;;  %v426_v18 = vld [vmem:[%s640_s1 + $0xf4] ss:$8 sps:$4 sm:$0xff]   ;;  %v428_v19 = vld [vmem:[%s640_s1 + $0xf0] ss:$8 sps:$4 sm:$0xff]   ;;  %v429_v20 = vld [vmem:[%s640_s1 + $0xe4] ss:$8 sps:$4 sm:$0xff]  }
   0x8   :  { %249 = vmatprep.subr.bf16.mxu0 %v408_v4  ;;  %372 = vmatprep.subr.bf16.mxu1 %v408_v4  ;;  %v431_v21 = vld [vmem:[%s640_s1 + $0xe0] ss:$8 sps:$4 sm:$0xff]   ;;  %v432_v22 = vld [vmem:[%s640_s1 + $0xd4] ss:$8 sps:$4 sm:$0xff]   ;;  %v434_v23 = vld [vmem:[%s640_s1 + $0xd0] ss:$8 sps:$4 sm:$0xff]  }
   0x9   :  { %287 = vmatprep.mubr.bf16.mxu1 %v455_v15  ;;  %v435_v24 = vld [vmem:[%s640_s1 + $0xc4] ss:$8 sps:$4 sm:$0xff]   ;;  %v437_v25 = vld [vmem:[%s640_s1 + $0xc0] ss:$8 sps:$4 sm:$0xff]   ;;  %v438_v26 = vld [vmem:[%s640_s1 + $0xb4] ss:$8 sps:$4 sm:$0xff]  }
   0xa   :  { %v440_v27 = vld [vmem:[%s640_s1 + $0xb0] ss:$8 sps:$4 sm:$0xff]   ;;  %v441_v28 = vld [vmem:[%s640_s1 + $0xa4] ss:$8 sps:$4 sm:$0xff]   ;;  %v443_v29 = vld [vmem:[%s640_s1 + $0xa0] ss:$8 sps:$4 sm:$0xff]  }
   0xb   :  { %250 = vmatpush1.bf16.msra.mxu0 %v410_v5  ;;  %388 = vmatpush1.bf16.msra.mxu1 %v410_v5  ;;  %v444_v30 = vld [vmem:[%s640_s1 + $0x94] ss:$8 sps:$4 sm:$0xff]   ;;  %v446_v31 = vld [vmem:[%s640_s1 + $0x90] ss:$8 sps:$4 sm:$0xff]   ;;  %v447_v32 = vld [vmem:[%s640_s1 + $0x84] ss:$8 sps:$4 sm:$0xff]  }
   0xc   :  { %251 = vmatprep.subr.bf16.mxu0 %v411_v6  ;;  %373 = vmatprep.subr.bf16.mxu1 %v411_v6  ;;  %v449_v33 = vld [vmem:[%s640_s1 + $0x80] ss:$8 sps:$4 sm:$0xff]   ;;  %v453_v35 = vld [vmem:[%s641_s0 + $0x10] ss:$8 sps:$4 sm:$0xff]   ;;  %v56_v37 = vshrl.u32 %v55_v36, 7 }
   0xd   :  { %v450_v34 = vld [vmem:[%s641_s0] ss:$8 sps:$4 sm:$0xff]   ;;  %v308_v5 = vld [vmem:[%s643_s3 + $0x10] sm:$0xff] }
   0xe   :  { %v57_v38 = vsub.s32 0, %v56_v37  ;;  %v53_v39 = vld [vmem:[%s642_s2] sm:$0x3]  ;;  %v61_v40 = vsub.s32 1, %v56_v37  ;;  %v307_v55 = vld [vmem:[%s643_s3 + $0x8] sm:$0xff]  ;;  %v312_v6 = vld [vmem:[%s643_s3 + $0x30] sm:$0xff] }
   0xf   :  { %252 = vmatpush1.bf16.msra.mxu0 %v413_v7  ;;  %389 = vmatpush1.bf16.msra.mxu1 %v413_v7  ;;  %v306_v47 = vld [vmem:[%s643_s3] sm:$0xff]  ;;  %v311_v56 = vld [vmem:[%s643_s3 + $0x28] sm:$0xff] }
  0x10   :  { %253 = vmatprep.subr.bf16.mxu0 %v414_v8  ;;  %374 = vmatprep.subr.bf16.mxu1 %v414_v8  ;;  %v58_v41 = vrot.slane %v53_v39, %v57_v38  ;;  %v62_v42 = vrot.slane %v53_v39, %v61_v40  ;;  %v310_v48 = vld [vmem:[%s643_s3 + $0x20] sm:$0xff] }
  0x13   :  { %254 = vmatpush1.bf16.msra.mxu0 %v416_v9  ;;  %390 = vmatpush1.bf16.msra.mxu1 %v416_v9 }
  0x14   :  { %255 = vmatprep.subr.bf16.mxu0 %v417_v10  ;;  %375 = vmatprep.subr.bf16.mxu1 %v417_v10 }
  0x17   :  { %256 = vmatpush1.bf16.msra.mxu0 %v419_v11  ;;  %391 = vmatpush1.bf16.msra.mxu1 %v419_v11  ;;  %v309_v11 = vld [vmem:[%s643_s3 + $0x18] sm:$0xff] }
  0x18   :  { %257 = vmatprep.subr.bf16.mxu0 %v420_v12  ;;  %376 = vmatprep.subr.bf16.mxu1 %v420_v12  ;;  %v313_v12 = vld [vmem:[%s643_s3 + $0x38] sm:$0xff] }
  0x1b   :  { %258 = vmatpush1.bf16.msra.mxu0 %v422_v14  ;;  %392 = vmatpush1.bf16.msra.mxu1 %v422_v14 }
  0x1c   :  { %259 = vmatprep.subr.bf16.mxu0 %v423_v16  ;;  %377 = vmatprep.subr.bf16.mxu1 %v423_v16 }
  0x1f   :  { %260 = vmatpush1.bf16.msra.mxu0 %v425_v17  ;;  %393 = vmatpush1.bf16.msra.mxu1 %v425_v17 }
  0x20   :  { %261 = vmatprep.subr.bf16.mxu0 %v426_v18  ;;  %378 = vmatprep.subr.bf16.mxu1 %v426_v18 }
  0x23   :  { %262 = vmatpush2.bf16.msra.mxu0 %v428_v19  ;;  %394 = vmatpush2.bf16.msra.mxu1 %v428_v19 }
  0x24   :  { %263 = vmatprep.subr.bf16.mxu0 %v429_v20  ;;  %379 = vmatprep.subr.bf16.mxu1 %v429_v20 }
  0x27   :  { %264 = vmatpush2.bf16.msra.mxu0 %v431_v21  ;;  %395 = vmatpush2.bf16.msra.mxu1 %v431_v21 }
  0x28   :  { %265 = vmatprep.subr.bf16.mxu0 %v432_v22  ;;  %380 = vmatprep.subr.bf16.mxu1 %v432_v22 }
  0x2b   :  { %266 = vmatpush2.bf16.msra.mxu0 %v434_v23  ;;  %396 = vmatpush2.bf16.msra.mxu1 %v434_v23 }
  0x2c   :  { %267 = vmatprep.subr.bf16.mxu0 %v435_v24  ;;  %381 = vmatprep.subr.bf16.mxu1 %v435_v24 }
  0x2f   :  { %268 = vmatpush2.bf16.msra.mxu0 %v437_v25  ;;  %397 = vmatpush2.bf16.msra.mxu1 %v437_v25 }
  0x30   :  { %269 = vmatprep.subr.bf16.mxu0 %v438_v26  ;;  %382 = vmatprep.subr.bf16.mxu1 %v438_v26 }
  0x33   :  { %270 = vmatpush2.bf16.msra.mxu0 %v440_v27  ;;  %398 = vmatpush2.bf16.msra.mxu1 %v440_v27 }
  0x34   :  { %271 = vmatprep.subr.bf16.mxu0 %v441_v28  ;;  %383 = vmatprep.subr.bf16.mxu1 %v441_v28 }
  0x37   :  { %272 = vmatpush2.bf16.msra.mxu0 %v443_v29  ;;  %399 = vmatpush2.bf16.msra.mxu1 %v443_v29 }
  0x38   :  { %273 = vmatprep.subr.bf16.mxu0 %v444_v30  ;;  %384 = vmatprep.subr.bf16.mxu1 %v444_v30 }
  0x3b   :  { %274 = vmatpush2.bf16.msra.mxu0 %v446_v31  ;;  %400 = vmatpush2.bf16.msra.mxu1 %v446_v31 }
  0x3c   :  { %275 = vmatprep.subr.bf16.mxu0 %v447_v32  ;;  %385 = vmatprep.subr.bf16.mxu1 %v447_v32 }
  0x3f   :  { %276 = vmatpush2.bf16.msra.mxu0 %v449_v33  ;;  %401 = vmatpush2.bf16.msra.mxu1 %v449_v33 }
  0x42   :  { %278 = vmatmul.mubr.bf16.vlgmr.msra.gmra.mxu0 %v450_v34  ;;  %288 = vmatmul.mubr.bf16.vlgmr.msra.gmra.mxu1 %v453_v35 }
 0x102   :  { %v279_v43 = vpop.f32.mrf.mxu0  ;;  %v289_v44 = vpop.f32.mrf.mxu1 }
 0x103   :  { %v280_v45 = vadd.f32 %v279_v43, %v58_v41  ;;  %v290_v46 = vadd.f32 %v289_v44, %v58_v41 }
 0x104   :  { %v281_v49 = vpop.f32.mrf.mxu0  ;;  %v291_v50 = vpop.f32.mrf.mxu1 }
 0x105   :  { %v298_v51 = vmax.f32 %v280_v45, 0.0  ;;  %v302_v52 = vmax.f32 %v290_v46, 0.0  ;;  %v282_v53 = vadd.f32 %v281_v49, %v62_v42  ;;  %v292_v54 = vadd.f32 %v291_v50, %v62_v42 }
 0x106   :  { %v283_v57 = vpop.f32.mrf.mxu0  ;;  %v293_v58 = vpop.f32.mrf.mxu1 }
 0x107   :  { %v314_v59 = vadd.f32 %v306_v47, %v298_v51  ;;  %v318_v60 = vadd.f32 %v310_v48, %v302_v52  ;;  %v299_v61 = vmax.f32 %v282_v53, 0.0  ;;  %v303_v62 = vmax.f32 %v292_v54, 0.0 }
 0x108   :  { %v284_v63 = vadd.f32 %v283_v57, %v58_v41  ;;  %v294_v0 = vadd.f32 %v293_v58, %v58_v41  ;;  %v285_v1 = vpop.f32.mrf.mxu0  ;;  %v295_v2 = vpop.f32.mrf.mxu1 }
 0x109   :  { %322 = vst [vmem:[%s644_s4] sm:$0xff] %v314_v59  ;;  %326 = vst [vmem:[%s644_s4 + $0x20] sm:$0xff] %v318_v60  ;;  %v315_v3 = vadd.f32 %v307_v55, %v299_v61  ;;  %v319_v4 = vadd.f32 %v311_v56, %v303_v62  ;;  %v286_v7 = vadd.f32 %v285_v1, %v62_v42 }
 0x10a   :  { %v296_v8 = vadd.f32 %v295_v2, %v62_v42  ;;  %v300_v9 = vmax.f32 %v284_v63, 0.0  ;;  %v304_v10 = vmax.f32 %v294_v0, 0.0 }
 0x10b   :  { %323 = vst [vmem:[%s644_s4 + $0x8] sm:$0xff] %v315_v3  ;;  %327 = vst [vmem:[%s644_s4 + $0x28] sm:$0xff] %v319_v4  ;;  %v301_v13 = vmax.f32 %v286_v7, 0.0 }
 0x10c   :  { %v305_v14 = vmax.f32 %v296_v8, 0.0  ;;  %v316_v15 = vadd.f32 %v308_v5, %v300_v9  ;;  %v320_v16 = vadd.f32 %v312_v6, %v304_v10 }
 0x10d   :  { %v317_v17 = vadd.f32 %v309_v11, %v301_v13 }
 0x10e   :  { %v321_v18 = vadd.f32 %v313_v12, %v305_v14  ;;  %324 = vst [vmem:[%s644_s4 + $0x10] sm:$0xff] %v316_v15  ;;  %328 = vst [vmem:[%s644_s4 + $0x30] sm:$0xff] %v320_v16 }
 0x10f   :  { %325 = vst [vmem:[%s644_s4 + $0x18] sm:$0xff] %v317_v17 }
 0x110   :  { %329 = vst [vmem:[%s644_s4 + $0x38] sm:$0xff] %v321_v18 }

// kernel: bidaf_forward.54
= control target key start
LH: loop header
LB: loop body
LE: loop exit
PB: predicated region body
PF: predicated region fallthrough
CT: control target
= control target key end

     0   :  { %s298_s0 = inlined_call_operand.vmem [shape: f32[2,16,256], index: 0, kind: input, shape index: {}]   ;;  %s299_s1 = inlined_call_operand.vmem [shape: f32[2,16,64], index: 1, kind: input, shape index: {}]   ;;  %s300_s2 = inlined_call_operand.vmem [shape: f32[2,16], index: 2, kind: input, shape index: {}]   ;;  %s301_s3 = inlined_call_operand.vmem [shape: f32[1,1,256], index: 3, kind: input, shape index: {}]   ;;  %s302_s4 = inlined_call_operand.vmem [shape: f32[1,1,64], index: 4, kind: input, shape index: {}]   ;;  %s303_s5 = inlined_call_operand.<no memory space> [shape: f32[1,1], index: 5, kind: input, shape index: {}]   ;;  %s304_s6 = inlined_call_operand.hbm [shape: f32[2,16], index: 6, kind: output, shape index: {}]  }
   0x1   :  { %v11_v0 = vstv %s303_s5 }
   0x2   :  { %12 = vst [vmem:[#allocation2] sm:$0x1] %v11_v0 }
   0x3   :  { %v66_v1 = vld [vmem:[%s299_s1] sm:$0xff]  ;;  %vm81_vm0 = vcmask 523264   ;;  %v67_v3 = vld [vmem:[%s299_s1 + $0x8] sm:$0xff]  ;;  %v36_v4 = vlaneseq  ;;  %v68_v7 = vld [vmem:[%s299_s1 + $0x10] sm:$0xff]  ;;  %v203_v8 = vmov 0  }
   0x4   :  { %v172_v2 = vld [vmem:[%s302_s4] ss:$0 sm:$0xff]  ;;  %176 = vset.pattern.permute.xlu0 %v203_v8  ;;  %v31_v15 = vld [vmem:[%s298_s0 + $0x28] sm:$0xff]  ;;  %v32_v21 = vld [vmem:[%s298_s0 + $0x30] sm:$0xff] }
   0x5   :  { %v77_v5 = vmul.f32 %v172_v2, %v66_v1  ;;  %v78_v6 = vmul.f32 %v172_v2, %v67_v3  ;;  %v79_v9 = vmul.f32 %v172_v2, %v68_v7  ;;  %v37_v10 = vshrl.u32 %v36_v4, 7  ;;  %v34_v13 = vld [vmem:[%s301_s3] sm:$0x3]  ;;  %v27_v20 = vld [vmem:[%s298_s0 + $0x8] sm:$0xff] }
   0x6   :  { %v30_v14 = vld [vmem:[%s298_s0 + $0x20] sm:$0xff] }
   0x7   :  { %v82_v11 = vsel %vm81_vm0, %v77_v5, 0.0  ;;  %v85_v12 = vsel %vm81_vm0, %v78_v6, 0.0  ;;  %v38_v16 = vsub.s32 0, %v37_v10  ;;  %v42_v17 = vsub.s32 1, %v37_v10  ;;  %v26_v18 = vld [vmem:[%s298_s0] sm:$0xff] }
   0x8   :  { %83 = vadd.xlane.f32.xlu0 %v82_v11  ;;  %86 = vadd.xlane.f32.xlu1 %v85_v12  ;;  %v88_v19 = vsel %vm81_vm0, %v79_v9, 0.0 }
   0x9   :  { %13 = vsyncpa [#allocation4], 0  ;;  %v39_v22 = vrot.slane %v34_v13, %v38_v16  ;;  %v43_v23 = vrot.slane %v34_v13, %v42_v17  ;;  %v33_v24 = vld [vmem:[%s298_s0 + $0x38] sm:$0xff]  ;;  %v28_v25 = vld [vmem:[%s298_s0 + $0x10] sm:$0xff]  ;;  %v119_v42 = vand.u32 127, %v36_v4  ;;  %vm129_vm1 = vcmask 130112  }
   0xa   :  { %v29_v26 = vld [vmem:[%s298_s0 + $0x18] sm:$0xff]  ;;  %v173_v46 = vld [vmem:[#allocation2] ss:$0 sm:$0xff]  ;;  %vm140_vm2 = vcmask 1041409   ;;  %vm144_vm4 = vcmask 123904  }
   0xb   :  { %v50_v27 = vmul.f32 %v39_v22, %v30_v14  ;;  %v51_v28 = vmul.f32 %v43_v23, %v31_v15  ;;  %v46_v29 = vmul.f32 %v39_v22, %v26_v18  ;;  %v47_v30 = vmul.f32 %v43_v23, %v27_v20  ;;  %v69_v37 = vld [vmem:[%s299_s1 + $0x18] sm:$0xff]  ;;  %v112_v0 = vld [vmem:[%s300_s2] sm:$0x3]  ;;  %s204_s2 = smov [#allocation3]  }
   0xc   :  { %89 = vadd.xlane.f32.xlu0 %v88_v19  ;;  %v52_v31 = vmul.f32 %v39_v22, %v32_v21  ;;  %v53_v32 = vmul.f32 %v43_v23, %v33_v24  ;;  %v48_v33 = vmul.f32 %v39_v22, %v28_v25  ;;  %v49_v34 = vmul.f32 %v43_v23, %v29_v26  ;;  %s164_s24 = sshll.u32 %s204_s2, 4  ;;  %s165_s24 = int_to_ptr.vmem [resolvable:$true] %s164_s24 }
   0xd   :  { %v60_v35 = vadd.f32 %v51_v28, %v50_v27  ;;  %v54_v36 = vadd.f32 %v47_v30, %v46_v29  ;;  %v80_v40 = vmul.f32 %v172_v2, %v69_v37  ;;  %v122_v43 = vsub.s32 %v119_v42, %v37_v10  ;;  %s181_s25 = scalar_lea.vmem %s165_s24, 32  ;;  %p186_p1 = scmp.lt.s32.totalorder %s165_s24, %s165_s24 }
   0xe   :  { %v63_v38 = vadd.f32 %v53_v32, %v52_v31  ;;  %v57_v39 = vadd.f32 %v49_v34, %v48_v33  ;;  %v124_v44 = vadd.s32 4294967288, %v119_v42  ;;  %vm113_vm3 = vcmp.gt.f32.partialorder %v112_v0, 0.0  ;;  %p182_p0 = scmp.ne.s32.totalorder %s165_s24, %s181_s25  ;;  %p187_p2 = scmp.lt.s32.totalorder %s181_s25, %s181_s25 }
   0xf   :  { %61 = vadd.xlane.f32.xlu1 %v60_v35  ;;  %v91_v41 = vsel %vm81_vm0, %v80_v40, 0.0 }
  0x10   :  { %55 = vadd.xlane.f32.xlu0 %v54_v36  ;;  %v127_v45 = vsub.s32 %v124_v44, %v37_v10  ;;  %p188_p3 = por %p187_p2, %p186_p1 }
  0x12   :  { %p189_p4 = pnand %p188_p3, %p182_p0 }
  0x13   :  { %64 = vadd.xlane.f32.xlu1 %v63_v38 }
  0x14   :  { %58 = vadd.xlane.f32.xlu0 %v57_v39 }
  0x17   :  { %92 = vadd.xlane.f32.xlu1 %v91_v41 }
  0x2a   :  { %105 = vperm.xlu0 %176, %v173_v46  }
  0x91   :  { %v84_v47 = vpop.xlane.xlu0 %83  ;;  %v87_v48 = vpop.xlane.xlu1 %86 }
  0x95   :  { %v90_v49 = vpop.xlane.xlu0 %89 }
  0x98   :  { %v62_v50 = vpop.xlane.xlu1 %61 }
  0x99   :  { %v56_v51 = vpop.xlane.xlu0 %55  ;;  %v96_v55 = vadd.f32 %v90_v49, %v62_v50 }
  0x9a   :  { %v94_v56 = vadd.f32 %v84_v47, %v56_v51 }
  0x9c   :  { %v65_v52 = vpop.xlane.xlu1 %64 }
  0x9d   :  { %v59_v53 = vpop.xlane.xlu0 %58 }
  0x9e   :  { %v95_v57 = vadd.f32 %v87_v48, %v59_v53 }
  0xa0   :  { %v93_v54 = vpop.xlane.xlu1 %92 }
  0xa1   :  { %v97_v58 = vadd.f32 %v93_v54, %v65_v52 }
  0xa5   :  { %v106_v59 = vpop.permute.xlu0 %105 }
  0xa6   :  { %v108_v60 = vadd.f32 %v106_v59, %v94_v56  ;;  %v109_v61 = vadd.f32 %v106_v59, %v95_v57  ;;  %v110_v62 = vadd.f32 %v106_v59, %v96_v55  ;;  %v111_v63 = vadd.f32 %v106_v59, %v97_v58 }
  0xa8   :  { %v123_v1 = vrot.slane %v108_v60, %v122_v43  ;;  %v128_v2 = vrot.slane %v109_v61, %v127_v45  ;;  %v134_v3 = vrot.slane %v110_v62, %v122_v43  ;;  %v138_v4 = vrot.slane %v111_v63, %v127_v45 }
  0xaa   :  { %v130_v5 = vsel %vm129_vm1, %v128_v2, %v123_v1  ;;  %v139_v6 = vsel %vm129_vm1, %v138_v4, %v134_v3 }
  0xab   :  { %v141_v7 = vsel %vm140_vm2, %v139_v6, %v130_v5 }
  0xac   :  { %v143_v8 = vsel %vm113_vm3, %v141_v7, -1e+30 }
  0xad   :  { %v145_v9 = vsel %vm144_vm4, %v143_v8, -inf }
  0xae   :  { %146 = vmax.xlane.f32.xlu1 %v145_v9 }
 0x137   :  { %v147_v10 = vpop.xlane.xlu1 %146 }
 0x138   :  { %v148_v11 = vsub.f32 %v143_v8, %v147_v10 }
 0x13a   :  { %v149_v12 = vmul.f32 1.442695, %v148_v11 }
 0x13c   :  { %177 = vpow2.f32 %v149_v12 }
 0x149   :  { %v178_v13 = vpop.eup %177 }
 0x14a   :  { %v151_v14 = vsel %vm144_vm4, %v178_v13, 0.0 }
 0x14b   :  { %152 = vadd.xlane.f32.xlu1 %v151_v14 }
 0x1d4   :  { %v153_v15 = vpop.xlane.xlu1 %152 }
 0x1d5   :  { %179 = vlog2.f32 %v153_v15 }
 0x1e2   :  { %v180_v16 = vpop.eup %179 }
 0x1e3   :  { %v155_v17 = vmul.f32 0.6931472, %v180_v16 }
 0x1e5   :  { %v156_v18 = vsub.f32 %v148_v11, %v155_v17 }
 0x1e7   :  { %157 = vst.msk [vmem:[#allocation3] sm:$0x3] %vm144_vm4, %v156_v18 }
 0x1e8   :  { %192 = shalt.err (!%p189_p4)
}
 0x1e9   :  { %167 = dma.vmem_to_hbm [thread:$0]  %s165_s24, 32, %s304_s6, [#allocation4]  }
 0x1ea   :  { %201 = dma.done.wait [#allocation4], 32  }
 0x1eb   :  { %202 = vsyncadd [#allocation4], 4294967264 }
 0x1ec   :  { %171 = vsyncpa [#allocation4], 1 }

</bundles_post_ra>
